<compile_context>
chip_gen: v5e
topology: v5e:2x2
jax: 0.10.0
libtpu: 0.0.40
codegen_flags: <defaults>
</compile_context>

<pallas_src>
import jax
import jax.numpy as jnp
from jax.experimental import pallas as pl
from jax.experimental.pallas import tpu as pltpu

NEG_SLOPE = 0.01  # F.leaky_relu default negative_slope


# ------------------------------ small helpers -------------------------------------
def _round_up(n, m):
    return ((n + m - 1) // m) * m


def _vmem_budget_bytes():
    """Per-generation VMEM budget for vmem_limit_bytes (conservative default)."""
    try:
        kind = jax.devices()[0].device_kind.lower()
    except Exception:
        kind = ""
    if any(t in kind for t in ("v2", "v3", "v4", "v5", "v6")):
        return 100 * 1024 * 1024          # 128 MiB/TC parts
    return 48 * 1024 * 1024               # v7x: 64 MiB/TC, leave headroom


def _cp(n_grid_axes, budget):
    return pltpu.CompilerParams(
        dimension_semantics=("parallel",) * n_grid_axes,
        vmem_limit_bytes=int(budget))


def _pick_row_tile(H, W, Wp, Cin, Cout, in_item, pack, fuse_pool, budget, cap):
    """Largest divisor of H (<= cap) whose per-step working set fits ~budget/2."""
    usable = budget // 2

    def cost(th):
        l_in = (th + 2) * Wp + 8
        c = 2 * l_in * Cin * in_item                 # input block (double buffered)
        c += 2 * 9 * Cin * Cout * 2                  # weight buffers (bf16)
        ro = th // 2 if fuse_pool else th
        wo = W // 2 if fuse_pool else W
        c += 2 * ro * wo * Cout * 2                  # output block (bf16)
        c += th * Wp * Cout * 4                      # f32 accumulator (spill)
        if pack:
            c += th * Wp * 3 * Cin * 2               # packed-K concat temporary
        return c

    divs = [d for d in range(1, H + 1)
            if H % d == 0 and (not fuse_pool or d % 2 == 0)]
    if not divs:
        divs = [H]
    ok = [d for d in divs if d <= cap and cost(d) <= usable]
    if ok:
        return max(ok)
    return min(divs)


# --------------------- 3x3 conv + bias + leaky_relu (+ fused 2x2 pool) ------------
def _make_conv_kernel(TH, Wp, W, Cout, pack, fuse_pool, normalize):
    L = TH * Wp

    def kernel(x_ref, w_ref, b_ref, o_ref):
        # x_ref: ((TH+2)*Wp + 8, Cin)  flat halo'd row slab (bf16, or f32 raw pixels)
        # w_ref: (3, 3*Cin, Cout) bf16 if pack else (9, Cin, Cout) bf16
        # b_ref: (1, Cout) f32
        # o_ref: (THo, Wo, Cout) bf16
        def tap(off):
            v = x_ref[off:off + L, :]
            if normalize:
                v = (v.astype(jnp.float32) - 127.5) * (1.0 / 127.5)
            return v.astype(jnp.bfloat16)

        acc = None
        if pack:
            # 3 deep dots (K = 3*Cin): dy taps concatenated along the lane dim.
            for dx in range(3):
                cat = jnp.concatenate([tap(dy * Wp + dx) for dy in range(3)], axis=-1)
                c = jnp.dot(cat, w_ref[dx], preferred_element_type=jnp.float32)
                acc = c if acc is None else acc + c
        else:
            for dy in range(3):
                for dx in range(3):
                    c = jnp.dot(tap(dy * Wp + dx), w_ref[dy * 3 + dx],
                                preferred_element_type=jnp.float32)
                    acc = c if acc is None else acc + c

        y = acc + b_ref[...]
        y = jnp.where(y >= 0, y, NEG_SLOPE * y)               # leaky_relu in f32
        y = y.reshape(TH, Wp, Cout)[:, :W, :]                 # drop pad columns
        if fuse_pool:
            y = y.reshape(TH // 2, 2, W, Cout)
            y = jnp.maximum(y[:, 0], y[:, 1])                  # H-pair max
            y = y.reshape(TH // 2, W // 2, 2, Cout)
            y = jnp.maximum(y[:, :, 0], y[:, :, 1])            # W-pair max
        o_ref[...] = y.astype(o_ref.dtype)

    return kernel


def conv3x3_lrelu(x, w, b, *, fuse_pool=False, normalize=False, budget=None):
    # x: (B, H, W, Cin)  bf16 (or f32 raw pixels when normalize=True)
    # w: (3, 3*Cin, Cout) bf16 for Cin<=64 layers, else (9, Cin, Cout) bf16
    # b: (1, Cout) f32
    B, H, W, Cin = x.shape
    Cout = w.shape[-1]
    pack = (w.shape[0] == 3)
    if pack:
        assert w.shape == (3, 3 * Cin, Cout)
    else:
        assert w.shape == (9, Cin, Cout)
    if fuse_pool:
        assert H % 2 == 0 and W % 2 == 0

    budget = _vmem_budget_bytes() if budget is None else budget
    cap = 32 if budget > 64 * 1024 * 1024 else 16
    Wp = _round_up(W + 2, 8)
    TH = _pick_row_tile(H, W, Wp, Cin, Cout, x.dtype.itemsize, pack, fuse_pool,
                        budget, cap)
    nrt = H // TH
    L_in = (TH + 2) * Wp + 8                                   # +8 cushion rows

    # pad with 127.5 when normalization is fused so padding maps to exactly 0
    pad_val = 127.5 if normalize else 0.0
    xp = jnp.pad(x, ((0, 0), (1, 1), (1, Wp - W - 1), (0, 0)),
                 constant_values=pad_val)
    xf = jnp.pad(xp.reshape(B, (H + 2) * Wp, Cin), ((0, 0), (0, 8), (0, 0)),
                 constant_values=pad_val)
    if nrt == 1:
        xt = xf.reshape(B, 1, L_in, Cin)
    else:
        # TODO(synk): replace this wrapper-side halo copy with manual
        # pltpu.make_async_copy double-buffering from a pl.ANY HBM ref.
        xt = jnp.stack([xf[:, r * TH * Wp: r * TH * Wp + L_in] for r in range(nrt)],
                       axis=1)

    Ho, Wo = (H // 2, W // 2) if fuse_pool else (H, W)
    THo = TH // 2 if fuse_pool else TH
    kernel = _make_conv_kernel(TH, Wp, W, Cout, pack, fuse_pool, normalize)

    return pl.pallas_call(
        kernel,
        out_shape=jax.ShapeDtypeStruct((B, Ho, Wo, Cout), jnp.bfloat16),
        grid=(B, nrt),
        in_specs=[
            pl.BlockSpec((None, None, L_in, Cin), lambda bi, ri: (bi, ri, 0, 0)),
            pl.BlockSpec(w.shape, lambda bi, ri: (0, 0, 0)),
            pl.BlockSpec((1, Cout), lambda bi, ri: (0, 0)),
        ],
        out_specs=pl.BlockSpec((None, THo, Wo, Cout), lambda bi, ri: (bi, ri, 0, 0)),
        compiler_params=_cp(2, budget),
    )(xt, w, b)


# ---------------- prob (1x1, Cout=1) + 5x5 dilation pool + NMS (fused) ------------
def _prob_dilate_nms_kernel(x_ref, w_ref, b_ref, prob_ref, xdil_ref, xnms_ref,
                            pad_scr):
    # x_ref:   (Hs, Ws, 512) bf16   conv5_3 output (batch squeezed)
    # w_ref:   (1, 1, 512)   f32    prob weights (VPU multiply + lane reduce)
    # b_ref:   (1, 1)        f32
    # outputs: (Hs, Ws)      f32    prob / dilated / nms maps
    # pad_scr: (Hs+4, Ws+4)  f32    -inf padded scratch for the 5x5 max pool
    Hs, Ws, _ = x_ref.shape
    x = x_ref[...].astype(jnp.float32)
    prob = jnp.sum(x * w_ref[...], axis=-1) + b_ref[...]      # (Hs, Ws)
    prob_ref[...] = prob

    pad_scr[...] = jnp.full((Hs + 4, Ws + 4), -jnp.inf, jnp.float32)
    pad_scr[2:2 + Hs, 2:2 + Ws] = prob
    m = prob                                                   # center tap
    for dy in range(5):
        for dx in range(5):
            if dy == 2 and dx == 2:
                continue
            m = jnp.maximum(m, pad_scr[dy:dy + Hs, dx:dx + Ws])
    # maxpool5(x + 10) - 10 == maxpool5(x): the +10/-10 is a no-op and dropped.
    xdil_ref[...] = m
    xnms_ref[...] = 100.0 * prob - 99.0 * jnp.maximum(m, 0.0)


def prob_dilate_nms(x, w, b, budget=None):
    B, Hs, Ws, C = x.shape
    budget = _vmem_budget_bytes() if budget is None else budget
    return pl.pallas_call(
        _prob_dilate_nms_kernel,
        out_shape=(jax.ShapeDtypeStruct((B, Hs, Ws), jnp.float32),
                   jax.ShapeDtypeStruct((B, Hs, Ws), jnp.float32),
                   jax.ShapeDtypeStruct((B, Hs, Ws), jnp.float32)),
        grid=(B,),
        in_specs=[
            pl.BlockSpec((None, Hs, Ws, C), lambda bi: (bi, 0, 0, 0)),
            pl.BlockSpec((1, 1, C), lambda bi: (0, 0, 0)),
            pl.BlockSpec((1, 1), lambda bi: (0, 0)),
        ],
        out_specs=(pl.BlockSpec((None, Hs, Ws), lambda bi: (bi, 0, 0)),
                   pl.BlockSpec((None, Hs, Ws), lambda bi: (bi, 0, 0)),
                   pl.BlockSpec((None, Hs, Ws), lambda bi: (bi, 0, 0))),
        scratch_shapes=[pltpu.VMEM((Hs + 4, Ws + 4), jnp.float32)],
        compiler_params=_cp(1, budget),
    )(x, w, b)


# --------------------------------- full forward -----------------------------------
def net_forward(x_nchw, params):
    # x_nchw: (B, 3, H, W) raw pixels in [0, 255], H and W divisible by 16.
    x = jnp.transpose(x_nchw, (0, 2, 3, 1))                    # NCHW -> NHWC (glue)

    x = conv3x3_lrelu(x, *params['conv1_1'], normalize=True)   # norm fused in-kernel
    x = conv3x3_lrelu(x, *params['conv1_2'], fuse_pool=True)
    x = conv3x3_lrelu(x, *params['conv2_1'])
    x = conv3x3_lrelu(x, *params['conv2_2'], fuse_pool=True)
    x = conv3x3_lrelu(x, *params['conv3_1'])
    x = conv3x3_lrelu(x, *params['conv3_2'])
    x = conv3x3_lrelu(x, *params['conv3_3'], fuse_pool=True)
    x = conv3x3_lrelu(x, *params['conv4_1'])
    x = conv3x3_lrelu(x, *params['conv4_2'])
    x = conv3x3_lrelu(x, *params['conv4_3'], fuse_pool=True)
    feature = x                                                # (B, H/16, W/16, 512)
    x = conv3x3_lrelu(x, *params['conv5_1'])
    x = conv3x3_lrelu(x, *params['conv5_2'])
    x = conv3x3_lrelu(x, *params['conv5_3'])

    prob, xdil, xnms = prob_dilate_nms(x, *params['prob'])     # each (B, Hs, Ws) f32

    prob = prob[:, None]                                       # -> NCHW (B,1,Hs,Ws)
    xdil = xdil[:, None]
    xnms = xnms[:, None]
    feature = jnp.transpose(feature.astype(jnp.float32), (0, 3, 1, 2))

    xnms_cat = jnp.concatenate([-xnms, xnms], axis=1)
    x_cat = jnp.concatenate([-prob, prob], axis=1)
    return xnms_cat, x_cat, xdil, feature


# -------------------------------- parameter setup ---------------------------------
def _pack_weights(w9):
    # (9, Cin, Cout), taps (dy, dx) row-major  ->  (3[dx], 3[dy]*Cin, Cout) bf16
    _, cin, cout = w9.shape
    return (w9.reshape(3, 3, cin, cout).transpose(1, 0, 2, 3)
              .reshape(3, 3 * cin, cout).astype(jnp.bfloat16))


def init_params(key):
    # Canonical layout: (9, Cin, Cout) f32, taps in (dy, dx) row-major order.
    # From a PyTorch checkpoint: w9 = w_torch.permute(2, 3, 1, 0).reshape(9, Cin, Cout)
    cfgs = [('conv1_1', 3, 64), ('conv1_2', 64, 64),
            ('conv2_1', 64, 128), ('conv2_2', 128, 128),
            ('conv3_1', 128, 256), ('conv3_2', 256, 256), ('conv3_3', 256, 256),
            ('conv4_1', 256, 512), ('conv4_2', 512, 512), ('conv4_3', 512, 512),
            ('conv5_1', 512, 512), ('conv5_2', 512, 512), ('conv5_3', 512, 512)]
    params = {}
    for name, cin, cout in cfgs:
        key, kw, kb = jax.random.split(key, 3)
        std = (2.0 / (cin * 9)) ** 0.5
        params[name] = (jax.random.normal(kw, (9, cin, cout), jnp.float32) * std,
                        jax.random.normal(kb, (cout,), jnp.float32) * 0.01)
    key, kw, kb = jax.random.split(key, 3)
    params['prob'] = (jax.random.normal(kw, (512, 1), jnp.float32) * (2.0 / 512) ** 0.5,
                      jax.random.normal(kb, (1,), jnp.float32) * 0.01)
    return params


def prepare_params(raw):
    # Kernel layouts: packed bf16 weights for Cin<=64, (9,Cin,Cout) bf16 otherwise,
    # (1,Cout) f32 biases; prob weights stay f32 (VPU path).
    p = {}
    for name, (w, b) in raw.items():
        if name == 'prob':
            p[name] = (w[:, 0].reshape(1, 1, -1).astype(jnp.float32),
                       b.reshape(1, 1).astype(jnp.float32))
        else:
            cin = w.shape[1]
            wk = _pack_weights(w) if cin <= 64 else w.astype(jnp.bfloat16)
            p[name] = (wk, b.reshape(1, -1).astype(jnp.float32))
    return p


# ----------------------------- lightweight self-check -----------------------------
def _reference_conv3x3(x, w9, b, fuse_pool=False, normalize=False):
    B, H, W, Cin = x.shape
    xf = x.astype(jnp.float32)
    if normalize:
        xf = (xf - 127.5) * (1.0 / 127.5)
    xf = xf.astype(jnp.bfloat16).astype(jnp.float32)
    xp = jnp.pad(xf, ((0, 0), (1, 1), (1, 1), (0, 0)))
    wf = w9.astype(jnp.bfloat16).astype(jnp.float32)
    out = None
    for dy in range(3):
        for dx in range(3):
            t = jnp.einsum('bhwc,co->bhwo', xp[:, dy:dy + H, dx:dx + W], wf[dy * 3 + dx])
            out = t if out is None else out + t
    out = out + b.reshape(1, 1, 1, -1).astype(jnp.float32)
    out = jnp.where(out >= 0, out, NEG_SLOPE * out)
    if fuse_pool:
        out = out.reshape(B, H // 2, 2, W // 2, 2, out.shape[-1]).max(axis=(2, 4))
    return out


def _self_check(key):
    k1, k2, k3, k4, k5, k6 = jax.random.split(key, 6)

    # (a) conv1_1-style: in-kernel normalization + packed-K im2col (Cin=3).
    x = jax.random.uniform(k1, (1, 16, 16, 3), jnp.float32, 0.0, 255.0)
    w9 = jax.random.normal(k2, (9, 3, 64), jnp.float32) * 0.2
    b = jax.random.normal(k3, (64,), jnp.float32) * 0.1
    out = conv3x3_lrelu(x, _pack_weights(w9), b.reshape(1, -1), normalize=True)
    ref = _reference_conv3x3(x, w9, b, normalize=True)
    assert float(jnp.max(jnp.abs(out.astype(jnp.float32) - ref))) < 5e-2

    # (b) mid-layer style: Cin=128 (un-packed taps) + fused 2x2 max pool.
    x = (jax.random.normal(k4, (1, 16, 16, 128), jnp.float32) * 0.5).astype(jnp.bfloat16)
    w9 = jax.random.normal(k5, (9, 128, 128), jnp.float32) * (2.0 / (128 * 9)) ** 0.5
    b = jax.random.normal(k6, (128,), jnp.float32) * 0.1
    out = conv3x3_lrelu(x, w9.astype(jnp.bfloat16), b.reshape(1, -1), fuse_pool=True)
    ref = _reference_conv3x3(x, w9, b, fuse_pool=True)
    assert float(jnp.max(jnp.abs(out.astype(jnp.float32) - ref))) < 5e-2


if __name__ == "__main__":
    root = jax.random.PRNGKey(0)
    k_check, k_param, k_x = jax.random.split(root, 3)

    _self_check(k_check)

    params = prepare_params(init_params(k_param))

    B, H, W = 2, 64, 64                      # H, W divisible by modelpooling = 16
    x = jax.random.uniform(k_x, (B, 3, H, W), jnp.float32, 0.0, 255.0)

    fwd = jax.jit(net_forward)
    xnms, xcat, xdilated, feature = jax.block_until_ready(fwd(x, params))

    hs, ws = H // 16, W // 16
    assert xnms.shape == (B, 2, hs, ws)
    assert xcat.shape == (B, 2, hs, ws)
    assert xdilated.shape == (B, 1, hs, ws)
    assert feature.shape == (B, 512, hs, ws)
    for t in (xnms, xcat, xdilated, feature):
        assert bool(jnp.all(jnp.isfinite(t)))
    print("KERNEL_OK")
</pallas_src>

<mosaic_0001>
module attributes {stable_mosaic.version = 11 : i64} {
  func.func @kernel(%arg0: i32, %arg1: i32, %arg2: memref<1x1x440x3xf32, #tpu.memory_space<vmem>>, %arg3: memref<3x9x64xbf16, #tpu.memory_space<vmem>>, %arg4: memref<1x64xf32, #tpu.memory_space<vmem>>, %arg5: memref<1x16x16x64xbf16, #tpu.memory_space<vmem>>) attributes {dimension_semantics = [#tpu.dimension_semantics<parallel>, #tpu.dimension_semantics<parallel>], iteration_bounds = array<i64: 1, 1>, scalar_prefetch = 0 : i64, scratch_operands = 0 : i64, tpu.core_type = #tpu.core_type<tc>, window_params = [{transform_indices = @transform_0, window_bounds = array<i64: 1, 1, 440, 3>}, {pipeline_mode = #tpu.pipeline_mode<synchronous>, transform_indices = @transform_1, window_bounds = array<i64: 3, 9, 64>}, {pipeline_mode = #tpu.pipeline_mode<synchronous>, transform_indices = @transform_2, window_bounds = array<i64: 1, 64>}, {transform_indices = @transform_3, window_bounds = array<i64: 1, 16, 16, 64>}]} {
    %c0 = arith.constant 0 : index
    %c0_0 = arith.constant 0 : index
    %c0_1 = arith.constant 0 : index
    %c0_2 = arith.constant 0 : index
    %0 = vector.load %arg2[%c0, %c0_0, %c0_1, %c0_2] : memref<1x1x440x3xf32, #tpu.memory_space<vmem>>, vector<1x1x384x3xf32>
    %1 = vector.shape_cast %0 : vector<1x1x384x3xf32> to vector<384x3xf32>
    %cst = arith.constant 1.275000e+02 : f32
    %2 = vector.broadcast %cst : f32 to vector<384x3xf32>
    %3 = arith.subf %1, %2 : vector<384x3xf32>
    %cst_3 = arith.constant 0.00784313772 : f32
    %4 = vector.broadcast %cst_3 : f32 to vector<384x3xf32>
    %5 = arith.mulf %3, %4 : vector<384x3xf32>
    %6 = arith.truncf %5 : vector<384x3xf32> to vector<384x3xbf16>
    %c0_4 = arith.constant 0 : index
    %c0_5 = arith.constant 0 : index
    %c24 = arith.constant 24 : index
    %c0_6 = arith.constant 0 : index
    %7 = vector.load %arg2[%c0_4, %c0_5, %c24, %c0_6] : memref<1x1x440x3xf32, #tpu.memory_space<vmem>>, vector<1x1x384x3xf32>
    %8 = vector.shape_cast %7 : vector<1x1x384x3xf32> to vector<384x3xf32>
    %cst_7 = arith.constant 1.275000e+02 : f32
    %9 = vector.broadcast %cst_7 : f32 to vector<384x3xf32>
    %10 = arith.subf %8, %9 : vector<384x3xf32>
    %cst_8 = arith.constant 0.00784313772 : f32
    %11 = vector.broadcast %cst_8 : f32 to vector<384x3xf32>
    %12 = arith.mulf %10, %11 : vector<384x3xf32>
    %13 = arith.truncf %12 : vector<384x3xf32> to vector<384x3xbf16>
    %c0_9 = arith.constant 0 : index
    %c0_10 = arith.constant 0 : index
    %c48 = arith.constant 48 : index
    %c0_11 = arith.constant 0 : index
    %14 = vector.load %arg2[%c0_9, %c0_10, %c48, %c0_11] : memref<1x1x440x3xf32, #tpu.memory_space<vmem>>, vector<1x1x384x3xf32>
    %15 = vector.shape_cast %14 : vector<1x1x384x3xf32> to vector<384x3xf32>
    %cst_12 = arith.constant 1.275000e+02 : f32
    %16 = vector.broadcast %cst_12 : f32 to vector<384x3xf32>
    %17 = arith.subf %15, %16 : vector<384x3xf32>
    %cst_13 = arith.constant 0.00784313772 : f32
    %18 = vector.broadcast %cst_13 : f32 to vector<384x3xf32>
    %19 = arith.mulf %17, %18 : vector<384x3xf32>
    %20 = arith.truncf %19 : vector<384x3xf32> to vector<384x3xbf16>
    %21 = tpu.concatenate %6, %13, %20 in 1 : vector<384x3xbf16>, vector<384x3xbf16>, vector<384x3xbf16> -> vector<384x9xbf16>
    %c0_14 = arith.constant 0 : index
    %c0_15 = arith.constant 0 : index
    %c0_16 = arith.constant 0 : index
    %22 = vector.load %arg3[%c0_14, %c0_15, %c0_16] : memref<3x9x64xbf16, #tpu.memory_space<vmem>>, vector<1x9x64xbf16>
    %23 = vector.shape_cast %22 : vector<1x9x64xbf16> to vector<9x64xbf16>
    %cst_17 = arith.constant dense<0.000000e+00> : vector<384x64xf32>
    %24 = tpu.matmul %21, %23, %cst_17 {dimension_numbers = #tpu.dot_dimension_numbers<[1], [0], [0], [1], [0, 0, 1, 1], [], []>} : vector<384x9xbf16>, vector<9x64xbf16>, vector<384x64xf32> -> vector<384x64xf32>
    %c0_18 = arith.constant 0 : index
    %c0_19 = arith.constant 0 : index
    %c1 = arith.constant 1 : index
    %c0_20 = arith.constant 0 : index
    %25 = vector.load %arg2[%c0_18, %c0_19, %c1, %c0_20] : memref<1x1x440x3xf32, #tpu.memory_space<vmem>>, vector<1x1x384x3xf32>
    %26 = vector.shape_cast %25 : vector<1x1x384x3xf32> to vector<384x3xf32>
    %cst_21 = arith.constant 1.275000e+02 : f32
    %27 = vector.broadcast %cst_21 : f32 to vector<384x3xf32>
    %28 = arith.subf %26, %27 : vector<384x3xf32>
    %cst_22 = arith.constant 0.00784313772 : f32
    %29 = vector.broadcast %cst_22 : f32 to vector<384x3xf32>
    %30 = arith.mulf %28, %29 : vector<384x3xf32>
    %31 = arith.truncf %30 : vector<384x3xf32> to vector<384x3xbf16>
    %c0_23 = arith.constant 0 : index
    %c0_24 = arith.constant 0 : index
    %c25 = arith.constant 25 : index
    %c0_25 = arith.constant 0 : index
    %32 = vector.load %arg2[%c0_23, %c0_24, %c25, %c0_25] : memref<1x1x440x3xf32, #tpu.memory_space<vmem>>, vector<1x1x384x3xf32>
    %33 = vector.shape_cast %32 : vector<1x1x384x3xf32> to vector<384x3xf32>
    %cst_26 = arith.constant 1.275000e+02 : f32
    %34 = vector.broadcast %cst_26 : f32 to vector<384x3xf32>
    %35 = arith.subf %33, %34 : vector<384x3xf32>
    %cst_27 = arith.constant 0.00784313772 : f32
    %36 = vector.broadcast %cst_27 : f32 to vector<384x3xf32>
    %37 = arith.mulf %35, %36 : vector<384x3xf32>
    %38 = arith.truncf %37 : vector<384x3xf32> to vector<384x3xbf16>
    %c0_28 = arith.constant 0 : index
    %c0_29 = arith.constant 0 : index
    %c49 = arith.constant 49 : index
    %c0_30 = arith.constant 0 : index
    %39 = vector.load %arg2[%c0_28, %c0_29, %c49, %c0_30] : memref<1x1x440x3xf32, #tpu.memory_space<vmem>>, vector<1x1x384x3xf32>
    %40 = vector.shape_cast %39 : vector<1x1x384x3xf32> to vector<384x3xf32>
    %cst_31 = arith.constant 1.275000e+02 : f32
    %41 = vector.broadcast %cst_31 : f32 to vector<384x3xf32>
    %42 = arith.subf %40, %41 : vector<384x3xf32>
    %cst_32 = arith.constant 0.00784313772 : f32
    %43 = vector.broadcast %cst_32 : f32 to vector<384x3xf32>
    %44 = arith.mulf %42, %43 : vector<384x3xf32>
    %45 = arith.truncf %44 : vector<384x3xf32> to vector<384x3xbf16>
    %46 = tpu.concatenate %31, %38, %45 in 1 : vector<384x3xbf16>, vector<384x3xbf16>, vector<384x3xbf16> -> vector<384x9xbf16>
    %c1_33 = arith.constant 1 : index
    %c0_34 = arith.constant 0 : index
    %c0_35 = arith.constant 0 : index
    %47 = vector.load %arg3[%c1_33, %c0_34, %c0_35] : memref<3x9x64xbf16, #tpu.memory_space<vmem>>, vector<1x9x64xbf16>
    %48 = vector.shape_cast %47 : vector<1x9x64xbf16> to vector<9x64xbf16>
    %cst_36 = arith.constant dense<0.000000e+00> : vector<384x64xf32>
    %49 = tpu.matmul %46, %48, %cst_36 {dimension_numbers = #tpu.dot_dimension_numbers<[1], [0], [0], [1], [0, 0, 1, 1], [], []>} : vector<384x9xbf16>, vector<9x64xbf16>, vector<384x64xf32> -> vector<384x64xf32>
    %50 = arith.addf %24, %49 : vector<384x64xf32>
    %c0_37 = arith.constant 0 : index
    %c0_38 = arith.constant 0 : index
    %c2 = arith.constant 2 : index
    %c0_39 = arith.constant 0 : index
    %51 = vector.load %arg2[%c0_37, %c0_38, %c2, %c0_39] : memref<1x1x440x3xf32, #tpu.memory_space<vmem>>, vector<1x1x384x3xf32>
    %52 = vector.shape_cast %51 : vector<1x1x384x3xf32> to vector<384x3xf32>
    %cst_40 = arith.constant 1.275000e+02 : f32
    %53 = vector.broadcast %cst_40 : f32 to vector<384x3xf32>
    %54 = arith.subf %52, %53 : vector<384x3xf32>
    %cst_41 = arith.constant 0.00784313772 : f32
    %55 = vector.broadcast %cst_41 : f32 to vector<384x3xf32>
    %56 = arith.mulf %54, %55 : vector<384x3xf32>
    %57 = arith.truncf %56 : vector<384x3xf32> to vector<384x3xbf16>
    %c0_42 = arith.constant 0 : index
    %c0_43 = arith.constant 0 : index
    %c26 = arith.constant 26 : index
    %c0_44 = arith.constant 0 : index
    %58 = vector.load %arg2[%c0_42, %c0_43, %c26, %c0_44] : memref<1x1x440x3xf32, #tpu.memory_space<vmem>>, vector<1x1x384x3xf32>
    %59 = vector.shape_cast %58 : vector<1x1x384x3xf32> to vector<384x3xf32>
    %cst_45 = arith.constant 1.275000e+02 : f32
    %60 = vector.broadcast %cst_45 : f32 to vector<384x3xf32>
    %61 = arith.subf %59, %60 : vector<384x3xf32>
    %cst_46 = arith.constant 0.00784313772 : f32
    %62 = vector.broadcast %cst_46 : f32 to vector<384x3xf32>
    %63 = arith.mulf %61, %62 : vector<384x3xf32>
    %64 = arith.truncf %63 : vector<384x3xf32> to vector<384x3xbf16>
    %c0_47 = arith.constant 0 : index
    %c0_48 = arith.constant 0 : index
    %c50 = arith.constant 50 : index
    %c0_49 = arith.constant 0 : index
    %65 = vector.load %arg2[%c0_47, %c0_48, %c50, %c0_49] : memref<1x1x440x3xf32, #tpu.memory_space<vmem>>, vector<1x1x384x3xf32>
    %66 = vector.shape_cast %65 : vector<1x1x384x3xf32> to vector<384x3xf32>
    %cst_50 = arith.constant 1.275000e+02 : f32
    %67 = vector.broadcast %cst_50 : f32 to vector<384x3xf32>
    %68 = arith.subf %66, %67 : vector<384x3xf32>
    %cst_51 = arith.constant 0.00784313772 : f32
    %69 = vector.broadcast %cst_51 : f32 to vector<384x3xf32>
    %70 = arith.mulf %68, %69 : vector<384x3xf32>
    %71 = arith.truncf %70 : vector<384x3xf32> to vector<384x3xbf16>
    %72 = tpu.concatenate %57, %64, %71 in 1 : vector<384x3xbf16>, vector<384x3xbf16>, vector<384x3xbf16> -> vector<384x9xbf16>
    %c2_52 = arith.constant 2 : index
    %c0_53 = arith.constant 0 : index
    %c0_54 = arith.constant 0 : index
    %73 = vector.load %arg3[%c2_52, %c0_53, %c0_54] : memref<3x9x64xbf16, #tpu.memory_space<vmem>>, vector<1x9x64xbf16>
    %74 = vector.shape_cast %73 : vector<1x9x64xbf16> to vector<9x64xbf16>
    %cst_55 = arith.constant dense<0.000000e+00> : vector<384x64xf32>
    %75 = tpu.matmul %72, %74, %cst_55 {dimension_numbers = #tpu.dot_dimension_numbers<[1], [0], [0], [1], [0, 0, 1, 1], [], []>} : vector<384x9xbf16>, vector<9x64xbf16>, vector<384x64xf32> -> vector<384x64xf32>
    %76 = arith.addf %50, %75 : vector<384x64xf32>
    %c0_56 = arith.constant 0 : index
    %c0_57 = arith.constant 0 : index
    %77 = vector.load %arg4[%c0_56, %c0_57] : memref<1x64xf32, #tpu.memory_space<vmem>>, vector<1x64xf32>
    %78 = vector.broadcast %77 : vector<1x64xf32> to vector<384x64xf32>
    %79 = arith.addf %76, %78 : vector<384x64xf32>
    %cst_58 = arith.constant 0.000000e+00 : f32
    %80 = vector.broadcast %cst_58 : f32 to vector<384x64xf32>
    %81 = arith.cmpf oge, %79, %80 : vector<384x64xf32>
    %cst_59 = arith.constant 0.00999999977 : f32
    %82 = vector.broadcast %cst_59 : f32 to vector<384x64xf32>
    %83 = arith.mulf %82, %79 : vector<384x64xf32>
    %84 = arith.select %81, %79, %83 : vector<384x64xi1>, vector<384x64xf32>
    %85 = vector.shape_cast %84 : vector<384x64xf32> to vector<16x24x64xf32>
    %86 = vector.extract_strided_slice %85 {offsets = [0, 0, 0], sizes = [16, 16, 64], strides = [1, 1, 1]} : vector<16x24x64xf32> to vector<16x16x64xf32>
    %87 = arith.truncf %86 : vector<16x16x64xf32> to vector<16x16x64xbf16>
    %c0_60 = arith.constant 0 : index
    %c0_61 = arith.constant 0 : index
    %c0_62 = arith.constant 0 : index
    %c0_63 = arith.constant 0 : index
    %88 = vector.load %arg5[%c0_60, %c0_61, %c0_62, %c0_63] : memref<1x16x16x64xbf16, #tpu.memory_space<vmem>>, vector<1x16x16x64xbf16>
    %89 = vector.shape_cast %88 : vector<1x16x16x64xbf16> to vector<16x16x64xbf16>
    %90 = vector.shape_cast %87 : vector<16x16x64xbf16> to vector<1x16x16x64xbf16>
    tpu.vector_store %arg5[%c0_60, %c0_61, %c0_62, %c0_63], %90 {strides = array<i32>} : memref<1x16x16x64xbf16, #tpu.memory_space<vmem>>, vector<1x16x16x64xbf16>,
    return
  }
  func.func @transform_0(%arg0: i32, %arg1: i32) -> (i32, i32, i32, i32) {
    %c0_i32 = arith.constant 0 : i32
    %c0_i32_0 = arith.constant 0 : i32
    %c0_i32_1 = arith.constant 0 : i32
    return %arg0, %arg1, %c0_i32, %c0_i32_0 : i32, i32, i32, i32
  }
  func.func @transform_1(%arg0: i32, %arg1: i32) -> (i32, i32, i32) {
    %c0_i32 = arith.constant 0 : i32
    %c0_i32_0 = arith.constant 0 : i32
    %c0_i32_1 = arith.constant 0 : i32
    %c0_i32_2 = arith.constant 0 : i32
    return %c0_i32, %c0_i32_0, %c0_i32_1 : i32, i32, i32
  }
  func.func @transform_2(%arg0: i32, %arg1: i32) -> (i32, i32) {
    %c0_i32 = arith.constant 0 : i32
    %c0_i32_0 = arith.constant 0 : i32
    %c0_i32_1 = arith.constant 0 : i32
    return %c0_i32, %c0_i32_0 : i32, i32
  }
  func.func @transform_3(%arg0: i32, %arg1: i32) -> (i32, i32, i32, i32) {
    %c0_i32 = arith.constant 0 : i32
    %c0_i32_0 = arith.constant 0 : i32
    %c0_i32_1 = arith.constant 0 : i32
    return %arg0, %arg1, %c0_i32, %c0_i32_0 : i32, i32, i32, i32
  }
}

</mosaic_0001>

<bundles_post_ra>
// kernel: tpu_custom_call.1
= control target key start
LH: loop header
LB: loop body
LE: loop exit
PB: predicated region body
PF: predicated region fallthrough
CT: control target
= control target key end

     0   :  { %s2848_s13 = smov 6   ;;  %s2849_s14 = smov 3   ;;  %s4710_s0 = inlined_call_operand.vmem [shape: f32[1,1,440,3], index: 0, kind: input, shape index: {}]   ;;  %s4711_s1 = inlined_call_operand.vmem [shape: bf16[3,9,64], index: 1, kind: input, shape index: {}]   ;;  %s4712_s2 = inlined_call_operand.vmem [shape: f32[1,64], index: 2, kind: input, shape index: {}]   ;;  %s4713_s3 = inlined_call_operand.hbm [shape: bf16[1,16,16,64], index: 3, kind: output, shape index: {}]  }
   0x1   :  { %v653_v0 = vld [vmem:[%s4710_s0 + $0x151] sm:$0xff]  ;;  %v654_v1 = vld [vmem:[%s4710_s0 + $0x159] sm:$0xff]  ;;  %v651_v5 = vld [vmem:[%s4710_s0 + $0x141] sm:$0xff] }
   0x2   :  { %v2654_v2 = vadd.f32 -127.5, %v653_v0  ;;  %v2655_v3 = vadd.f32 -127.5, %v654_v1  ;;  %v650_v4 = vld [vmem:[%s4710_s0 + $0x139] sm:$0xff]  ;;  %v652_v6 = vld [vmem:[%s4710_s0 + $0x149] sm:$0xff]  ;;  %v2652_v8 = vadd.f32 -127.5, %v651_v5  ;;  %v617_v33 = vld [vmem:[%s4710_s0 + $0x31] sm:$0xff] }
   0x3   :  { %v2651_v7 = vadd.f32 -127.5, %v650_v4  ;;  %v2653_v9 = vadd.f32 -127.5, %v652_v6  ;;  %v1554_v10 = vld [vmem:[%s4710_s0 + $0x32] sm:$0xff]  ;;  %v1555_v13 = vld [vmem:[%s4710_s0 + $0x3a] sm:$0xff]  ;;  %v1552_v25 = vld [vmem:[%s4710_s0 + $0x22] sm:$0xff]  ;;  %v2618_v48 = vadd.f32 -127.5, %v617_v33 }
   0x4   :  { %v749_v11 = vmul.f32 0.007843138, %v2654_v2  ;;  %v750_v12 = vmul.f32 0.007843138, %v2655_v3  ;;  %v747_v15 = vmul.f32 0.007843138, %v2652_v8 }
   0x5   :  { %v746_v14 = vmul.f32 0.007843138, %v2651_v7  ;;  %v748_v16 = vmul.f32 0.007843138, %v2653_v9  ;;  %v2730_v19 = vadd.f32 -127.5, %v1554_v10  ;;  %v2731_v23 = vadd.f32 -127.5, %v1555_v13 }
   0x6   :  { %v797_v17 = vpack.c.bf16 %v749_v11, %v749_v11  ;;  %v798_v18 = vpack.c.bf16 %v750_v12, %v750_v12  ;;  %v795_v21 = vpack.c.bf16 %v747_v15, %v747_v15  ;;  %v1551_v24 = vld [vmem:[%s4710_s0 + $0x1a] sm:$0xff]  ;;  %v2728_v37 = vadd.f32 -127.5, %v1552_v25  ;;  %v22_v39 = vld [vmem:[%s4710_s0 + $0x30] sm:$0xff] }
   0x7   :  { %v794_v20 = vpack.c.bf16 %v746_v14, %v746_v14  ;;  %v796_v22 = vpack.c.bf16 %v748_v16, %v748_v16  ;;  %v1650_v28 = vmul.f32 0.007843138, %v2730_v19  ;;  %v1651_v32 = vmul.f32 0.007843138, %v2731_v23  ;;  %v618_v38 = vld [vmem:[%s4710_s0 + $0x39] sm:$0xff]  ;;  %v655_v44 = vld [vmem:[%s4710_s0 + $0x161] sm:$0xff] }
   0x8   :  { %v2901_v26 = vunpack.c.l.b16 %v797_v17  ;;  %v2903_v27 = vunpack.c.l.b16 %v798_v18  ;;  %v915_v30 = vunpack.c.l.b16 %v795_v21  ;;  %v2727_v36 = vadd.f32 -127.5, %v1551_v24  ;;  %v23_v40 = vld [vmem:[%s4710_s0 + $0x38] sm:$0xff]  ;;  %v656_v53 = vld [vmem:[%s4710_s0 + $0x169] sm:$0xff] }
   0x9   :  { %v2905_v29 = vunpack.c.l.b16 %v794_v20  ;;  %v2907_v31 = vunpack.c.l.b16 %v796_v22  ;;  %v1698_v35 = vpack.c.bf16 %v1650_v28, %v1650_v28  ;;  %v1699_v43 = vpack.c.bf16 %v1651_v32, %v1651_v32 }
   0xa   :  { %v2914_v34 = vpack.c.b16 %v2903_v27, %v2901_v26  ;;  %v1647_v46 = vmul.f32 0.007843138, %v2727_v36  ;;  %v1648_v47 = vmul.f32 0.007843138, %v2728_v37  ;;  %v2619_v50 = vadd.f32 -127.5, %v618_v38 }
   0xb   :  { %v2926_v41 = vpack.c.b16 %v2907_v31, %v915_v30  ;;  %v971_v42 = vpack.c.b16 %v915_v30, %v2905_v29  ;;  %v2934_v45 = vunpack.c.l.b16 %v1698_v35  ;;  %v2937_v49 = vunpack.c.l.b16 %v1699_v43 }
   0xc   :  { %1070 = vrot.lane.b32.xlu1 %v2914_v34, %s2848_s13  ;;  %v2564_v51 = vadd.f32 -127.5, %v22_v39  ;;  %v2565_v52 = vadd.f32 -127.5, %v23_v40 }
   0xd   :  { %4745 = vst [vmem:[#allocation5_spill] sm:$0xff] %v2926_v41  ;;  %1013 = vrot.lane.b32.xlu0 %v971_v42, %s2849_s14 }
   0xe   :  { %8 = vsyncpa [#allocation3], 0  ;;  %v1695_v54 = vpack.c.bf16 %v1647_v46, %v1647_v46  ;;  %v1696_v55 = vpack.c.bf16 %v1648_v47, %v1648_v47  ;;  %v713_v56 = vmul.f32 0.007843138, %v2618_v48  ;;  %v2656_v57 = vadd.f32 -127.5, %v655_v44  ;;  %v1553_v58 = vld [vmem:[%s4710_s0 + $0x2a] sm:$0xff] }
   0xf   :  { %v2947_v59 = vpack.c.b16 %v2937_v49, %v2934_v45  ;;  %v714_v60 = vmul.f32 0.007843138, %v2619_v50  ;;  %v118_v61 = vmul.f32 0.007843138, %v2564_v51  ;;  %v119_v62 = vmul.f32 0.007843138, %v2565_v52 }
  0x10   :  { %v2949_v63 = vunpack.c.l.b16 %v1695_v54  ;;  %v2951_v0 = vunpack.c.l.b16 %v1696_v55  ;;  %v761_v1 = vpack.c.bf16 %v713_v56, %v713_v56  ;;  %v2657_v2 = vadd.f32 -127.5, %v656_v53  ;;  %v19_v6 = vld [vmem:[%s4710_s0 + $0x18] sm:$0xff]  ;;  %v20_v7 = vld [vmem:[%s4710_s0 + $0x20] sm:$0xff]  ;;  %v21_v10 = vld [vmem:[%s4710_s0 + $0x28] sm:$0xff]  ;;  %s2852_s19 = smov 64   ;;  %s2853_s20 = smov 4  }
  0x11   :  { %v762_v3 = vpack.c.bf16 %v714_v60, %v714_v60  ;;  %v166_v4 = vpack.c.bf16 %v118_v61, %v118_v61  ;;  %v167_v5 = vpack.c.bf16 %v119_v62, %v119_v62  ;;  %v2729_v9 = vadd.f32 -127.5, %v1553_v58  ;;  %v614_v17 = vld [vmem:[%s4710_s0 + $0x19] sm:$0xff]  ;;  %v616_v22 = vld [vmem:[%s4710_s0 + $0x29] sm:$0xff]  ;;  %v615_v25 = vld [vmem:[%s4710_s0 + $0x21] sm:$0xff] }
  0x12   :  { %v1890_v8 = vpack.c.b16 %v2951_v0, %v2949_v63  ;;  %v751_v11 = vmul.f32 0.007843138, %v2656_v57  ;;  %v752_v12 = vmul.f32 0.007843138, %v2657_v2  ;;  %v2966_v13 = vunpack.c.l.b16 %v761_v1  ;;  %v619_v61 = vld [vmem:[%s4710_s0 + $0x41] sm:$0xff]  ;;  %v620_v62 = vld [vmem:[%s4710_s0 + $0x49] sm:$0xff] }
  0x13   :  { %v2968_v14 = vunpack.c.l.b16 %v762_v3  ;;  %v2561_v15 = vadd.f32 -127.5, %v19_v6  ;;  %v2562_v16 = vadd.f32 -127.5, %v20_v7  ;;  %v2974_v18 = vunpack.c.l.b16 %v166_v4  ;;  %v1556_v1 = vld [vmem:[%s4710_s0 + $0x42] sm:$0xff] }
  0x14   :  { %1971 = vrot.lane.b32.xlu1 %v2947_v59, %s2848_s13  ;;  %v2976_v19 = vunpack.c.l.b16 %v167_v5  ;;  %v1649_v20 = vmul.f32 0.007843138, %v2729_v9  ;;  %v2563_v21 = vadd.f32 -127.5, %v21_v10  ;;  %v799_v28 = vpack.c.bf16 %v751_v11, %v751_v11  ;;  %v1557_v5 = vld [vmem:[%s4710_s0 + $0x4a] sm:$0xff] }
  0x15   :  { %1914 = vrot.lane.b32.xlu0 %v1890_v8, %s2849_s14  ;;  %v115_v23 = vmul.f32 0.007843138, %v2561_v15  ;;  %v116_v24 = vmul.f32 0.007843138, %v2562_v16  ;;  %v800_v30 = vpack.c.bf16 %v752_v12, %v752_v12  ;;  %v2615_v33 = vadd.f32 -127.5, %v614_v17  ;;  %v1559_v17 = vld [vmem:[%s4710_s0 + $0x5a] sm:$0xff] }
  0x16   :  { %v117_v32 = vmul.f32 0.007843138, %v2563_v21  ;;  %v2986_v35 = vpack.c.b16 %v2968_v14, %v2966_v13  ;;  %v2617_v38 = vadd.f32 -127.5, %v616_v22  ;;  %v2990_v39 = vpack.c.b16 %v2976_v19, %v2974_v18  ;;  %v658_v21 = vld [vmem:[%s4710_s0 + $0x179] sm:$0xff] }
  0x17   :  { %v163_v36 = vpack.c.bf16 %v115_v23, %v115_v23  ;;  %v164_v37 = vpack.c.bf16 %v116_v24, %v116_v24  ;;  %v1697_v40 = vpack.c.bf16 %v1649_v20, %v1649_v20  ;;  %v2616_v43 = vadd.f32 -127.5, %v615_v25  ;;  %v657_v20 = vld [vmem:[%s4710_s0 + $0x171] sm:$0xff]  ;;  %v24_v25 = vld [vmem:[%s4710_s0 + $0x40] sm:$0xff] }
  0x18   :  { %v165_v42 = vpack.c.bf16 %v117_v32, %v117_v32  ;;  %v710_v47 = vmul.f32 0.007843138, %v2615_v33  ;;  %v2996_v48 = vunpack.c.l.b16 %v799_v28  ;;  %v3002_v52 = vunpack.c.l.b16 %v800_v30  ;;  %v25_v28 = vld [vmem:[%s4710_s0 + $0x48] sm:$0xff] }
  0x19   :  { %v2992_v44 = vunpack.c.l.b16 %v163_v36  ;;  %v2994_v46 = vunpack.c.l.b16 %v164_v37  ;;  %v711_v51 = vmul.f32 0.007843138, %v2616_v43  ;;  %v712_v54 = vmul.f32 0.007843138, %v2617_v38 }
  0x1a   :  { %v2998_v50 = vunpack.c.l.b16 %v165_v42  ;;  %v758_v55 = vpack.c.bf16 %v710_v47, %v710_v47  ;;  %v3008_v56 = vunpack.c.l.b16 %v1697_v40  ;;  %v3026_v2 = vpack.c.b16 %v3002_v52, %v2996_v48 }
  0x1b   :  { %v358_v53 = vpack.c.b16 %v2994_v46, %v2992_v44  ;;  %v759_v58 = vpack.c.bf16 %v711_v51, %v711_v51  ;;  %v760_v3 = vpack.c.bf16 %v712_v54, %v712_v54  ;;  %v2620_v7 = vadd.f32 -127.5, %v619_v61  ;;  %v27_v61 = vld [vmem:[%s4710_s0 + $0x58] sm:$0xff] }
  0x1c   :  { %1034 = vrot.lane.b32.xlu1 %v2986_v35, %s2848_s13  ;;  %v3013_v60 = vunpack.c.l.b16 %v758_v55  ;;  %v1891_v6 = vpack.c.b16 %v2934_v45, %v3008_v56  ;;  %v2621_v8 = vadd.f32 -127.5, %v620_v62  ;;  %v2732_v10 = vadd.f32 -127.5, %v1556_v1  ;;  %v1558_v45 = vld [vmem:[%s4710_s0 + $0x52] sm:$0xff] }
  0x1d   :  { %439 = vrot.lane.b32.xlu0 %v2990_v39, %s2848_s13  ;;  %382 = vrot.lane.b32.xlu2 %v358_v53, %s2849_s14  ;;  %v3028_v4 = vunpack.c.l.b16 %v759_v58  ;;  %v2733_v11 = vadd.f32 -127.5, %v1557_v5  ;;  %v3039_v12 = vunpack.c.l.b16 %v760_v3  ;;  %v715_v15 = vmul.f32 0.007843138, %v2620_v7  ;;  %v26_v58 = vld [vmem:[%s4710_s0 + $0x50] sm:$0xff] }
  0x1e   :  { %v716_v16 = vmul.f32 0.007843138, %v2621_v8  ;;  %v1652_v22 = vmul.f32 0.007843138, %v2732_v10  ;;  %v359_v24 = vpack.c.b16 %v2974_v18, %v2998_v50  ;;  %v972_v32 = vpack.c.b16 %v2901_v26, %v2907_v31 }
  0x1f   :  { %v953_v9 = vpack.c.b16 %v3028_v4, %v3013_v60  ;;  %v1653_v23 = vmul.f32 0.007843138, %v2733_v11  ;;  %v954_v30 = vpack.c.b16 %v2966_v13, %v3039_v12  ;;  %v2734_v33 = vadd.f32 -127.5, %v1558_v45 }
  0x20   :  { %v2735_v36 = vadd.f32 -127.5, %v1559_v17  ;;  %v763_v37 = vpack.c.bf16 %v715_v15, %v715_v15  ;;  %v764_v38 = vpack.c.bf16 %v716_v16, %v716_v16  ;;  %v2658_v40 = vadd.f32 -127.5, %v657_v20 }
  0x21   :  { %v2659_v18 = vadd.f32 -127.5, %v658_v21  ;;  %v1700_v42 = vpack.c.bf16 %v1652_v22, %v1652_v22  ;;  %v1701_v43 = vpack.c.bf16 %v1653_v23, %v1653_v23  ;;  %v2566_v47 = vadd.f32 -127.5, %v24_v25 }
  0x22   :  { %v2567_v51 = vadd.f32 -127.5, %v25_v28  ;;  %v1654_v53 = vmul.f32 0.007843138, %v2734_v33  ;;  %v1655_v54 = vmul.f32 0.007843138, %v2735_v36  ;;  %v883_v13 = vunpack.c.l.b16 %v763_v37 }
  0x23   :  { %v3069_v55 = vunpack.c.l.b16 %v764_v38  ;;  %v753_v26 = vmul.f32 0.007843138, %v2658_v40  ;;  %v754_v31 = vmul.f32 0.007843138, %v2659_v18  ;;  %v1820_v62 = vunpack.c.l.b16 %v1700_v42  ;;  %v1560_v18 = vld [vmem:[%s4710_s0 + $0x62] sm:$0xff]  ;;  %v1561_v42 = vld [vmem:[%s4710_s0 + $0x6a] sm:$0xff] }
  0x24   :  { %1072 = vrot.lane.b32.xlu1 %v3026_v2, %s2848_s13  ;;  %v3078_v1 = vunpack.c.l.b16 %v1701_v43  ;;  %v120_v3 = vmul.f32 0.007843138, %v2566_v47  ;;  %v121_v5 = vmul.f32 0.007843138, %v2567_v51  ;;  %v1702_v7 = vpack.c.bf16 %v1654_v53, %v1654_v53  ;;  %v621_v43 = vld [vmem:[%s4710_s0 + $0x51] sm:$0xff]  ;;  %v622_v47 = vld [vmem:[%s4710_s0 + $0x59] sm:$0xff] }
  0x25   :  { %1916 = vrot.lane.b32.xlu0 %v1891_v6, %s2849_s14  ;;  %977 = vrot.lane.b32.xlu2 %v953_v9, %s2849_s14  ;;  %v973_v6 = vpack.c.b16 %v2996_v48, %v2903_v27  ;;  %v1703_v8 = vpack.c.bf16 %v1655_v54, %v1655_v54  ;;  %v2568_v9 = vadd.f32 -127.5, %v26_v58  ;;  %v2569_v10 = vadd.f32 -127.5, %v27_v61 }
  0x26   :  { %v3083_v11 = vpack.c.b16 %v3069_v55, %v883_v13  ;;  %v801_v15 = vpack.c.bf16 %v753_v26, %v753_v26  ;;  %v802_v16 = vpack.c.bf16 %v754_v31, %v754_v31  ;;  %v3086_v45 = vpack.c.b16 %v3078_v1, %v1820_v62 }
  0x27   :  { %v168_v17 = vpack.c.bf16 %v120_v3, %v120_v3  ;;  %v169_v20 = vpack.c.bf16 %v121_v5, %v121_v5  ;;  %v1822_v21 = vunpack.c.l.b16 %v1702_v7  ;;  %v3089_v22 = vunpack.c.l.b16 %v1703_v8 }
  0x28   :  { %v122_v27 = vmul.f32 0.007843138, %v2568_v9  ;;  %v123_v48 = vmul.f32 0.007843138, %v2569_v10  ;;  %v921_v23 = vunpack.c.l.b16 %v801_v15  ;;  %v2736_v53 = vadd.f32 -127.5, %v1560_v18  ;;  %v803_v9 = vld [vmem:[%s4710_s0 + $0x181] sm:$0xff] }
  0x29   :  { %v288_v25 = vunpack.c.l.b16 %v168_v17  ;;  %v3097_v28 = vunpack.c.l.b16 %v169_v20  ;;  %v955_v54 = vpack.c.b16 %v883_v13, %v2968_v14  ;;  %v2737_v26 = vadd.f32 -127.5, %v1561_v42  ;;  %v624_v14 = vld [vmem:[%s4710_s0 + $0x69] sm:$0xff] }
  0x2a   :  { %v171_v33 = vpack.c.bf16 %v123_v48, %v123_v48  ;;  %v1892_v31 = vpack.c.b16 %v1820_v62, %v2937_v49  ;;  %v2622_v58 = vadd.f32 -127.5, %v621_v43  ;;  %v2623_v61 = vadd.f32 -127.5, %v622_v47  ;;  %v28_v49 = vld [vmem:[%s4710_s0 + $0x60] sm:$0xff]  ;;  %v29_v13 = vld [vmem:[%s4710_s0 + $0x68] sm:$0xff] }
  0x2b   :  { %v3106_v37 = vpack.c.b16 %v3097_v28, %v288_v25  ;;  %v1656_v3 = vmul.f32 0.007843138, %v2736_v53  ;;  %v1657_v5 = vmul.f32 0.007843138, %v2737_v26  ;;  %v1893_v8 = vpack.c.b16 %v1822_v21, %v3078_v1  ;;  %v804_v10 = vld [vmem:[%s4710_s0 + $0x189] sm:$0xff] }
  0x2c   :  { %979 = vrot.lane.b32.xlu1 %v954_v30, %s2849_s14  ;;  %v3100_v30 = vpack.c.b16 %v3089_v22, %v1822_v21  ;;  %v3112_v40 = vunpack.c.l.b16 %v171_v33  ;;  %v717_v62 = vmul.f32 0.007843138, %v2622_v58  ;;  %v718_v7 = vmul.f32 0.007843138, %v2623_v61 }
  0x2d   :  { %384 = vrot.lane.b32.xlu0 %v359_v24, %s2849_s14  ;;  %1015 = vrot.lane.b32.xlu2 %v972_v32, %s2849_s14  ;;  %v3093_v24 = vunpack.c.l.b16 %v802_v16  ;;  %v170_v32 = vpack.c.bf16 %v122_v27, %v122_v27  ;;  %v974_v15 = vpack.c.b16 %v921_v23, %v3002_v52  ;;  %v1704_v16 = vpack.c.bf16 %v1656_v3, %v1656_v3 }
  0x2e   :  { %v2625_v20 = vadd.f32 -127.5, %v624_v14  ;;  %v1705_v27 = vpack.c.bf16 %v1657_v5, %v1657_v5  ;;  %v360_v48 = vpack.c.b16 %v288_v25, %v2976_v19  ;;  %v2571_v33 = vadd.f32 -127.5, %v29_v13  ;;  %v805_v19 = vld [vmem:[%s4710_s0 + $0x191] sm:$0xff]  ;;  %v815_v25 = vld [vmem:[%s4710_s0 + $0x199] sm:$0xff] }
  0x2f   :  { %v3103_v36 = vpack.c.b16 %v3093_v24, %v921_v23  ;;  %v3110_v38 = vunpack.c.l.b16 %v170_v32  ;;  %v2570_v32 = vadd.f32 -127.5, %v28_v49  ;;  %v765_v18 = vpack.c.bf16 %v717_v62, %v717_v62 }
  0x30   :  { %v766_v1 = vpack.c.bf16 %v718_v7, %v718_v7  ;;  %v2660_v21 = vadd.f32 -127.5, %v803_v9  ;;  %v2661_v42 = vadd.f32 -127.5, %v804_v10  ;;  %v720_v47 = vmul.f32 0.007843138, %v2625_v20 }
  0x31   :  { %4746 = vst [vmem:[#allocation6_spill] sm:$0xff] %v3103_v36  ;;  %v3132_v51 = vpack.c.b16 %v3112_v40, %v3110_v38  ;;  %v3163_v53 = vunpack.c.l.b16 %v1704_v16  ;;  %v3165_v52 = vunpack.c.l.b16 %v1705_v27  ;;  %v124_v23 = vmul.f32 0.007843138, %v2570_v32 }
  0x32   :  { %v3174_v26 = vunpack.c.l.b16 %v765_v18  ;;  %v809_v58 = vmul.f32 0.007843138, %v2660_v21  ;;  %v810_v61 = vmul.f32 0.007843138, %v2661_v42  ;;  %v361_v3 = vpack.c.b16 %v3110_v38, %v3097_v28  ;;  %v2670_v42 = vld [vmem:[%s4711_s1 + $0x8] sm:$0xf] }
  0x33   :  { %4747 = vst [vmem:[#allocation7_spill] sm:$0xff] %v3132_v51  ;;  %v2662_v14 = vadd.f32 -127.5, %v805_v19  ;;  %v2663_v49 = vadd.f32 -127.5, %v815_v25  ;;  %v3182_v13 = vpack.c.b16 %v3165_v52, %v3163_v53  ;;  %v172_v62 = vpack.c.bf16 %v124_v23, %v124_v23  ;;  %v626_v25 = vld [vmem:[%s4710_s0 + $0x79] sm:$0xff] }
  0x34   :  { %1017 = vrot.lane.b32.xlu1 %v973_v6, %s2849_s14  ;;  %v623_v6 = vld [vmem:[%s4710_s0 + $0x61] sm:$0xff]  ;;  %v812_v9 = vpack.c.bf16 %v809_v58, %v809_v58  ;;  %v813_v10 = vpack.c.bf16 %v810_v61, %v810_v61  ;;  %vm1259_vm0 = vcmask 1043456   ;;  %vm1260_vm1 = vcmask 1044480  }
  0x35   :  { %1036 = vrot.lane.b32.xlu0 %v3083_v11, %s2848_s13  ;;  %1973 = vrot.lane.b32.xlu2 %v3086_v45, %s2848_s13  ;;  %v2624_v17 = vadd.f32 -127.5, %v623_v6  ;;  %v768_v6 = vpack.c.bf16 %v720_v47, %v720_v47  ;;  %4748 = vst [vmem:[#allocation8_spill] sm:$0xff] %v3182_v13  ;;  %v811_v38 = vmul.f32 0.007843138, %v2662_v14  ;;  %v821_v16 = vmul.f32 0.007843138, %v2663_v49 }
  0x36   :  { %v3201_v27 = vunpack.c.l.b16 %v812_v9  ;;  %v625_v47 = vld [vmem:[%s4710_s0 + $0x71] sm:$0xff]  ;;  %v2850_v58 = vmov 65535   ;;  %v1563_v14 = vld [vmem:[%s4710_s0 + $0x7a] sm:$0xff]  ;;  %v1894_v9 = vpack.c.b16 %v3163_v53, %v3089_v22  ;;  %v1564_v22 = vld [vmem:[%s4710_s0 + $0x82] sm:$0xff]  ;;  %vm487_vm2 = vcmask 23552  }
  0x37   :  { %v719_v43 = vmul.f32 0.007843138, %v2624_v17  ;;  %v3191_v28 = vunpack.c.l.b16 %v768_v6  ;;  %v3195_v17 = vunpack.c.l.b16 %v172_v62  ;;  %v824_v18 = vpack.c.bf16 %v821_v16, %v821_v16  ;;  %v1562_v6 = vld [vmem:[%s4710_s0 + $0x72] sm:$0xff]  ;;  %v816_v53 = vld [vmem:[%s4710_s0 + $0x1a1] sm:$0xff] }
  0x38   :  { %v1261_v61 = vsel %vm1259_vm0, 4294967295, %v2850_v58  ;;  %v2627_v62 = vadd.f32 -127.5, %v626_v25  ;;  %v956_v16 = vpack.c.b16 %v3174_v26, %v3069_v55  ;;  %v1565_v55 = vld [vmem:[%s4710_s0 + $0x8a] sm:$0xff]  ;;  %v2740_v58 = vadd.f32 -127.5, %v1564_v22 }
  0x39   :  { %v767_v5 = vpack.c.bf16 %v719_v43, %v719_v43  ;;  %v2809_v43 = vld [vmem:[%s4711_s1 + $0x8] sm:$0x10]  ;;  %v1028_v19 = vunpack.c.l.b16 %v824_v18  ;;  %vm560_vm3 = vcmask 48128   ;;  %vm1210_vm4 = vcmask 72704  }
  0x3a   :  { %v2671_v23 = vor.u32 %v2809_v43, %v2670_v42  ;;  %v722_v18 = vmul.f32 0.007843138, %v2627_v62  ;;  %v2810_v42 = vld [vmem:[%s4711_s1 + $0x10] sm:$0x10]  ;;  %v2664_v62 = vadd.f32 -127.5, %v816_v53  ;;  %vm2507_vm6 = vcmask 519168  }
  0x3c   :  { %1975 = vrot.lane.b32.xlu1 %v3100_v30, %s2848_s13  ;;  %v770_v25 = vpack.c.bf16 %v722_v18, %v722_v18 }
  0x3d   :  { %1074 = vrot.lane.b32.xlu0 %v3103_v36, %s2848_s13  ;;  %441 = vrot.lane.b32.xlu2 %v3106_v37, %s2848_s13 }
  0x3e   :  { %v3302_v22 = vunpack.c.l.b16 %v770_v25 }
  0x44   :  { %443 = vrot.lane.b32.xlu1 %v3132_v51, %s2848_s13 }
  0x45   :  { %981 = vrot.lane.b32.xlu0 %v955_v54, %s2849_s14  ;;  %1918 = vrot.lane.b32.xlu2 %v1892_v31, %s2849_s14  ;;  %v125_v54 = vmul.f32 0.007843138, %v2571_v33  ;;  %v3176_v31 = vunpack.c.l.b16 %v766_v1  ;;  %v814_v33 = vpack.c.bf16 %v811_v38, %v811_v38  ;;  %v2739_v38 = vadd.f32 -127.5, %v1563_v14 }
  0x47   :  { %v173_v7 = vpack.c.bf16 %v125_v54, %v125_v54  ;;  %v3226_v54 = vunpack.c.l.b16 %v814_v33  ;;  %v1659_v43 = vmul.f32 0.007843138, %v2739_v38 }
  0x49   :  { %v3197_v20 = vunpack.c.l.b16 %v173_v7  ;;  %v1032_v7 = vpack.c.b16 %v1028_v19, %v3226_v54  ;;  %v817_v19 = vld [vmem:[%s4710_s0 + $0x1a9] sm:$0xff]  ;;  %v1707_v38 = vpack.c.bf16 %v1659_v43, %v1659_v43 }
  0x4b   :  { %v3211_v1 = vpack.c.b16 %v3197_v20, %v3195_v17 }
  0x4c   :  { %1920 = vrot.lane.b32.xlu1 %v1893_v8, %s2849_s14  ;;  %v3186_v8 = vpack.c.b16 %v3176_v31, %v3174_v26 }
  0x4d   :  { %1019 = vrot.lane.b32.xlu0 %v974_v15, %s2849_s14  ;;  %386 = vrot.lane.b32.xlu2 %v360_v48, %s2849_s14  ;;  %v3189_v15 = vunpack.c.l.b16 %v767_v5  ;;  %v3203_v48 = vunpack.c.l.b16 %v813_v10  ;;  %4751 = vst [vmem:[#allocation11_spill] sm:$0xff] %v3211_v1  ;;  %v2626_v5 = vadd.f32 -127.5, %v625_v47  ;;  %v2738_v10 = vadd.f32 -127.5, %v1562_v6  ;;  %v31_v6 = vld [vmem:[%s4710_s0 + $0x78] sm:$0xff] }
  0x4e   :  { %4749 = vst [vmem:[#allocation9_spill] sm:$0xff] %v3186_v8  ;;  %v2573_v18 = vadd.f32 -127.5, %v31_v6 }
  0x4f   :  { %v3207_v32 = vpack.c.b16 %v3191_v28, %v3189_v15  ;;  %v1031_v21 = vpack.c.b16 %v3203_v48, %v3201_v27  ;;  %v721_v33 = vmul.f32 0.007843138, %v2626_v5  ;;  %v1658_v26 = vmul.f32 0.007843138, %v2738_v10  ;;  %v30_v5 = vld [vmem:[%s4710_s0 + $0x70] sm:$0xff] }
  0x50   :  { %v127_v6 = vmul.f32 0.007843138, %v2573_v18 }
  0x51   :  { %4750 = vst [vmem:[#allocation10_spill] sm:$0xff] %v3207_v32  ;;  %v1706_v10 = vpack.c.bf16 %v1658_v26, %v1658_v26 }
  0x54   :  { %388 = vrot.lane.b32.xlu1 %v361_v3, %s2849_s14  ;;  %v3233_v3 = vsel %vm1260_vm1, %v1261_v61, 0  ;;  %v2741_v61 = vadd.f32 -127.5, %v1565_v55  ;;  %v1660_v55 = vmul.f32 0.007843138, %v2740_v58 }
  0x55   :  { %1977 = vrot.lane.b32.xlu0 %v3182_v13, %s2848_s13  ;;  %1038 = vrot.lane.b32.xlu2 %v3186_v8, %s2848_s13  ;;  %v1264_v49 = vand.u32 %v2671_v23, %v3233_v3  ;;  %v769_v23 = vpack.c.bf16 %v721_v33, %v721_v33  ;;  %v648_v33 = vld [vmem:[%s4710_s0 + $0x129] sm:$0xff] }
  0x56   :  { %v1661_v53 = vmul.f32 0.007843138, %v2741_v61  ;;  %v2649_v43 = vadd.f32 -127.5, %v648_v33 }
  0x57   :  { %2811 = vmatpush.bf16.msra.mxu3 %v1264_v49  ;;  %1273 = vmatpush.bf16.msra.mxu0 %v1264_v49  ;;  %v957_v49 = vpack.c.b16 %v3189_v15, %v3176_v31  ;;  %v2698_v31 = vld [vmem:[%s4711_s1] sm:$0xf] }
  0x58   :  { %v32_v15 = vld [vmem:[%s4710_s0 + $0x80] sm:$0xff] }
  0x59   :  { %v2574_v25 = vadd.f32 -127.5, %v32_v15 }
  0x5c   :  { %1040 = vrot.lane.b32.xlu1 %v3207_v32, %s2848_s13 }
  0x5d   :  { %445 = vrot.lane.b32.xlu0 %v3211_v1, %s2848_s13  ;;  %1076 = vrot.lane.b32.xlu2 %v1031_v21, %s2848_s13  ;;  %v2782_v21 = vld [vmem:[%s4711_s1 + $0x10] sm:$0xf] }
  0x5e   :  { %v2783_v47 = vor.u32 %v2810_v42, %v2782_v21  ;;  %v2808_v21 = vld [vmem:[%s4711_s1] sm:$0x10]  ;;  %v3300_v42 = vunpack.c.l.b16 %v769_v23  ;;  %v3311_v23 = vunpack.c.l.b16 %v1707_v38  ;;  %s2546_s1 = sshll.u32 %s4713_s3, 4  ;;  %s2547_s1 = int_to_ptr.hbm [resolvable:$true] %s2546_s1 }
  0x60   :  { %v3276_v14 = vand.u32 %v2783_v47, %v3233_v3  ;;  %v2699_v47 = vor.u32 %v2808_v21, %v2698_v31 }
  0x62   :  { %2205 = vmatpush.bf16.msra.mxu2 %v3276_v14  ;;  %v1433_v57 = vand.u32 %v2699_v47, %v3233_v3  ;;  %v128_v3 = vmul.f32 0.007843138, %v2574_v25  ;;  %v55_v47 = vld [vmem:[%s4710_s0 + $0x138] sm:$0xff] }
  0x64   :  { %1078 = vrot.lane.b32.xlu1 %v1032_v7, %s2848_s13  ;;  %v362_v7 = vpack.c.b16 %v3195_v17, %v3112_v40  ;;  %v975_v40 = vpack.c.b16 %v3201_v27, %v3093_v24  ;;  %v2572_v17 = vadd.f32 -127.5, %v30_v5  ;;  %v33_v24 = vld [vmem:[%s4710_s0 + $0x88] sm:$0xff]  ;;  %v822_v27 = vmul.f32 0.007843138, %v2664_v62  ;;  %1442 = vmatpush.bf16.msra.mxu1 %v1433_v57 }
  0x65   :  { %1922 = vrot.lane.b32.xlu0 %v1894_v9, %s2849_s14  ;;  %983 = vrot.lane.b32.xlu2 %v956_v16, %s2849_s14  ;;  %v2665_v9 = vadd.f32 -127.5, %v817_v19  ;;  %v647_v16 = vld [vmem:[%s4710_s0 + $0x121] sm:$0xff]  ;;  %v3309_v5 = vunpack.c.l.b16 %v1706_v10  ;;  %v2575_v58 = vadd.f32 -127.5, %v33_v24  ;;  %v976_v62 = vpack.c.b16 %v3226_v54, %v3203_v48  ;;  %v1549_v48 = vld [vmem:[%s4710_s0 + $0xa] sm:$0xff] }
  0x66   :  { %v2648_v26 = vadd.f32 -127.5, %v647_v16  ;;  %v126_v61 = vmul.f32 0.007843138, %v2572_v17  ;;  %v1709_v16 = vpack.c.bf16 %v1661_v53, %v1661_v53  ;;  %2812 = vmatpush.bf16.msrb.mxu3 %v1433_v57  ;;  %v3322_v10 = vpack.c.b16 %v3302_v22, %v3300_v42  ;;  %v649_v54 = vld [vmem:[%s4710_s0 + $0x131] sm:$0xff] }
  0x67   :  { %v823_v19 = vmul.f32 0.007843138, %v2665_v9  ;;  %v1548_v9 = vld [vmem:[%s4710_s0 + $0x2] sm:$0xff]  ;;  %v825_v38 = vpack.c.bf16 %v822_v27, %v822_v27  ;;  %v129_v57 = vmul.f32 0.007843138, %v2575_v58  ;;  %v175_v17 = vpack.c.bf16 %v127_v6, %v127_v6 }
  0x68   :  { %v743_v33 = vmul.f32 0.007843138, %v2648_v26  ;;  %4752 = vst [vmem:[#allocation12_spill] sm:$0xff] %v3322_v10  ;;  %v174_v15 = vpack.c.bf16 %v126_v61, %v126_v61  ;;  %v2724_v21 = vadd.f32 -127.5, %v1548_v9  ;;  %v3340_v53 = vunpack.c.l.b16 %v1709_v16 }
  0x69   :  { %v826_v31 = vpack.c.bf16 %v823_v19, %v823_v19  ;;  %v2725_v26 = vadd.f32 -127.5, %v1549_v48  ;;  %v56_v19 = vld [vmem:[%s4710_s0 + $0x140] sm:$0xff]  ;;  %v2650_v25 = vadd.f32 -127.5, %v649_v54  ;;  %v1029_v58 = vunpack.c.l.b16 %v825_v38 }
  0x6a   :  { %v791_v24 = vpack.c.bf16 %v743_v33, %v743_v33  ;;  %v176_v6 = vpack.c.bf16 %v128_v3, %v128_v3  ;;  %v177_v16 = vpack.c.bf16 %v129_v57, %v129_v57  ;;  %v3361_v33 = vunpack.c.l.b16 %v174_v15 }
  0x6b   :  { %v1030_v61 = vunpack.c.l.b16 %v826_v31  ;;  %v1644_v38 = vmul.f32 0.007843138, %v2724_v21  ;;  %v2597_v3 = vadd.f32 -127.5, %v55_v47  ;;  %v2598_v48 = vadd.f32 -127.5, %v56_v19 }
  0x6c   :  { %985 = vrot.lane.b32.xlu1 %v957_v49, %s2849_s14  ;;  %v1708_v49 = vpack.c.bf16 %v1660_v55, %v1660_v55  ;;  %v611_v55 = vld [vmem:[%s4710_s0 + $0x1] sm:$0xff]  ;;  %v1645_v57 = vmul.f32 0.007843138, %v2725_v26  ;;  %v3375_v13 = vunpack.c.l.b16 %v176_v6  ;;  %v3377_v21 = vunpack.c.l.b16 %v177_v16 }
  0x6d   :  { %390 = vrot.lane.b32.xlu0 %v362_v7, %s2849_s14  ;;  %1021 = vrot.lane.b32.xlu2 %v975_v40, %s2849_s14  ;;  %v744_v7 = vmul.f32 0.007843138, %v2649_v43  ;;  %v3332_v40 = vpack.c.b16 %v3311_v23, %v3309_v5  ;;  %v612_v43 = vld [vmem:[%s4710_s0 + $0x9] sm:$0xff]  ;;  %v2612_v9 = vadd.f32 -127.5, %v611_v55  ;;  %v1033_v15 = vpack.c.b16 %v1030_v61, %v1029_v58 }
  0x6e   :  { %v3334_v18 = vunpack.c.l.b16 %v1708_v49  ;;  %v16_v49 = vld [vmem:[%s4710_s0] sm:$0xff]  ;;  %v2613_v31 = vadd.f32 -127.5, %v612_v43  ;;  %v1692_v47 = vpack.c.bf16 %v1644_v38, %v1644_v38  ;;  %v151_v19 = vmul.f32 0.007843138, %v2597_v3 }
  0x6f   :  { %4753 = vst [vmem:[#allocation13_spill] sm:$0xff] %v3332_v40  ;;  %v792_v27 = vpack.c.bf16 %v744_v7, %v744_v7  ;;  %v3363_v7 = vunpack.c.l.b16 %v175_v17  ;;  %v2558_v1 = vadd.f32 -127.5, %v16_v49  ;;  %v707_v43 = vmul.f32 0.007843138, %v2612_v9  ;;  %v1566_v49 = vld [vmem:[%s4710_s0 + $0x92] sm:$0xff]  ;;  %v627_v9 = vld [vmem:[%s4710_s0 + $0x81] sm:$0xff] }
  0x70   :  { %v3367_v54 = vpack.c.b16 %v3340_v53, %v3334_v18  ;;  %v3383_v8 = vmul.f32 0.007843138, %v2650_v25  ;;  %v1693_v58 = vpack.c.bf16 %v1645_v57, %v1645_v57  ;;  %v1567_v25 = vld [vmem:[%s4710_s0 + $0x9a] sm:$0xff]  ;;  %v3400_v16 = vpack.c.b16 %v3377_v21, %v3375_v13 }
  0x71   :  { %v3381_v55 = vpack.c.b16 %v3363_v7, %v3361_v33  ;;  %v112_v61 = vmul.f32 0.007843138, %v2558_v1  ;;  %v755_v1 = vpack.c.bf16 %v707_v43, %v707_v43  ;;  %v2742_v43 = vadd.f32 -127.5, %v1566_v49 }
  0x72   :  { %4754 = vst [vmem:[#allocation14_spill] sm:$0xff] %v3367_v54 }
  0x73   :  { %4757 = vst [vmem:[#allocation17_spill] sm:$0xff] %v3381_v55  ;;  %v3424_v49 = vunpack.c.l.b16 %v755_v1  ;;  %v629_v1 = vld [vmem:[%s4710_s0 + $0x91] sm:$0xff] }
  0x74   :  { %1023 = vrot.lane.b32.xlu1 %v976_v62, %s2849_s14  ;;  %v17_v62 = vld [vmem:[%s4710_s0 + $0x8] sm:$0xff]  ;;  %4759 = vst [vmem:[#allocation19_spill] sm:$0xff] %v3400_v16 }
  0x75   :  { %1042 = vrot.lane.b32.xlu0 %v3322_v10, %s2848_s13  ;;  %1979 = vrot.lane.b32.xlu2 %v3332_v40, %s2848_s13  ;;  %v3369_v10 = vunpack.c.l.b16 %v791_v24  ;;  %v3371_v40 = vunpack.c.l.b16 %v792_v27  ;;  %v2559_v17 = vadd.f32 -127.5, %v17_v62  ;;  %v708_v24 = vmul.f32 0.007843138, %v2613_v31 }
  0x76   :  { %v152_v27 = vmul.f32 0.007843138, %v2598_v48  ;;  %v1812_v31 = vunpack.c.l.b16 %v1692_v47  ;;  %v199_v48 = vpack.c.bf16 %v151_v19, %v151_v19  ;;  %v160_v47 = vpack.c.bf16 %v112_v61, %v112_v61 }
  0x77   :  { %4755 = vst [vmem:[#allocation15_spill] sm:$0xff] %v3369_v10  ;;  %v3373_v32 = vpop.permute.xlu2 %382  ;;  %v3389_v26 = vpack.c.b16 %v3371_v40, %v3369_v10  ;;  %v113_v6 = vmul.f32 0.007843138, %v2559_v17  ;;  %v756_v3 = vpack.c.bf16 %v708_v24, %v708_v24  ;;  %v958_v19 = vpack.c.b16 %v3300_v42, %v3191_v28 }
  0x78   :  { %4756 = vst [vmem:[#allocation16_spill] sm:$0xff] %v3371_v40  ;;  %v200_v57 = vpack.c.bf16 %v152_v27, %v152_v27  ;;  %v1813_v40 = vunpack.c.l.b16 %v1693_v58  ;;  %v2628_v27 = vadd.f32 -127.5, %v627_v9  ;;  %v3428_v51 = vunpack.c.l.b16 %v199_v48 }
  0x79   :  { %4758 = vst [vmem:[#allocation18_spill] sm:$0xff] %v3389_v26  ;;  %v161_v58 = vpack.c.bf16 %v113_v6, %v113_v6  ;;  %v876_v61 = vunpack.c.l.b16 %v756_v3  ;;  %v1662_v6 = vmul.f32 0.007843138, %v2742_v43  ;;  %v280_v3 = vunpack.c.l.b16 %v160_v47 }
  0x7a   :  { %4760 = vst [vmem:[#allocation20_spill] sm:$0xff] %v3428_v51  ;;  %v1860_v42 = vpack.c.b16 %v1813_v40, %v1812_v31  ;;  %v35_v31 = vld [vmem:[%s4710_s0 + $0x98] sm:$0xff] }
  0x7b   :  { %v281_v48 = vunpack.c.l.b16 %v161_v58 }
  0x7c   :  { %1981 = vrot.lane.b32.xlu1 %v3367_v54, %s2848_s13  ;;  %v2743_v54 = vadd.f32 -127.5, %v1567_v25  ;;  %v1895_v25 = vpack.c.b16 %v3309_v5, %v3165_v52  ;;  %v793_v52 = vpack.c.bf16 %v3383_v8, %v3383_v8  ;;  %v34_v8 = vld [vmem:[%s4710_s0 + $0x90] sm:$0xff] }
  0x7d   :  { %1080 = vrot.lane.b32.xlu0 %v1033_v15, %s2848_s13  ;;  %447 = vrot.lane.b32.xlu2 %v3381_v55, %s2848_s13  ;;  %v628_v15 = vld [vmem:[%s4710_s0 + $0x89] sm:$0xff]  ;;  %v1550_v55 = vld [vmem:[%s4710_s0 + $0x12] sm:$0xff] }
  0x7e   :  { %v1071_v62 = vpop.permute.xlu1 %1070  ;;  %v2726_v28 = vadd.f32 -127.5, %v1550_v55  ;;  %v1663_v9 = vmul.f32 0.007843138, %v2743_v54  ;;  %v723_v55 = vmul.f32 0.007843138, %v2628_v27  ;;  %v1896_v54 = vpack.c.b16 %v3334_v18, %v3311_v23  ;;  %v58_v23 = vld [vmem:[%s4710_s0 + $0x150] sm:$0xff] }
  0x7f   :  { %v1014_v38 = vpop.permute.xlu0 %1013  ;;  %v3412_v10 = vpop.permute.xlu2 %977  ;;  %v59_v18 = vld [vmem:[%s4710_s0 + $0x158] sm:$0xff]  ;;  %v3469_v36 = vunpack.c.l.b16 %v793_v52 }
  0x80   :  { %v1138_v17 = vsel %vm487_vm2, %v3389_v26, %v1014_v38  ;;  %v18_v38 = vld [vmem:[%s4710_s0 + $0x10] sm:$0xff]  ;;  %v2629_v26 = vadd.f32 -127.5, %v628_v15  ;;  %v1646_v47 = vmul.f32 0.007843138, %v2726_v28  ;;  %v771_v28 = vpack.c.bf16 %v723_v55, %v723_v55 }
  0x81   :  { %v1191_v24 = vsel %vm560_vm3, %v1138_v17, %v1071_v62  ;;  %v3430_v62 = vunpack.c.l.b16 %v200_v57  ;;  %v2560_v5 = vadd.f32 -127.5, %v18_v38  ;;  %v923_v17 = vpack.c.b16 %v876_v61, %v3424_v49 }
  0x82   :  { %2690 = vmatmul.msk.bf16.vlgmr.msra.gmra.mxu3 %vm1210_vm4, %v1191_v24  ;;  %v724_v57 = vmul.f32 0.007843138, %v2629_v26  ;;  %v2630_v24 = vadd.f32 -127.5, %v629_v1  ;;  %v1710_v26 = vpack.c.bf16 %v1662_v6, %v1662_v6  ;;  %v1711_v38 = vpack.c.bf16 %v1663_v9, %v1663_v9 }
  0x83   :  { %4761 = vst [vmem:[#allocation21_spill] sm:$0xff] %v3430_v62  ;;  %2813 = vmatpush.bf16.msra.mxu3 %v3276_v14  ;;  %v630_v14 = vld [vmem:[%s4710_s0 + $0x99] sm:$0xff]  ;;  %v376_v43 = vpack.c.b16 %v3430_v62, %v3428_v51  ;;  %v2577_v61 = vadd.f32 -127.5, %v35_v31  ;;  %v363_v1 = vpack.c.b16 %v3361_v33, %v3197_v20  ;;  %v2600_v62 = vadd.f32 -127.5, %v58_v23 }
  0x84   :  { %449 = vrot.lane.b32.xlu1 %v3400_v16, %s2848_s13  ;;  %v2631_v58 = vadd.f32 -127.5, %v630_v14  ;;  %v772_v16 = vpack.c.bf16 %v724_v57, %v724_v57  ;;  %v2601_v51 = vadd.f32 -127.5, %v59_v18  ;;  %v725_v6 = vmul.f32 0.007843138, %v2630_v24 }
  0x85   :  { %987 = vrot.lane.b32.xlu0 %v958_v19, %s2849_s14  ;;  %1924 = vrot.lane.b32.xlu2 %v1895_v25, %s2849_s14  ;;  %v2576_v25 = vadd.f32 -127.5, %v34_v8  ;;  %v114_v9 = vmul.f32 0.007843138, %v2560_v5  ;;  %v364_v14 = vpack.c.b16 %v3375_v13, %v3363_v7  ;;  %v3474_v55 = vunpack.c.l.b16 %v1710_v26  ;;  %v60_v5 = vld [vmem:[%s4710_s0 + $0x160] sm:$0xff] }
  0x86   :  { %v1972_v40 = vpop.permute.xlu1 %1971  ;;  %v3477_v20 = vunpack.c.l.b16 %v1711_v38  ;;  %v131_v8 = vmul.f32 0.007843138, %v2577_v61  ;;  %v3479_v52 = vunpack.c.l.b16 %v771_v28  ;;  %v1084_v13 = vsel %vm487_vm2, %v923_v17, %v3412_v10 }
  0x87   :  { %v1915_v15 = vpop.permute.xlu0 %1914  ;;  %v3463_v27 = vpop.permute.xlu2 %1015  ;;  %v130_v33 = vmul.f32 0.007843138, %v2576_v25  ;;  %v155_v31 = vmul.f32 0.007843138, %v2601_v51  ;;  %v773_v23 = vpack.c.bf16 %v725_v6, %v725_v6  ;;  %v3507_v38 = vpack.c.b16 %v2905_v29, %v3469_v36 }
  0x88   :  { %v2021_v19 = vsel %vm487_vm2, %v1860_v42, %v1915_v15  ;;  %v328_v42 = vpack.c.b16 %v281_v48, %v280_v3  ;;  %v1694_v15 = vpack.c.bf16 %v1646_v47, %v1646_v47  ;;  %v61_v3 = vld [vmem:[%s4710_s0 + $0x168] sm:$0xff]  ;;  %v3490_v48 = vunpack.c.l.b16 %v772_v16  ;;  %v613_v16 = vld [vmem:[%s4710_s0 + $0x11] sm:$0xff] }
  0x89   :  { %v2092_v49 = vsel %vm560_vm3, %v2021_v19, %v1972_v40  ;;  %v726_v40 = vmul.f32 0.007843138, %v2631_v58  ;;  %v2603_v51 = vadd.f32 -127.5, %v61_v3  ;;  %v178_v19 = vpack.c.bf16 %v130_v33, %v130_v33 }
  0x8a   :  { %2784 = vmatmul.msk.bf16.vlgmr.msra.gmra.mxu2 %vm1210_vm4, %v2092_v49  ;;  %v490_v57 = vsel %vm487_vm2, %v328_v42, %v3373_v32  ;;  %v1814_v24 = vunpack.c.l.b16 %v1694_v15  ;;  %v3503_v32 = vpack.c.b16 %v3477_v20, %v3474_v55  ;;  %v179_v26 = vpack.c.bf16 %v131_v8, %v131_v8 }
  0x8b   :  { %v774_v17 = vpack.c.bf16 %v726_v40, %v726_v40  ;;  %v3511_v58 = vpack.c.b16 %v3490_v48, %v3479_v52  ;;  %v203_v25 = vpack.c.bf16 %v155_v31, %v155_v31  ;;  %v162_v61 = vpack.c.bf16 %v114_v9, %v114_v9 }
  0x8c   :  { %1926 = vrot.lane.b32.xlu1 %v1896_v54, %s2849_s14  ;;  %v154_v54 = vmul.f32 0.007843138, %v2600_v62  ;;  %v2602_v62 = vadd.f32 -127.5, %v60_v5  ;;  %v1861_v28 = vpack.c.b16 %v2949_v63, %v1814_v24  ;;  %v3515_v42 = vunpack.c.l.b16 %v773_v23 }
  0x8d   :  { %418 = vrot.lane.b32.xlu0 %v376_v43, %s2849_s14  ;;  %392 = vrot.lane.b32.xlu2 %v363_v1, %s2849_s14  ;;  %v2614_v1 = vadd.f32 -127.5, %v613_v16  ;;  %v3517_v15 = vunpack.c.l.b16 %v774_v17  ;;  %v157_v40 = vmul.f32 0.007843138, %v2603_v51  ;;  %v3521_v29 = vunpack.c.l.b16 %v178_v19  ;;  %v631_v19 = vld [vmem:[%s4710_s0 + $0xa1] sm:$0xff] }
  0x8e   :  { %v1035_v7 = vpop.permute.xlu1 %1034  ;;  %v202_v49 = vpack.c.bf16 %v154_v54, %v154_v54  ;;  %v156_v6 = vmul.f32 0.007843138, %v2602_v62  ;;  %v3523_v33 = vunpack.c.l.b16 %v179_v26  ;;  %v1141_v63 = vsel %vm487_vm2, %v3507_v38, %v3463_v27  ;;  %v57_v54 = vld [vmem:[%s4710_s0 + $0x148] sm:$0xff] }
  0x8f   :  { %v440_v43 = vpop.permute.xlu0 %439  ;;  %v1155_v47 = vsel %vm560_vm3, %v1084_v13, %v1035_v7  ;;  %v1974_v10 = vpop.permute.xlu2 %1973  ;;  %v3532_v8 = vunpack.c.l.b16 %v203_v25  ;;  %v282_v5 = vunpack.c.l.b16 %v162_v61  ;;  %v709_v7 = vmul.f32 0.007843138, %v2614_v1  ;;  %v1568_v25 = vld [vmem:[%s4710_s0 + $0xa2] sm:$0xff]  ;;  %v1569_v1 = vld [vmem:[%s4710_s0 + $0xaa] sm:$0xff] }
  0x90   :  { %2672 = vmatmul.msk.bf16.vlgmr.msra.gmra.mxu0 %vm1210_vm4, %v1155_v47  ;;  %v562_v18 = vsel %vm560_vm3, %v490_v57, %v440_v43  ;;  %v3542_v27 = vpack.c.b16 %v3517_v15, %v3515_v42  ;;  %v204_v43 = vpack.c.bf16 %v156_v6, %v156_v6  ;;  %v205_v47 = vpack.c.bf16 %v157_v40, %v157_v40 }
  0x91   :  { %2700 = vmatmul.msk.bf16.vlgmr.msra.gmra.mxu1 %vm1210_vm4, %v562_v18  ;;  %v3547_v23 = vpack.c.b16 %v3523_v33, %v3521_v29  ;;  %v2599_v17 = vadd.f32 -127.5, %v57_v54  ;;  %v757_v16 = vpack.c.bf16 %v709_v7, %v709_v7  ;;  %v329_v62 = vpack.c.b16 %v2992_v44, %v282_v5  ;;  %v632_v44 = vld [vmem:[%s4710_s0 + $0xa9] sm:$0xff] }
  0x92   :  { %v3557_v51 = vunpack.c.l.b16 %v204_v43  ;;  %v2744_v7 = vadd.f32 -127.5, %v1568_v25  ;;  %v959_v54 = vpack.c.b16 %v3479_v52, %v3302_v22  ;;  %v2745_v43 = vadd.f32 -127.5, %v1569_v1  ;;  %v37_v1 = vld [vmem:[%s4710_s0 + $0xa8] sm:$0xff] }
  0x93   :  { %v877_v61 = vunpack.c.l.b16 %v757_v16  ;;  %v63_v16 = vld [vmem:[%s4710_s0 + $0x178] sm:$0xff]  ;;  %v960_v25 = vpack.c.b16 %v3515_v42, %v3490_v48 }
  0x94   :  { %394 = vrot.lane.b32.xlu1 %v364_v14, %s2849_s14  ;;  %v3530_v14 = vunpack.c.l.b16 %v202_v49  ;;  %v153_v49 = vmul.f32 0.007843138, %v2599_v17  ;;  %v1664_v22 = vmul.f32 0.007843138, %v2744_v7  ;;  %v62_v17 = vld [vmem:[%s4710_s0 + $0x170] sm:$0xff]  ;;  %v2605_v42 = vadd.f32 -127.5, %v63_v16 }
  0x95   :  { %1983 = vrot.lane.b32.xlu0 %v3503_v32, %s2848_s13  ;;  %1044 = vrot.lane.b32.xlu2 %v3511_v58, %s2848_s13  ;;  %v2604_v48 = vadd.f32 -127.5, %v62_v17 }
  0x96   :  { %v1073_v9 = vpop.permute.xlu1 %1072  ;;  %v3552_v18 = vpack.c.b16 %v3532_v8, %v3530_v14 }
  0x97   :  { %v1917_v3 = vpop.permute.xlu0 %1916  ;;  %v1193_v13 = vsel %vm560_vm3, %v1141_v63, %v1073_v9  ;;  %v442_v57 = vpop.permute.xlu2 %441  ;;  %v2632_v9 = vadd.f32 -127.5, %v631_v19 }
  0x98   :  { %v2024_v31 = vsel %vm487_vm2, %v1861_v28, %v1917_v3  ;;  %2691 = vmatmul.msk.bf16.gmra.mxu3 %vm1210_vm4, %v1193_v13  ;;  %v1897_v3 = vpack.c.b16 %v3474_v55, %v3340_v53  ;;  %v2633_v13 = vadd.f32 -127.5, %v632_v44  ;;  %v1571_v55 = vld [vmem:[%s4710_s0 + $0xba] sm:$0xff] }
  0x99   :  { %v2094_v24 = vsel %vm560_vm3, %v2024_v31, %v1974_v10  ;;  %v3559_v10 = vunpack.c.l.b16 %v205_v47  ;;  %v201_v31 = vpack.c.bf16 %v153_v49, %v153_v49  ;;  %v924_v47 = vpack.c.b16 %v3013_v60, %v877_v61 }
  0x9a   :  { %2785 = vmatmul.msk.bf16.gmra.mxu2 %vm1210_vm4, %v2094_v24  ;;  %v727_v24 = vmul.f32 0.007843138, %v2632_v9  ;;  %v728_v53 = vmul.f32 0.007843138, %v2633_v13  ;;  %v1862_v49 = vpack.c.b16 %v3008_v56, %v2951_v0  ;;  %v2747_v0 = vadd.f32 -127.5, %v1571_v55  ;;  %v39_v55 = vld [vmem:[%s4710_s0 + $0xb8] sm:$0xff] }
  0x9b   :  { %v3580_v40 = vpack.c.b16 %v3559_v10, %v3557_v51  ;;  %v3599_v60 = vunpack.c.l.b16 %v201_v31  ;;  %v2579_v31 = vadd.f32 -127.5, %v37_v1 }
  0x9c   :  { %1046 = vrot.lane.b32.xlu1 %v3542_v27, %s2848_s13  ;;  %v776_v56 = vpack.c.bf16 %v728_v53, %v728_v53 }
  0x9d   :  { %451 = vrot.lane.b32.xlu0 %v3547_v23, %s2848_s13  ;;  %475 = vrot.lane.b32.xlu2 %v3552_v18, %s2848_s13  ;;  %v377_v13 = vpack.c.b16 %v3530_v14, %v3599_v60  ;;  %v38_v14 = vld [vmem:[%s4710_s0 + $0xb0] sm:$0xff] }
  0x9e   :  { %v980_v26 = vpop.permute.xlu1 %979 }
  0x9f   :  { %v385_v28 = vpop.permute.xlu0 %384  ;;  %v1919_v63 = vpop.permute.xlu2 %1918  ;;  %v1087_v19 = vsel %vm487_vm2, %v924_v47, %v980_v26  ;;  %v365_v26 = vpack.c.b16 %v3521_v29, %v3377_v21  ;;  %v1667_v21 = vmul.f32 0.007843138, %v2747_v0  ;;  %v3628_v29 = vunpack.c.l.b16 %v776_v56 }
  0xa0   :  { %v493_v6 = vsel %vm487_vm2, %v329_v62, %v385_v28  ;;  %v1665_v62 = vmul.f32 0.007843138, %v2745_v43  ;;  %v36_v28 = vld [vmem:[%s4710_s0 + $0xa0] sm:$0xff] }
  0xa1   :  { %v564_v5 = vsel %vm560_vm3, %v493_v6, %v442_v57  ;;  %v1570_v57 = vld [vmem:[%s4710_s0 + $0xb2] sm:$0xff] }
  0xa2   :  { %2701 = vmatmul.msk.bf16.gmra.mxu1 %vm1210_vm4, %v564_v5  ;;  %v2746_v61 = vadd.f32 -127.5, %v1570_v57  ;;  %v775_v5 = vpack.c.bf16 %v727_v24, %v727_v24  ;;  %v1713_v7 = vpack.c.bf16 %v1665_v62, %v1665_v62  ;;  %v158_v24 = vmul.f32 0.007843138, %v2604_v48 }
  0xa3   :  { %v159_v57 = vmul.f32 0.007843138, %v2605_v42  ;;  %v925_v42 = vpack.c.b16 %v3039_v12, %v3028_v4 }
  0xa4   :  { %477 = vrot.lane.b32.xlu1 %v3580_v40, %s2848_s13  ;;  %v1666_v43 = vmul.f32 0.007843138, %v2746_v61  ;;  %v3625_v47 = vunpack.c.l.b16 %v775_v5  ;;  %v3640_v16 = vunpack.c.l.b16 %v1713_v7  ;;  %v2581_v5 = vadd.f32 -127.5, %v39_v55 }
  0xa5   :  { %1928 = vrot.lane.b32.xlu0 %v1897_v3, %s2849_s14  ;;  %989 = vrot.lane.b32.xlu2 %v959_v54, %s2849_s14  ;;  %v1712_v3 = vpack.c.bf16 %v1664_v22, %v1664_v22  ;;  %v2578_v54 = vadd.f32 -127.5, %v36_v28  ;;  %v2027_v22 = vsel %vm487_vm2, %v1862_v49, %v1919_v63  ;;  %v378_v28 = vpack.c.b16 %v3557_v51, %v3532_v8 }
  0xa6   :  { %v1018_v52 = vpop.permute.xlu1 %1017  ;;  %v1714_v1 = vpack.c.bf16 %v1666_v43, %v1666_v43  ;;  %v1715_v49 = vpack.c.bf16 %v1667_v21, %v1667_v21  ;;  %v206_v0 = vpack.c.bf16 %v158_v24, %v158_v24  ;;  %v207_v56 = vpack.c.bf16 %v159_v57, %v159_v57 }
  0xa7   :  { %v1037_v44 = vpop.permute.xlu0 %1036  ;;  %v387_v9 = vpop.permute.xlu2 %386  ;;  %v3630_v53 = vunpack.c.l.b16 %v1712_v3  ;;  %v132_v62 = vmul.f32 0.007843138, %v2578_v54  ;;  %v135_v54 = vmul.f32 0.007843138, %v2581_v5  ;;  %v4762_v21 = vpack.c.b16 %v2998_v50, %v2994_v46 }
  0xa8   :  { %v1157_v6 = vsel %vm560_vm3, %v1087_v19, %v1037_v44  ;;  %v133_v19 = vmul.f32 0.007843138, %v2579_v31  ;;  %v1144_v44 = vsel %vm487_vm2, %v2926_v41, %v1018_v52  ;;  %v3652_v52 = vpack.c.b16 %v3628_v29, %v3625_v47 }
  0xa9   :  { %2673 = vmatmul.msk.bf16.gmra.mxu0 %vm1210_vm4, %v1157_v6  ;;  %v3656_v8 = vpack.c.b16 %v3640_v16, %v3630_v53  ;;  %v180_v51 = vpack.c.bf16 %v132_v62, %v132_v62  ;;  %v3661_v3 = vunpack.c.l.b16 %v1714_v1  ;;  %v3667_v31 = vunpack.c.l.b16 %v206_v0 }
  0xaa   :  { %v181_v48 = vpack.c.bf16 %v133_v19, %v133_v19  ;;  %v3669_v43 = vunpack.c.l.b16 %v207_v56  ;;  %v496_v4 = vsel %vm487_vm2, %v4762_v21, %v387_v9  ;;  %v1898_v21 = vpack.c.b16 %v3630_v53, %v3477_v20  ;;  %v40_v20 = vld [vmem:[%s4710_s0 + $0xc0] sm:$0xff]  ;;  %v41_v53 = vld [vmem:[%s4710_s0 + $0xc8] sm:$0xff] }
  0xab   :  { %v3677_v24 = vunpack.c.l.b16 %v180_v51 }
  0xac   :  { %991 = vrot.lane.b32.xlu1 %v960_v25, %s2849_s14  ;;  %v3679_v57 = vunpack.c.l.b16 %v181_v48  ;;  %v3691_v19 = vpack.c.b16 %v3669_v43, %v3667_v31 }
  0xad   :  { %396 = vrot.lane.b32.xlu0 %v365_v26, %s2849_s14  ;;  %420 = vrot.lane.b32.xlu2 %v377_v13, %s2849_s14  ;;  %v2580_v26 = vadd.f32 -127.5, %v38_v14  ;;  %v3663_v13 = vunpack.c.l.b16 %v1715_v49 }
  0xae   :  { %v1976_v17 = vpop.permute.xlu1 %1975 }
  0xaf   :  { %v1075_v25 = vpop.permute.xlu0 %1074  ;;  %v2096_v61 = vsel %vm560_vm3, %v2027_v22, %v1976_v17  ;;  %v1039_v63 = vpop.permute.xlu2 %1038  ;;  %v134_v7 = vmul.f32 0.007843138, %v2580_v26  ;;  %v3686_v46 = vpack.c.b16 %v3663_v13, %v3661_v3  ;;  %v183_v17 = vpack.c.bf16 %v135_v54, %v135_v54  ;;  %v634_v26 = vld [vmem:[%s4710_s0 + $0xb9] sm:$0xff] }
  0xb0   :  { %v1195_v6 = vsel %vm560_vm3, %v1144_v44, %v1075_v25  ;;  %2786 = vmatmul.msk.bf16.gmra.mxu2 %vm1210_vm4, %v2096_v61  ;;  %v3696_v44 = vpack.c.b16 %v3679_v57, %v3677_v24 }
  0xb1   :  { %2692 = vmatmul.msk.bf16.gmra.mxu3 %vm1210_vm4, %v1195_v6  ;;  %v182_v9 = vpack.c.bf16 %v134_v7, %v134_v7  ;;  %v3702_v61 = vunpack.c.l.b16 %v183_v17  ;;  %v1573_v6 = vld [vmem:[%s4710_s0 + $0xca] sm:$0xff]  ;;  %v1899_v17 = vpack.c.b16 %v3661_v3, %v3640_v16  ;;  %v2582_v3 = vadd.f32 -127.5, %v40_v20 }
  0xb2   :  { %v2749_v7 = vadd.f32 -127.5, %v1573_v6  ;;  %v209_v6 = vld [vmem:[%s4710_s0 + $0x188] sm:$0xff] }
  0xb3   :  { %v3700_v25 = vunpack.c.l.b16 %v182_v9 }
  0xb4   :  { %422 = vrot.lane.b32.xlu1 %v378_v28, %s2849_s14  ;;  %v1572_v28 = vld [vmem:[%s4710_s0 + $0xc2] sm:$0xff] }
  0xb5   :  { %1048 = vrot.lane.b32.xlu0 %v3652_v52, %s2848_s13  ;;  %1985 = vrot.lane.b32.xlu2 %v3656_v8, %s2848_s13  ;;  %v3724_v0 = vpack.c.b16 %v3702_v61, %v3700_v25  ;;  %v2748_v51 = vadd.f32 -127.5, %v1572_v28  ;;  %v208_v28 = vld [vmem:[%s4710_s0 + $0x180] sm:$0xff] }
  0xb6   :  { %v444_v12 = vpop.permute.xlu1 %443 }
  0xb7   :  { %v982_v14 = vpop.permute.xlu0 %981  ;;  %v566_v55 = vsel %vm560_vm3, %v496_v4, %v444_v12  ;;  %v1077_v50 = vpop.permute.xlu2 %1076  ;;  %v2635_v4 = vadd.f32 -127.5, %v634_v26  ;;  %v635_v12 = vld [vmem:[%s4710_s0 + $0xc1] sm:$0xff] }
  0xb8   :  { %v1090_v22 = vsel %vm487_vm2, %v925_v42, %v982_v14  ;;  %2702 = vmatmul.msk.bf16.gmra.mxu1 %vm1210_vm4, %v566_v55  ;;  %v961_v42 = vpack.c.b16 %v3625_v47, %v3517_v15  ;;  %v1669_v14 = vmul.f32 0.007843138, %v2749_v7  ;;  %v636_v15 = vld [vmem:[%s4710_s0 + $0xc9] sm:$0xff]  ;;  %v2606_v7 = vadd.f32 -127.5, %v208_v28 }
  0xb9   :  { %v1159_v62 = vsel %vm560_vm3, %v1090_v22, %v1039_v63  ;;  %v633_v63 = vld [vmem:[%s4710_s0 + $0xb1] sm:$0xff]  ;;  %v730_v22 = vmul.f32 0.007843138, %v2635_v4 }
  0xba   :  { %2674 = vmatmul.msk.bf16.gmra.mxu0 %vm1210_vm4, %v1159_v62  ;;  %v2634_v54 = vadd.f32 -127.5, %v633_v63  ;;  %v2636_v62 = vadd.f32 -127.5, %v635_v12  ;;  %v1717_v16 = vpack.c.bf16 %v1669_v14, %v1669_v14 }
  0xbc   :  { %1987 = vrot.lane.b32.xlu1 %v3686_v46, %s2848_s13  ;;  %v729_v47 = vmul.f32 0.007843138, %v2634_v54  ;;  %v2607_v54 = vadd.f32 -127.5, %v209_v6 }
  0xbd   :  { %479 = vrot.lane.b32.xlu0 %v3691_v19, %s2848_s13  ;;  %453 = vrot.lane.b32.xlu2 %v3696_v44, %s2848_s13 }
  0xbe   :  { %v1921_v1 = vpop.permute.xlu1 %1920 }
  0xbf   :  { %v1020_v49 = vpop.permute.xlu0 %1019  ;;  %v984_v56 = vpop.permute.xlu2 %983 }
  0xc0   :  { %v1147_v5 = vsel %vm487_vm2, %v2914_v34, %v1020_v49  ;;  %v1668_v34 = vmul.f32 0.007843138, %v2748_v51  ;;  %v379_v49 = vpack.c.b16 %v3667_v31, %v3559_v10  ;;  %v777_v51 = vpack.c.bf16 %v729_v47, %v729_v47 }
  0xc1   :  { %v1197_v48 = vsel %vm560_vm3, %v1147_v5, %v1077_v50  ;;  %v2030_v50 = vsel %vm487_vm2, %v2947_v59, %v1921_v1  ;;  %v2637_v1 = vadd.f32 -127.5, %v636_v15  ;;  %v2583_v5 = vadd.f32 -127.5, %v41_v53 }
  0xc2   :  { %2693 = vmatmul.msk.bf16.gmra.mxu3 %vm1210_vm4, %v1197_v48  ;;  %v1716_v59 = vpack.c.bf16 %v1668_v34, %v1668_v34  ;;  %v366_v48 = vpack.c.b16 %v3677_v24, %v3523_v33  ;;  %v3768_v31 = vunpack.c.l.b16 %v1717_v16  ;;  %v136_v34 = vmul.f32 0.007843138, %v2582_v3  ;;  %v210_v33 = vld [vmem:[%s4710_s0 + $0x190] sm:$0xff]  ;;  %v220_v24 = vld [vmem:[%s4710_s0 + $0x198] sm:$0xff] }
  0xc3   :  { %v732_v10 = vmul.f32 0.007843138, %v2637_v1  ;;  %v137_v12 = vmul.f32 0.007843138, %v2583_v5  ;;  %v3770_v14 = vunpack.c.l.b16 %v777_v51  ;;  %v1093_v15 = vsel %vm487_vm2, %v2986_v35, %v984_v56 }
  0xc4   :  { %455 = vrot.lane.b32.xlu1 %v3724_v0, %s2848_s13  ;;  %v3765_v4 = vunpack.c.l.b16 %v1716_v59  ;;  %v214_v53 = vmul.f32 0.007843138, %v2606_v7 }
  0xc5   :  { %993 = vrot.lane.b32.xlu0 %v961_v42, %s2849_s14  ;;  %1930 = vrot.lane.b32.xlu2 %v1898_v21, %s2849_s14  ;;  %v778_v42 = vpack.c.bf16 %v730_v22, %v730_v22  ;;  %v731_v21 = vmul.f32 0.007843138, %v2636_v62  ;;  %v215_v22 = vmul.f32 0.007843138, %v2607_v54  ;;  %v367_v62 = vpack.c.b16 %v3700_v25, %v3679_v57 }
  0xc6   :  { %v389_v55 = vpop.permute.xlu1 %388  ;;  %v780_v6 = vpack.c.bf16 %v732_v10, %v732_v10  ;;  %v185_v59 = vpack.c.bf16 %v137_v12, %v137_v12  ;;  %v217_v25 = vpack.c.bf16 %v214_v53, %v214_v53 }
  0xc7   :  { %v1978_v9 = vpop.permute.xlu0 %1977  ;;  %v1022_v26 = vpop.permute.xlu2 %1021  ;;  %v3781_v20 = vunpack.c.l.b16 %v778_v42  ;;  %v779_v28 = vpack.c.bf16 %v731_v21, %v731_v21  ;;  %v218_v1 = vpack.c.bf16 %v215_v22, %v215_v22 }
  0xc8   :  { %v2098_v63 = vsel %vm560_vm3, %v2030_v50, %v1978_v9  ;;  %v499_v50 = vsel %vm487_vm2, %v2990_v39, %v389_v55  ;;  %v3793_v39 = vpack.c.b16 %v3768_v31, %v3765_v4  ;;  %v184_v55 = vpack.c.bf16 %v136_v34, %v136_v34 }
  0xc9   :  { %2787 = vmatmul.msk.bf16.gmra.mxu2 %vm1210_vm4, %v2098_v63  ;;  %v2608_v63 = vadd.f32 -127.5, %v210_v33  ;;  %v3797_v57 = vpack.c.b16 %v3781_v20, %v3770_v14  ;;  %v3800_v16 = vunpack.c.l.b16 %v779_v28  ;;  %v3802_v3 = vunpack.c.l.b16 %v780_v6  ;;  %v1574_v28 = vld [vmem:[%s4710_s0 + $0xd2] sm:$0xff]  ;;  %v1575_v6 = vld [vmem:[%s4710_s0 + $0xda] sm:$0xff] }
  0xca   :  { %v3808_v42 = vunpack.c.l.b16 %v185_v59  ;;  %v1150_v7 = vsel %vm487_vm2, %v3026_v2, %v1022_v26  ;;  %v3814_v21 = vunpack.c.l.b16 %v217_v25  ;;  %v3816_v10 = vunpack.c.l.b16 %v218_v1 }
  0xcb   :  { %v216_v5 = vmul.f32 0.007843138, %v2608_v63  ;;  %v1900_v1 = vpack.c.b16 %v3765_v4, %v3663_v13 }
  0xcc   :  { %1932 = vrot.lane.b32.xlu1 %v1899_v17, %s2849_s14 }
  0xcd   :  { %424 = vrot.lane.b32.xlu0 %v379_v49, %s2849_s14  ;;  %398 = vrot.lane.b32.xlu2 %v366_v48, %s2849_s14  ;;  %v2609_v49 = vadd.f32 -127.5, %v220_v24  ;;  %v3806_v48 = vunpack.c.l.b16 %v184_v55  ;;  %v3824_v24 = vpack.c.b16 %v3802_v3, %v3800_v16  ;;  %v219_v26 = vpack.c.bf16 %v216_v5, %v216_v5 }
  0xce   :  { %v1041_v47 = vpop.permute.xlu1 %1040  ;;  %v2750_v5 = vadd.f32 -127.5, %v1574_v28 }
  0xcf   :  { %v446_v9 = vpop.permute.xlu0 %445  ;;  %v1161_v17 = vsel %vm560_vm3, %v1093_v15, %v1041_v47  ;;  %v1980_v56 = vpop.permute.xlu2 %1979  ;;  %v226_v51 = vmul.f32 0.007843138, %v2609_v49  ;;  %4763 = vst [vmem:[#allocation22_spill] sm:$0xff] %v3824_v24  ;;  %v3829_v53 = vpack.c.b16 %v3808_v42, %v3806_v48  ;;  %v3836_v22 = vunpack.c.l.b16 %v219_v26 }
  0xd0   :  { %2675 = vmatmul.msk.bf16.gmra.mxu0 %vm1210_vm4, %v1161_v17  ;;  %v568_v35 = vsel %vm560_vm3, %v499_v50, %v446_v9  ;;  %v637_v9 = vld [vmem:[%s4710_s0 + $0xd1] sm:$0xff]  ;;  %v638_v17 = vld [vmem:[%s4710_s0 + $0xd9] sm:$0xff] }
  0xd1   :  { %2703 = vmatmul.msk.bf16.gmra.mxu1 %vm1210_vm4, %v568_v35  ;;  %v229_v15 = vpack.c.bf16 %v226_v51, %v226_v51  ;;  %4764 = vst [vmem:[#allocation23_spill] sm:$0xff] %v3829_v53  ;;  %v2639_v59 = vadd.f32 -127.5, %v638_v17  ;;  %v962_v51 = vpack.c.b16 %v3770_v14, %v3628_v29  ;;  %v221_v29 = vld [vmem:[%s4710_s0 + $0x1a0] sm:$0xff]  ;;  %v222_v14 = vld [vmem:[%s4710_s0 + $0x1a8] sm:$0xff]  ;;  %v43_v17 = vld [vmem:[%s4710_s0 + $0xd8] sm:$0xff] }
  0xd3   :  { %v433_v50 = vunpack.c.l.b16 %v229_v15 }
  0xd4   :  { %400 = vrot.lane.b32.xlu1 %v367_v62, %s2849_s14 }
  0xd5   :  { %1989 = vrot.lane.b32.xlu0 %v3793_v39, %s2848_s13  ;;  %1050 = vrot.lane.b32.xlu2 %v3797_v57, %s2848_s13  ;;  %v437_v49 = vpack.c.b16 %v433_v50, %v3836_v22 }
  0xd6   :  { %v1079_v54 = vpop.permute.xlu1 %1078 }
  0xd7   :  { %v1923_v34 = vpop.permute.xlu0 %1922  ;;  %v1199_v12 = vsel %vm560_vm3, %v1150_v7, %v1079_v54  ;;  %v448_v2 = vpop.permute.xlu2 %447  ;;  %v1576_v7 = vld [vmem:[%s4710_s0 + $0xe2] sm:$0xff]  ;;  %v2751_v54 = vadd.f32 -127.5, %v1575_v6  ;;  %v2610_v6 = vadd.f32 -127.5, %v221_v29 }
  0xd8   :  { %v2033_v33 = vsel %vm487_vm2, %v3086_v45, %v1923_v34  ;;  %2694 = vmatmul.msk.bf16.gmra.mxu3 %vm1210_vm4, %v1199_v12  ;;  %v436_v45 = vpack.c.b16 %v3816_v10, %v3814_v21  ;;  %v734_v12 = vmul.f32 0.007843138, %v2639_v59  ;;  %v2752_v13 = vadd.f32 -127.5, %v1576_v7  ;;  %v53_v59 = vld [vmem:[%s4710_s0 + $0x128] sm:$0xff] }
  0xd9   :  { %v2100_v47 = vsel %vm560_vm3, %v2033_v33, %v1980_v56  ;;  %v2638_v56 = vadd.f32 -127.5, %v637_v9  ;;  %v1670_v33 = vmul.f32 0.007843138, %v2750_v5  ;;  %v1671_v26 = vmul.f32 0.007843138, %v2751_v54  ;;  %v42_v9 = vld [vmem:[%s4710_s0 + $0xd0] sm:$0xff] }
  0xda   :  { %2788 = vmatmul.msk.bf16.gmra.mxu2 %vm1210_vm4, %v2100_v47  ;;  %v2584_v5 = vadd.f32 -127.5, %v42_v9  ;;  %v2595_v54 = vadd.f32 -127.5, %v53_v59 }
  0xdb   :  { %v733_v34 = vmul.f32 0.007843138, %v2638_v56  ;;  %v782_v56 = vpack.c.bf16 %v734_v12, %v734_v12 }
  0xdc   :  { %1052 = vrot.lane.b32.xlu1 %v3824_v24, %s2848_s13 }
  0xdd   :  { %457 = vrot.lane.b32.xlu0 %v3829_v53, %s2848_s13  ;;  %481 = vrot.lane.b32.xlu2 %v436_v45, %s2848_s13  ;;  %v963_v45 = vpack.c.b16 %v3800_v16, %v3781_v20  ;;  %v781_v50 = vpack.c.bf16 %v733_v34, %v733_v34  ;;  %v368_v20 = vpack.c.b16 %v3806_v48, %v3702_v61  ;;  %v1672_v16 = vmul.f32 0.007843138, %v2752_v13  ;;  %v44_v34 = vld [vmem:[%s4710_s0 + $0xe0] sm:$0xff] }
  0xde   :  { %v986_v62 = vpop.permute.xlu1 %985  ;;  %v3904_v61 = vunpack.c.l.b16 %v782_v56  ;;  %v227_v48 = vmul.f32 0.007843138, %v2610_v6  ;;  %v149_v6 = vmul.f32 0.007843138, %v2595_v54 }
  0xdf   :  { %v391_v35 = vpop.permute.xlu0 %390  ;;  %v1925_v55 = vpop.permute.xlu2 %1924  ;;  %v1096_v15 = vsel %vm487_vm2, %v3083_v11, %v986_v62  ;;  %v2611_v11 = vadd.f32 -127.5, %v222_v14  ;;  %v3901_v7 = vunpack.c.l.b16 %v781_v50  ;;  %v1720_v12 = vpack.c.bf16 %v1672_v16, %v1672_v16 }
  0xe0   :  { %v502_v63 = vsel %vm487_vm2, %v3106_v37, %v391_v35  ;;  %v1577_v37 = vld [vmem:[%s4710_s0 + $0xea] sm:$0xff]  ;;  %v2036_v29 = vsel %vm487_vm2, %v3100_v30, %v1925_v55  ;;  %v230_v16 = vpack.c.bf16 %v227_v48, %v227_v48  ;;  %v1588_v48 = vld [vmem:[%s4710_s0 + $0x142] sm:$0xff] }
  0xe1   :  { %v570_v25 = vsel %vm560_vm3, %v502_v63, %v448_v2  ;;  %v2753_v4 = vadd.f32 -127.5, %v1577_v37  ;;  %v1718_v63 = vpack.c.bf16 %v1670_v33, %v1670_v33 }
  0xe2   :  { %2704 = vmatmul.msk.bf16.gmra.mxu1 %vm1210_vm4, %v570_v25  ;;  %v380_v25 = vpack.c.b16 %v3814_v21, %v3669_v43  ;;  %v228_v21 = vmul.f32 0.007843138, %v2611_v11 }
  0xe3   :  { %v1673_v62 = vmul.f32 0.007843138, %v2753_v4  ;;  %v3910_v13 = vunpack.c.l.b16 %v1718_v63  ;;  %v45_v4 = vld [vmem:[%s4710_s0 + $0xe8] sm:$0xff] }
  0xe4   :  { %483 = vrot.lane.b32.xlu1 %v437_v49, %s2848_s13  ;;  %v52_v49 = vld [vmem:[%s4710_s0 + $0x120] sm:$0xff]  ;;  %v2587_v11 = vadd.f32 -127.5, %v45_v4 }
  0xe5   :  { %1934 = vrot.lane.b32.xlu0 %v1900_v1, %s2849_s14  ;;  %995 = vrot.lane.b32.xlu2 %v962_v51, %s2849_s14  ;;  %v1719_v1 = vpack.c.bf16 %v1671_v26, %v1671_v26  ;;  %v2585_v51 = vadd.f32 -127.5, %v43_v17  ;;  %v2594_v37 = vadd.f32 -127.5, %v52_v49  ;;  %v1721_v43 = vpack.c.bf16 %v1673_v62, %v1673_v62 }
  0xe6   :  { %v1024_v2 = vpop.permute.xlu1 %1023  ;;  %v138_v26 = vmul.f32 0.007843138, %v2584_v5  ;;  %v381_v17 = vpack.c.b16 %v3836_v22, %v3816_v10  ;;  %v231_v62 = vpack.c.bf16 %v228_v21, %v228_v21  ;;  %v141_v5 = vmul.f32 0.007843138, %v2587_v11 }
  0xe7   :  { %v1043_v47 = vpop.permute.xlu0 %1042  ;;  %v3888_v35 = vpop.permute.xlu2 %392  ;;  %v3918_v33 = vunpack.c.l.b16 %v1719_v1  ;;  %v148_v55 = vmul.f32 0.007843138, %v2594_v37  ;;  %v3934_v10 = vunpack.c.l.b16 %v1721_v43  ;;  %v197_v1 = vpack.c.bf16 %v149_v6, %v149_v6 }
  0xe8   :  { %v1163_v28 = vsel %vm560_vm3, %v1096_v15, %v1043_v47  ;;  %v139_v15 = vmul.f32 0.007843138, %v2585_v51  ;;  %v4765_v47 = vld [vmem:[#allocation6_spill] sm:$0xff]  ;;  %v186_v63 = vpack.c.bf16 %v138_v26, %v138_v26  ;;  %v1587_v51 = vld [vmem:[%s4710_s0 + $0x13a] sm:$0xff]  ;;  %v434_v37 = vunpack.c.l.b16 %v230_v16 }
  0xe9   :  { %2676 = vmatmul.msk.bf16.gmra.mxu0 %vm1210_vm4, %v1163_v28  ;;  %v2586_v28 = vadd.f32 -127.5, %v44_v34  ;;  %v3938_v22 = vpack.c.b16 %v3918_v33, %v3910_v13  ;;  %v435_v54 = vunpack.c.l.b16 %v231_v62  ;;  %v4768_v34 = vld [vmem:[#allocation7_spill] sm:$0xff] }
  0xea   :  { %v187_v49 = vpack.c.bf16 %v139_v15, %v139_v15  ;;  %v3958_v4 = vunpack.c.l.b16 %v186_v63 }
  0xeb   :  { %4767 = vst [vmem:[#allocation24_spill] sm:$0xff] %v3938_v22  ;;  %v140_v59 = vmul.f32 0.007843138, %v2586_v28  ;;  %v438_v6 = vpack.c.b16 %v435_v54, %v434_v37 }
  0xec   :  { %997 = vrot.lane.b32.xlu1 %v963_v45, %s2849_s14  ;;  %v1153_v45 = vsel %vm487_vm2, %v4765_v47, %v1024_v2  ;;  %v3930_v2 = vpack.c.b16 %v3904_v61, %v3901_v7  ;;  %v2763_v47 = vadd.f32 -127.5, %v1587_v51  ;;  %v639_v51 = vld [vmem:[%s4710_s0 + $0xe1] sm:$0xff] }
  0xed   :  { %402 = vrot.lane.b32.xlu0 %v368_v20, %s2849_s14  ;;  %426 = vrot.lane.b32.xlu2 %v380_v25, %s2849_s14  ;;  %v3932_v20 = vunpack.c.l.b16 %v1720_v12  ;;  %v196_v25 = vpack.c.bf16 %v148_v55, %v148_v55  ;;  %v505_v12 = vsel %vm487_vm2, %v4768_v34, %v3888_v35  ;;  %v188_v15 = vpack.c.bf16 %v140_v59, %v140_v59 }
  0xee   :  { %v1982_v14 = vpop.permute.xlu1 %1981  ;;  %4766 = vst [vmem:[#allocation6_spill] sm:$0xff] %v3930_v2  ;;  %v1683_v16 = vmul.f32 0.007843138, %v2763_v47 }
  0xef   :  { %v1081_v50 = vpop.permute.xlu0 %1080  ;;  %v2102_v9 = vsel %vm560_vm3, %v2036_v29, %v1982_v14  ;;  %v1045_v30 = vpop.permute.xlu2 %1044  ;;  %v3954_v21 = vpack.c.b16 %v3934_v10, %v3932_v20  ;;  %v3960_v29 = vunpack.c.l.b16 %v187_v49  ;;  %v3982_v49 = vunpack.c.l.b16 %v188_v15 }
  0xf0   :  { %v1201_v56 = vsel %vm560_vm3, %v1153_v45, %v1081_v50  ;;  %2789 = vmatmul.msk.bf16.gmra.mxu2 %vm1210_vm4, %v2102_v9  ;;  %v2764_v45 = vadd.f32 -127.5, %v1588_v48  ;;  %v4770_v50 = vld [vmem:[#allocation9_spill] sm:$0xff]  ;;  %v3966_v9 = vunpack.c.l.b16 %v196_v25  ;;  %v1590_v25 = vld [vmem:[%s4710_s0 + $0x152] sm:$0xff]  ;;  %v1731_v37 = vpack.c.bf16 %v1683_v16, %v1683_v16 }
  0xf1   :  { %2695 = vmatmul.msk.bf16.gmra.mxu3 %vm1210_vm4, %v1201_v56  ;;  %4769 = vst [vmem:[#allocation7_spill] sm:$0xff] %v3954_v21  ;;  %v189_v56 = vpack.c.bf16 %v141_v5, %v141_v5  ;;  %v3974_v11 = vpack.c.b16 %v3960_v29, %v3958_v4 }
  0xf2   :  { %v1684_v62 = vmul.f32 0.007843138, %v2764_v45  ;;  %v4021_v16 = vunpack.c.l.b16 %v1731_v37  ;;  %v4773_v37 = vld [vmem:[#allocation8_spill] sm:$0xff] }
  0xf3   :  { %4771 = vst [vmem:[#allocation9_spill] sm:$0xff] %v3974_v11  ;;  %v3984_v59 = vunpack.c.l.b16 %v189_v56  ;;  %v1901_v56 = vpack.c.b16 %v3910_v13, %v3768_v31  ;;  %v642_v31 = vld [vmem:[%s4710_s0 + $0xf9] sm:$0xff]  ;;  %v46_v13 = vld [vmem:[%s4710_s0 + $0xf0] sm:$0xff] }
  0xf4   :  { %428 = vrot.lane.b32.xlu1 %v381_v17, %s2849_s14  ;;  %v3968_v17 = vunpack.c.l.b16 %v197_v1  ;;  %v1591_v1 = vld [vmem:[%s4710_s0 + $0x15a] sm:$0xff]  ;;  %v1732_v54 = vpack.c.bf16 %v1684_v62, %v1684_v62 }
  0xf5   :  { %1054 = vrot.lane.b32.xlu0 %v3930_v2, %s2848_s13  ;;  %1991 = vrot.lane.b32.xlu2 %v3938_v22, %s2848_s13  ;;  %v2767_v47 = vadd.f32 -127.5, %v1591_v1 }
  0xf6   :  { %v450_v43 = vpop.permute.xlu1 %449  ;;  %v3980_v63 = vpack.c.b16 %v3968_v17, %v3966_v9  ;;  %v4023_v62 = vunpack.c.l.b16 %v1732_v54 }
  0xf7   :  { %v988_v14 = vpop.permute.xlu0 %987  ;;  %v572_v26 = vsel %vm560_vm3, %v505_v12, %v450_v43  ;;  %v476_v28 = vpop.permute.xlu2 %475  ;;  %v2766_v12 = vadd.f32 -127.5, %v1590_v25  ;;  %v640_v43 = vld [vmem:[%s4710_s0 + $0xe9] sm:$0xff] }
  0xf8   :  { %v1099_v35 = vsel %vm487_vm2, %v4770_v50, %v988_v14  ;;  %2705 = vmatmul.msk.bf16.gmra.mxu1 %vm1210_vm4, %v572_v26  ;;  %v4008_v26 = vpack.c.b16 %v3984_v59, %v3982_v49  ;;  %v964_v50 = vpack.c.b16 %v3901_v7, %v3802_v3  ;;  %v1687_v3 = vmul.f32 0.007843138, %v2767_v47  ;;  %v1578_v47 = vld [vmem:[%s4710_s0 + $0xf2] sm:$0xff] }
  0xf9   :  { %v1165_v55 = vsel %vm560_vm3, %v1099_v35, %v1045_v30  ;;  %v54_v30 = vld [vmem:[%s4710_s0 + $0x130] sm:$0xff]  ;;  %v2640_v35 = vadd.f32 -127.5, %v639_v51  ;;  %v47_v51 = vld [vmem:[%s4710_s0 + $0xf8] sm:$0xff] }
  0xfa   :  { %2677 = vmatmul.msk.bf16.gmra.mxu0 %vm1210_vm4, %v1165_v55  ;;  %v2596_v34 = vadd.f32 -127.5, %v54_v30  ;;  %4772 = vst [vmem:[#allocation25_spill] sm:$0xff] %v4008_v26  ;;  %v641_v55 = vld [vmem:[%s4710_s0 + $0xf1] sm:$0xff] }
  0xfb   :  { %v2642_v7 = vadd.f32 -127.5, %v641_v55  ;;  %v735_v25 = vmul.f32 0.007843138, %v2640_v35  ;;  %v2588_v55 = vadd.f32 -127.5, %v46_v13  ;;  %v370_v13 = vpack.c.b16 %v3982_v49, %v3960_v29  ;;  %v4777_v49 = vld [vmem:[#allocation10_spill] sm:$0xff] }
  0xfc   :  { %1993 = vrot.lane.b32.xlu1 %v3954_v21, %s2848_s13  ;;  %v150_v30 = vmul.f32 0.007843138, %v2596_v34  ;;  %v369_v21 = vpack.c.b16 %v3958_v4, %v3808_v42  ;;  %v1581_v42 = vld [vmem:[%s4710_s0 + $0x10a] sm:$0xff] }
  0xfd   :  { %485 = vrot.lane.b32.xlu0 %v438_v6, %s2848_s13  ;;  %459 = vrot.lane.b32.xlu2 %v3974_v11, %s2848_s13  ;;  %v2641_v6 = vadd.f32 -127.5, %v640_v43 }
  0xfe   :  { %v1927_v5 = vpop.permute.xlu1 %1926  ;;  %v198_v43 = vpack.c.bf16 %v150_v30, %v150_v30  ;;  %v1902_v30 = vpack.c.b16 %v3932_v20, %v3918_v33 }
  0xff   :  { %v419_v48 = vpop.permute.xlu0 %418  ;;  %v4010_v15 = vpop.permute.xlu2 %989  ;;  %v2039_v54 = vsel %vm487_vm2, %v4773_v37, %v1927_v5  ;;  %v2643_v5 = vadd.f32 -127.5, %v642_v31  ;;  %v2589_v37 = vadd.f32 -127.5, %v47_v51 }
 0x100   :  { %v544_v14 = vsel %vm487_vm2, %v3980_v63, %v419_v48  ;;  %v736_v48 = vmul.f32 0.007843138, %v2641_v6  ;;  %v4058_v11 = vunpack.c.l.b16 %v198_v43 }
 0x101   :  { %v598_v45 = vsel %vm560_vm3, %v544_v14, %v476_v28  ;;  %v1686_v28 = vmul.f32 0.007843138, %v2766_v12  ;;  %v1908_v12 = vpack.c.b16 %v4023_v62, %v4021_v16  ;;  %v738_v20 = vmul.f32 0.007843138, %v2643_v5  ;;  %v4776_v5 = vld [vmem:[#allocation11_spill] sm:$0xff] }
 0x102   :  { %2718 = vmatmul.msk.bf16.vlgmr.msrb.gmra.mxu3 %vm1210_vm4, %v598_v45  ;;  %v1579_v45 = vld [vmem:[%s4710_s0 + $0xfa] sm:$0xff]  ;;  %v784_v2 = vpack.c.bf16 %v736_v48, %v736_v48  ;;  %4775 = vst [vmem:[#allocation26_spill] sm:$0xff] %v4058_v11  ;;  %v143_v51 = vmul.f32 0.007843138, %v2589_v37 }
 0x103   :  { %v1734_v14 = vpack.c.bf16 %v1686_v28, %v1686_v28  ;;  %v737_v28 = vmul.f32 0.007843138, %v2642_v7  ;;  %v142_v7 = vmul.f32 0.007843138, %v2588_v55 }
 0x104   :  { %461 = vrot.lane.b32.xlu1 %v4008_v26, %s2848_s13  ;;  %v783_v26 = vpack.c.bf16 %v735_v25, %v735_v25 }
 0x105   :  { %999 = vrot.lane.b32.xlu0 %v964_v50, %s2849_s14  ;;  %1936 = vrot.lane.b32.xlu2 %v1901_v56, %s2849_s14  ;;  %v1735_v56 = vpack.c.bf16 %v1687_v3, %v1687_v3  ;;  %v4051_v6 = vpop.f32.mrf.mxu3  ;;  %v1580_v3 = vld [vmem:[%s4710_s0 + $0x102] sm:$0xff]  ;;  %v4064_v31 = vunpack.c.l.b16 %v1734_v14  ;;  %v785_v25 = vpack.c.bf16 %v737_v28, %v737_v28  ;;  %v4077_v14 = vunpack.c.l.b16 %v784_v2  ;;  %v4090_v2 = vld [vmem:[%s4712_s2] ss:$0 sm:$0xff] }
 0x106   :  { %v395_v1 = vpop.permute.xlu1 %394  ;;  %4774 = vst [vmem:[#allocation8_spill] sm:$0xff] %v4051_v6  ;;  %v4074_v48 = vunpack.c.l.b16 %v783_v26  ;;  %v1102_v26 = vsel %vm487_vm2, %v4777_v49, %v4010_v15  ;;  %v2757_v28 = vadd.f32 -127.5, %v1581_v42 }
 0x107   :  { %v1984_v34 = vpop.permute.xlu0 %1983  ;;  %v4049_v35 = vpop.permute.xlu2 %420  ;;  %v4066_v33 = vunpack.c.l.b16 %v1735_v56  ;;  %v508_v29 = vsel %vm487_vm2, %v4776_v5, %v395_v1  ;;  %v190_v1 = vpack.c.bf16 %v142_v7, %v142_v7 }
 0x108   :  { %v2104_v50 = vsel %vm560_vm3, %v2039_v54, %v1984_v34  ;;  %v2754_v54 = vadd.f32 -127.5, %v1578_v47  ;;  %v2755_v34 = vadd.f32 -127.5, %v1579_v45  ;;  %v2756_v47 = vadd.f32 -127.5, %v1580_v3  ;;  %v1589_v45 = vld [vmem:[%s4710_s0 + $0x14a] sm:$0xff] }
 0x109   :  { %2790 = vmatmul.msk.bf16.gmra.mxu2 %vm1210_vm4, %v2104_v50  ;;  %v786_v3 = vpack.c.bf16 %v738_v20, %v738_v20  ;;  %v4098_v15 = vpack.c.b16 %v4066_v33, %v4064_v31  ;;  %v4102_v42 = vpack.c.b16 %v4077_v14, %v4074_v48 }
 0x10a   :  { %v1674_v50 = vmul.f32 0.007843138, %v2754_v54  ;;  %v1675_v56 = vmul.f32 0.007843138, %v2755_v34  ;;  %v1676_v49 = vmul.f32 0.007843138, %v2756_v47 }
 0x10b   :  { %4778 = vst [vmem:[#allocation11_spill] sm:$0xff] %v4098_v15 }
 0x10c   :  { %1950 = vrot.lane.b32.xlu1 %v1908_v12, %s2849_s14  ;;  %4779 = vst [vmem:[#allocation10_spill] sm:$0xff] %v4102_v42 }
 0x10d   :  { %v2207_v4 = vpop.f32.mrf.mxu2  ;;  %1938 = vrot.lane.b32.xlu0 %v1902_v30, %s2849_s14  ;;  %v1275_v12 = vpop.f32.mrf.mxu0  ;;  %404 = vrot.lane.b32.xlu2 %v369_v21, %s2849_s14 }
 0x10e   :  { %v1444_v43 = vpop.f32.mrf.mxu1  ;;  %v1047_v21 = vpop.permute.xlu1 %1046 }
 0x10f   :  { %v1445_v55 = vadd.f32 %v1444_v43, %v1275_v12  ;;  %v452_v30 = vpop.permute.xlu0 %451  ;;  %v1167_v37 = vsel %vm560_vm3, %v1102_v26, %v1047_v21  ;;  %v1986_v34 = vpop.permute.xlu2 %1985  ;;  %v191_v12 = vpack.c.bf16 %v143_v51, %v143_v51  ;;  %v2765_v43 = vadd.f32 -127.5, %v1589_v45 }
 0x110   :  { %v574_v54 = vsel %vm560_vm3, %v508_v29, %v452_v30  ;;  %2678 = vmatmul.msk.bf16.gmra.mxu0 %vm1210_vm4, %v1167_v37  ;;  %v1722_v29 = vpack.c.bf16 %v1674_v50, %v1674_v50  ;;  %v1723_v26 = vpack.c.bf16 %v1675_v56, %v1675_v56  ;;  %v4104_v20 = vpop.f32.mrf.mxu3  ;;  %v1677_v21 = vmul.f32 0.007843138, %v2757_v28 }
 0x111   :  { %v2311_v5 = vadd.f32 %v2207_v4, %v1445_v55  ;;  %2706 = vmatmul.msk.bf16.gmra.mxu1 %vm1210_vm4, %v574_v54  ;;  %4780 = vst [vmem:[#allocation27_spill] sm:$0xff] %v4104_v20  ;;  %v4781_v4 = vld [vmem:[#allocation20_spill] sm:$0xff]  ;;  %v4112_v51 = vunpack.c.l.b16 %v785_v25  ;;  %v4114_v45 = vunpack.c.l.b16 %v786_v3  ;;  %v4116_v30 = vunpack.c.l.b16 %v190_v1 }
 0x112   :  { %v4109_v55 = vpack.c.b16 %v4781_v4, %v4058_v11  ;;  %v4120_v56 = vunpack.c.l.b16 %v191_v12  ;;  %v1685_v37 = vmul.f32 0.007843138, %v2765_v43  ;;  %v4124_v25 = vunpack.c.l.b16 %v1722_v29  ;;  %v4789_v11 = vld [vmem:[#allocation21_spill] sm:$0xff] }
 0x113   :  { %v2347_v7 = vadd.f32 %v4090_v2, %v2311_v5  ;;  %v4126_v3 = vunpack.c.l.b16 %v1723_v26  ;;  %v1725_v43 = vpack.c.bf16 %v1677_v21, %v1677_v21 }
 0x114   :  { %406 = vrot.lane.b32.xlu1 %v370_v13, %s2849_s14  ;;  %v1724_v13 = vpack.c.bf16 %v1676_v49, %v1676_v49  ;;  %v547_v5 = vsel %vm487_vm2, %v4109_v55, %v4049_v35  ;;  %v4136_v49 = vpack.c.b16 %v4114_v45, %v4112_v51  ;;  %v1733_v21 = vpack.c.bf16 %v1685_v37, %v1685_v37  ;;  %v643_v37 = vld [vmem:[%s4710_s0 + $0x101] sm:$0xff] }
 0x115   :  { %vm2379_vm5 = vcmp.ge.f32.partialorder %v2347_v7, 0.0  ;;  %v2411_v47 = vmul.f32 0.01, %v2347_v7  ;;  %v2209_v50 = vpop.f32.mrf.mxu2  ;;  %2007 = vrot.lane.b32.xlu0 %v4098_v15, %s2848_s13  ;;  %v1277_v54 = vpop.f32.mrf.mxu0  ;;  %1056 = vrot.lane.b32.xlu2 %v4102_v42, %s2848_s13  ;;  %v4782_v15 = vld [vmem:[#allocation13_spill] sm:$0xff] }
 0x116   :  { %v1446_v28 = vpop.f32.mrf.mxu1  ;;  %v478_v12 = vpop.permute.xlu1 %477  ;;  %4783 = vst [vmem:[#allocation20_spill] sm:$0xff] %v4136_v49 }
 0x117   :  { %v2443_v1 = vsel %vm2379_vm5, %v2347_v7, %v2411_v47  ;;  %v1447_v4 = vadd.f32 %v1446_v28, %v1277_v54  ;;  %v1929_v20 = vpop.permute.xlu0 %1928  ;;  %v600_v42 = vsel %vm560_vm3, %v547_v5, %v478_v12  ;;  %v454_v29 = vpop.permute.xlu2 %453  ;;  %v4142_v7 = vpack.c.b16 %v4120_v56, %v4116_v30  ;;  %v644_v54 = vld [vmem:[%s4710_s0 + $0x109] sm:$0xff] }
 0x118   :  { %v2475_v6 = vpack.c.bf16 %v2443_v1, %v2443_v1  ;;  %v2042_v22 = vsel %vm487_vm2, %v4782_v15, %v1929_v20  ;;  %2719 = vmatmul.msk.bf16.gmra.mxu3 %vm1210_vm4, %v600_v42  ;;  %v4148_v15 = vpack.c.b16 %v4126_v3, %v4124_v25  ;;  %v4153_v42 = vunpack.c.l.b16 %v1725_v43  ;;  %v1593_v12 = vld [vmem:[%s4710_s0 + $0x16a] sm:$0xff] }
 0x119   :  { %v2312_v26 = vadd.f32 %v2209_v50, %v1447_v4  ;;  %v2106_v35 = vsel %vm560_vm3, %v2042_v22, %v1986_v34  ;;  %4784 = vst [vmem:[#allocation13_spill] sm:$0xff] %v4142_v7  ;;  %v4151_v50 = vunpack.c.l.b16 %v1724_v13  ;;  %v4159_v34 = vunpack.c.l.b16 %v1733_v21  ;;  %v1592_v4 = vld [vmem:[%s4710_s0 + $0x162] sm:$0xff] }
 0x11a   :  { %2508 = vst.msk [vmem:[#allocation2] sm:$0xf] %vm2507_vm6, %v2475_v6  ;;  %2791 = vmatmul.msk.bf16.gmra.mxu2 %vm1210_vm4, %v2106_v35 }
 0x11b   :  { %4785 = vst [vmem:[#allocation28_spill] sm:$0xff] %v4148_v15  ;;  %v2348_v20 = vadd.f32 %v4090_v2, %v2312_v26  ;;  %v1358_v47 = vpop.f32.mrf.mxu3  ;;  %v4171_v5 = vpack.c.b16 %v4153_v42, %v4151_v50  ;;  %v4787_v26 = vld [vmem:[#allocation17_spill] sm:$0xff] }
 0x11c   :  { %1058 = vrot.lane.b32.xlu1 %v4136_v49, %s2848_s13  ;;  %v2644_v47 = vadd.f32 -127.5, %v643_v37  ;;  %v1909_v49 = vpack.c.b16 %v4064_v31, %v4159_v34  ;;  %v1595_v37 = vld [vmem:[%s4710_s0 + $0x17a] sm:$0xff] }
 0x11d   :  { %vm2380_vm7 = vcmp.ge.f32.partialorder %v2348_v20, 0.0  ;;  %v2412_v22 = vmul.f32 0.01, %v2348_v20  ;;  %463 = vrot.lane.b32.xlu0 %v4142_v7, %s2848_s13  ;;  %v2212_v6 = vpop.f32.mrf.mxu2  ;;  %1995 = vrot.lane.b32.xlu2 %v4148_v15, %s2848_s13  ;;  %4786 = vst [vmem:[#allocation29_spill] sm:$0xff] %v4171_v5 }
 0x11e   :  { %v992_v13 = vpop.permute.xlu1 %991  ;;  %v739_v31 = vmul.f32 0.007843138, %v2644_v47 }
 0x11f   :  { %v2444_v28 = vsel %vm2380_vm7, %v2348_v20, %v2412_v22  ;;  %v397_v1 = vpop.permute.xlu0 %396  ;;  %v1449_v21 = vpop.f32.mrf.mxu1  ;;  %v2645_v22 = vadd.f32 -127.5, %v644_v54  ;;  %v2768_v54 = vadd.f32 -127.5, %v1592_v4  ;;  %v1583_v4 = vld [vmem:[%s4710_s0 + $0x11a] sm:$0xff] }
 0x120   :  { %v2476_v43 = vpack.c.bf16 %v2444_v28, %v2444_v28  ;;  %v511_v35 = vsel %vm487_vm2, %v4787_v26, %v397_v1  ;;  %v4181_v20 = vpop.permute.xlu2 %1930  ;;  %v965_v28 = vpack.c.b16 %v4074_v48, %v3904_v61  ;;  %v1594_v1 = vld [vmem:[%s4710_s0 + $0x172] sm:$0xff] }
 0x121   :  { %v576_v6 = vsel %vm560_vm3, %v511_v35, %v454_v29  ;;  %v2769_v29 = vadd.f32 -127.5, %v1593_v12  ;;  %v2770_v26 = vadd.f32 -127.5, %v1594_v1  ;;  %v2771_v35 = vadd.f32 -127.5, %v1595_v37  ;;  %v1582_v48 = vld [vmem:[%s4710_s0 + $0x112] sm:$0xff]  ;;  %v48_v37 = vld [vmem:[%s4710_s0 + $0x100] sm:$0xff] }
 0x122   :  { %2509 = vst.msk [vmem:[#allocation2 + $0x4] sm:$0xf] %vm2507_vm6, %v2476_v43  ;;  %2707 = vmatmul.msk.bf16.gmra.mxu1 %vm1210_vm4, %v576_v6  ;;  %v740_v43 = vmul.f32 0.007843138, %v2645_v22  ;;  %v1688_v12 = vmul.f32 0.007843138, %v2768_v54  ;;  %v966_v1 = vpack.c.b16 %v4112_v51, %v4077_v14  ;;  %v1903_v14 = vpack.c.b16 %v4124_v25, %v3934_v10 }
 0x123   :  { %v1689_v21 = vmul.f32 0.007843138, %v2769_v29  ;;  %v4788_v6 = vld [vmem:[#allocation12_spill] sm:$0xff]  ;;  %v49_v54 = vld [vmem:[%s4710_s0 + $0x108] sm:$0xff]  ;;  %v1691_v51 = vmul.f32 0.007843138, %v2771_v35  ;;  %v1904_v10 = vpack.c.b16 %v4151_v50, %v4126_v3 }
 0x124   :  { %1997 = vrot.lane.b32.xlu1 %v4171_v5, %s2848_s13  ;;  %v1105_v47 = vsel %vm487_vm2, %v4788_v6, %v992_v13  ;;  %v787_v13 = vpack.c.bf16 %v739_v31, %v739_v31  ;;  %v788_v6 = vpack.c.bf16 %v740_v43, %v740_v43  ;;  %v2759_v5 = vadd.f32 -127.5, %v1583_v4  ;;  %v4228_v31 = vpop.f32.mrf.mxu3 }
 0x125   :  { %1952 = vrot.lane.b32.xlu0 %v1909_v49, %s2849_s14  ;;  %1001 = vrot.lane.b32.xlu2 %v965_v28, %s2849_s14  ;;  %v371_v28 = vpack.c.b16 %v4116_v30, %v3984_v59  ;;  %v1690_v59 = vmul.f32 0.007843138, %v2770_v26  ;;  %v2758_v30 = vadd.f32 -127.5, %v1582_v48  ;;  %v1736_v7 = vpack.c.bf16 %v1688_v12, %v1688_v12  ;;  %v2213_v53 = vpop.f32.mrf.mxu2  ;;  %4790 = vst [vmem:[#allocation17_spill] sm:$0xff] %v4228_v31  ;;  %v50_v26 = vld [vmem:[%s4710_s0 + $0x110] sm:$0xff]  ;;  %v51_v12 = vld [vmem:[%s4710_s0 + $0x118] sm:$0xff] }
 0x126   :  { %v1280_v61 = vpop.f32.mrf.mxu0  ;;  %v423_v22 = vpop.permute.xlu1 %422  ;;  %v1737_v15 = vpack.c.bf16 %v1689_v21, %v1689_v21  ;;  %v2590_v41 = vadd.f32 -127.5, %v48_v37  ;;  %v2591_v24 = vadd.f32 -127.5, %v49_v54  ;;  %v4233_v25 = vunpack.c.l.b16 %v787_v13  ;;  %v4791_v37 = vld [vmem:[#allocation14_spill] sm:$0xff] }
 0x127   :  { %v1049_v49 = vpop.permute.xlu0 %1048  ;;  %v4235_v43 = vunpack.c.l.b16 %v788_v6  ;;  %v1450_v35 = vpop.f32.mrf.mxu1  ;;  %v1678_v48 = vmul.f32 0.007843138, %v2758_v30  ;;  %v1679_v4 = vmul.f32 0.007843138, %v2759_v5  ;;  %v4245_v50 = vunpack.c.l.b16 %v1736_v7 }
 0x128   :  { %v1169_v29 = vsel %vm560_vm3, %v1105_v47, %v1049_v49  ;;  %v4219_v61 = vpop.permute.xlu2 %398  ;;  %v4226_v47 = vpack.c.b16 %v3599_v60, %v4789_v11  ;;  %v1738_v60 = vpack.c.bf16 %v1690_v59, %v1690_v59  ;;  %v1739_v11 = vpack.c.bf16 %v1691_v51, %v1691_v51 }
 0x129   :  { %2679 = vmatmul.msk.bf16.gmra.mxu0 %vm1210_vm4, %v1169_v29  ;;  %v4247_v21 = vunpack.c.l.b16 %v1737_v15  ;;  %v144_v49 = vmul.f32 0.007843138, %v2590_v41  ;;  %v2045_v5 = vsel %vm487_vm2, %v4791_v37, %v4181_v20  ;;  %v2592_v6 = vadd.f32 -127.5, %v50_v26 }
 0x12a   :  { %v4258_v15 = vpack.c.b16 %v4235_v43, %v4233_v25  ;;  %v1726_v20 = vpack.c.bf16 %v1678_v48, %v1678_v48  ;;  %v4269_v37 = vunpack.c.l.b16 %v1739_v11 }
 0x12b   :  { %v4264_v51 = vpack.c.b16 %v4247_v21, %v4245_v50  ;;  %v192_v30 = vpack.c.bf16 %v144_v49, %v144_v49 }
 0x12c   :  { %1003 = vrot.lane.b32.xlu1 %v966_v1, %s2849_s14  ;;  %v145_v1 = vmul.f32 0.007843138, %v2591_v24  ;;  %v2593_v24 = vadd.f32 -127.5, %v51_v12 }
 0x12d   :  { %408 = vrot.lane.b32.xlu0 %v371_v28, %s2849_s14  ;;  %1940 = vrot.lane.b32.xlu2 %v1903_v14, %s2849_s14  ;;  %v550_v28 = vsel %vm487_vm2, %v4226_v47, %v423_v22  ;;  %v1727_v22 = vpack.c.bf16 %v1679_v4, %v1679_v4 }
 0x12e   :  { %v1281_v3 = vpop.f32.mrf.mxu0  ;;  %v1988_v29 = vpop.permute.xlu1 %1987  ;;  %v193_v26 = vpack.c.bf16 %v145_v1, %v145_v1  ;;  %v147_v48 = vmul.f32 0.007843138, %v2593_v24  ;;  %v4276_v1 = vunpack.c.l.b16 %v1726_v20 }
 0x12f   :  { %v1451_v54 = vadd.f32 %v1450_v35, %v1281_v3  ;;  %v480_v13 = vpop.permute.xlu0 %479  ;;  %v2108_v7 = vsel %vm560_vm3, %v2045_v5, %v1988_v29  ;;  %v4278_v5 = vunpack.c.l.b16 %v1727_v22 }
 0x130   :  { %v602_v59 = vsel %vm560_vm3, %v550_v28, %v480_v13  ;;  %v1051_v41 = vpop.permute.xlu2 %1050  ;;  %2792 = vmatmul.msk.bf16.gmra.mxu2 %vm1210_vm4, %v2108_v7  ;;  %v4267_v28 = vunpack.c.l.b16 %v1738_v60  ;;  %v4282_v60 = vunpack.c.l.b16 %v192_v30  ;;  %v4284_v11 = vunpack.c.l.b16 %v193_v26 }
 0x131   :  { %v2313_v14 = vadd.f32 %v2213_v53, %v1451_v54  ;;  %2720 = vmatmul.msk.bf16.gmra.mxu3 %vm1210_vm4, %v602_v59  ;;  %v146_v53 = vmul.f32 0.007843138, %v2592_v6  ;;  %v195_v26 = vpack.c.bf16 %v147_v48, %v147_v48 }
 0x132   :  { %v4291_v59 = vpack.c.b16 %v4269_v37, %v4267_v28 }
 0x133   :  { %v2349_v35 = vadd.f32 %v4090_v2, %v2313_v14  ;;  %v2216_v3 = vpop.f32.mrf.mxu2  ;;  %v194_v7 = vpack.c.bf16 %v146_v53, %v146_v53 }
 0x134   :  { %v4271_v12 = vpop.f32.mrf.mxu3  ;;  %1942 = vrot.lane.b32.xlu1 %v1904_v10, %s2849_s14  ;;  %v4793_v10 = vld [vmem:[#allocation19_spill] sm:$0xff] }
 0x135   :  { %4792 = vst [vmem:[#allocation12_spill] sm:$0xff] %v4271_v12  ;;  %vm2381_vm8 = vcmp.ge.f32.partialorder %v2349_v35, 0.0  ;;  %v2413_v4 = vmul.f32 0.01, %v2349_v35  ;;  %1060 = vrot.lane.b32.xlu0 %v4258_v15, %s2848_s13  ;;  %v1453_v49 = vpop.f32.mrf.mxu1  ;;  %2009 = vrot.lane.b32.xlu2 %v4264_v51, %s2848_s13  ;;  %v514_v29 = vsel %vm487_vm2, %v4793_v10, %v4219_v61 }
 0x136   :  { %v456_v13 = vpop.permute.xlu1 %455 }
 0x137   :  { %v2445_v54 = vsel %vm2381_vm8, %v2349_v35, %v2413_v4  ;;  %v994_v6 = vpop.permute.xlu0 %993  ;;  %v1284_v20 = vpop.f32.mrf.mxu0  ;;  %v578_v22 = vsel %vm560_vm3, %v514_v29, %v456_v13  ;;  %v4300_v4 = vpack.c.b16 %v4278_v5, %v4276_v1  ;;  %v1741_v13 = vld [vmem:[%s4710_s0 + $0x18a] sm:$0xff] }
 0x138   :  { %v2477_v24 = vpack.c.bf16 %v2445_v54, %v2445_v54  ;;  %v1108_v14 = vsel %vm487_vm2, %v3511_v58, %v994_v6  ;;  %v482_v30 = vpop.permute.xlu2 %481  ;;  %v1454_v35 = vadd.f32 %v1453_v49, %v1284_v20  ;;  %2708 = vmatmul.msk.bf16.gmra.mxu1 %vm1210_vm4, %v578_v22  ;;  %v4306_v58 = vpack.c.b16 %v4284_v11, %v4282_v60  ;;  %v646_v20 = vld [vmem:[%s4710_s0 + $0x119] sm:$0xff] }
 0x139   :  { %v1171_v61 = vsel %vm560_vm3, %v1108_v14, %v1051_v41  ;;  %v4310_v49 = vunpack.c.l.b16 %v194_v7  ;;  %v4312_v41 = vunpack.c.l.b16 %v195_v26  ;;  %v645_v14 = vld [vmem:[%s4710_s0 + $0x111] sm:$0xff]  ;;  %v2773_v12 = vadd.f32 -127.5, %v1741_v13 }
 0x13a   :  { %2510 = vst.msk [vmem:[#allocation2 + $0x8] sm:$0xf] %vm2507_vm6, %v2477_v24  ;;  %2680 = vmatmul.msk.bf16.gmra.mxu0 %vm1210_vm4, %v1171_v61  ;;  %v2314_v53 = vadd.f32 %v2216_v3, %v1454_v35  ;;  %v1740_v3 = vld [vmem:[%s4710_s0 + $0x182] sm:$0xff]  ;;  %v967_v61 = vpack.c.b16 %v4233_v25, %v4114_v45 }
 0x13b   :  { %v2218_v54 = vpop.f32.mrf.mxu2  ;;  %v4335_v35 = vpack.c.b16 %v4312_v41, %v4310_v49  ;;  %v1747_v25 = vmul.f32 0.007843138, %v2773_v12  ;;  %v1911_v12 = vpack.c.b16 %v4267_v28, %v4247_v21 }
 0x13c   :  { %v1364_v48 = vpop.f32.mrf.mxu3  ;;  %2011 = vrot.lane.b32.xlu1 %v4291_v59, %s2848_s13  ;;  %v2350_v10 = vadd.f32 %v4090_v2, %v2314_v53 }
 0x13d   :  { %1999 = vrot.lane.b32.xlu0 %v4300_v4, %s2848_s13  ;;  %v1455_v29 = vpop.f32.mrf.mxu1  ;;  %465 = vrot.lane.b32.xlu2 %v4306_v58, %s2848_s13 }
 0x13e   :  { %vm2382_vm9 = vcmp.ge.f32.partialorder %v2350_v10, 0.0  ;;  %v2414_v6 = vmul.f32 0.01, %v2350_v10  ;;  %v1933_v7 = vpop.permute.xlu1 %1932  ;;  %v2772_v29 = vadd.f32 -127.5, %v1740_v3 }
 0x13f   :  { %v425_v24 = vpop.permute.xlu0 %424  ;;  %v1286_v26 = vpop.f32.mrf.mxu0  ;;  %v2048_v3 = vsel %vm487_vm2, %v3503_v32, %v1933_v7  ;;  %v1905_v32 = vpack.c.b16 %v4276_v1, %v4153_v42  ;;  %v1586_v42 = vld [vmem:[%s4710_s0 + $0x132] sm:$0xff] }
 0x140   :  { %v553_v22 = vsel %vm487_vm2, %v3552_v18, %v425_v24  ;;  %v996_v53 = vpop.permute.xlu2 %995  ;;  %v2446_v54 = vsel %vm2382_vm9, %v2350_v10, %v2414_v6  ;;  %v1910_v18 = vpack.c.b16 %v4245_v50, %v4066_v33  ;;  %v2646_v24 = vadd.f32 -127.5, %v645_v14  ;;  %v1585_v50 = vld [vmem:[%s4710_s0 + $0x12a] sm:$0xff] }
 0x141   :  { %v604_v48 = vsel %vm560_vm3, %v553_v22, %v482_v30  ;;  %v2478_v31 = vpack.c.bf16 %v2446_v54, %v2446_v54  ;;  %v2647_v26 = vadd.f32 -127.5, %v646_v20  ;;  %v1746_v45 = vmul.f32 0.007843138, %v2772_v29 }
 0x142   :  { %2721 = vmatmul.msk.bf16.gmra.mxu3 %vm1210_vm4, %v604_v48  ;;  %v741_v30 = vmul.f32 0.007843138, %v2646_v24  ;;  %v1750_v22 = vpack.c.bf16 %v1747_v25, %v1747_v25 }
 0x143   :  { %2511 = vst.msk [vmem:[#allocation2 + $0xc] sm:$0xf] %vm2507_vm6, %v2478_v31  ;;  %v742_v10 = vmul.f32 0.007843138, %v2647_v26  ;;  %v1584_v31 = vld [vmem:[%s4710_s0 + $0x122] sm:$0xff]  ;;  %v1749_v7 = vpack.c.bf16 %v1746_v45, %v1746_v45 }
 0x144   :  { %467 = vrot.lane.b32.xlu1 %v4335_v35, %s2848_s13  ;;  %v789_v54 = vpack.c.bf16 %v741_v30, %v741_v30  ;;  %v2760_v29 = vadd.f32 -127.5, %v1584_v31  ;;  %v4370_v26 = vunpack.c.l.b16 %v1750_v22 }
 0x145   :  { %1005 = vrot.lane.b32.xlu0 %v967_v61, %s2849_s14  ;;  %1954 = vrot.lane.b32.xlu2 %v1910_v18, %s2849_s14  ;;  %v4359_v20 = vpop.f32.mrf.mxu3  ;;  %v372_v61 = vpack.c.b16 %v4282_v60, %v4120_v56  ;;  %v790_v48 = vpack.c.bf16 %v742_v10, %v742_v10  ;;  %v2761_v18 = vadd.f32 -127.5, %v1585_v50  ;;  %v4368_v28 = vunpack.c.l.b16 %v1749_v7 }
 0x146   :  { %v401_v13 = vpop.permute.xlu1 %400  ;;  %v4376_v56 = vunpack.c.l.b16 %v789_v54  ;;  %v1680_v45 = vmul.f32 0.007843138, %v2760_v29  ;;  %v1111_v10 = vsel %vm487_vm2, %v3542_v27, %v996_v53  ;;  %v2762_v7 = vadd.f32 -127.5, %v1586_v42 }
 0x147   :  { %v1990_v33 = vpop.permute.xlu0 %1989  ;;  %v4378_v60 = vunpack.c.l.b16 %v790_v48  ;;  %v1681_v25 = vmul.f32 0.007843138, %v2761_v18  ;;  %v517_v30 = vsel %vm487_vm2, %v3547_v23, %v401_v13  ;;  %v1968_v27 = vpack.c.b16 %v4370_v26, %v4368_v28 }
 0x148   :  { %v2110_v6 = vsel %vm560_vm3, %v2048_v3, %v1990_v33  ;;  %v427_v14 = vpop.permute.xlu2 %426  ;;  %v1728_v53 = vpack.c.bf16 %v1680_v45, %v1680_v45  ;;  %v1682_v54 = vmul.f32 0.007843138, %v2762_v7  ;;  %v4794_v7 = vld [vmem:[#allocation18_spill] sm:$0xff] }
 0x149   :  { %2793 = vmatmul.msk.bf16.gmra.mxu2 %vm1210_vm4, %v2110_v6  ;;  %v4394_v23 = vpack.c.b16 %v4378_v60, %v4376_v56  ;;  %v1729_v13 = vpack.c.bf16 %v1681_v25, %v1681_v25 }
 0x14c   :  { %v2220_v24 = vpop.f32.mrf.mxu2  ;;  %1956 = vrot.lane.b32.xlu1 %v1911_v12, %s2849_s14  ;;  %v373_v12 = vpack.c.b16 %v4310_v49, %v4284_v11 }
 0x14d   :  { %1944 = vrot.lane.b32.xlu0 %v1905_v32, %s2849_s14  ;;  %v1288_v21 = vpop.f32.mrf.mxu0  ;;  %410 = vrot.lane.b32.xlu2 %v372_v61, %s2849_s14  ;;  %v4396_v61 = vpop.f32.mrf.mxu3 }
 0x14e   :  { %v1457_v1 = vpop.f32.mrf.mxu1  ;;  %v1053_v33 = vpop.permute.xlu1 %1052 }
 0x14f   :  { %v1458_v3 = vadd.f32 %v1457_v1, %v1288_v21  ;;  %v458_v31 = vpop.permute.xlu0 %457  ;;  %v1173_v50 = vsel %vm560_vm3, %v1111_v10, %v1053_v33  ;;  %v4405_v21 = vunpack.c.l.b16 %v1729_v13  ;;  %v556_v1 = vsel %vm487_vm2, %v3580_v40, %v427_v14 }
 0x150   :  { %v580_v6 = vsel %vm560_vm3, %v517_v30, %v458_v31  ;;  %v1992_v32 = vpop.permute.xlu2 %1991  ;;  %2681 = vmatmul.msk.bf16.gmra.mxu0 %vm1210_vm4, %v1173_v50  ;;  %v1730_v50 = vpack.c.bf16 %v1682_v54, %v1682_v54  ;;  %v1752_v54 = vld [vmem:[%s4710_s0 + $0x19a] sm:$0xff] }
 0x151   :  { %v2315_v22 = vadd.f32 %v2220_v24, %v1458_v3  ;;  %2709 = vmatmul.msk.bf16.gmra.mxu1 %vm1210_vm4, %v580_v6  ;;  %v4403_v24 = vunpack.c.l.b16 %v1728_v53 }
 0x153   :  { %v2351_v11 = vadd.f32 %v4090_v2, %v2315_v22  ;;  %v4418_v40 = vpack.c.b16 %v4405_v21, %v4403_v24  ;;  %v4423_v22 = vunpack.c.l.b16 %v1730_v50  ;;  %v4795_v50 = vld [vmem:[#allocation15_spill] sm:$0xff] }
 0x154   :  { %v2222_v49 = vpop.f32.mrf.mxu2  ;;  %412 = vrot.lane.b32.xlu1 %v373_v12, %s2849_s14 }
 0x155   :  { %vm2383_vm10 = vcmp.ge.f32.partialorder %v2351_v11, 0.0  ;;  %v2415_v48 = vmul.f32 0.01, %v2351_v11  ;;  %2013 = vrot.lane.b32.xlu0 %v1968_v27, %s2848_s13  ;;  %v1290_v29 = vpop.f32.mrf.mxu0  ;;  %1062 = vrot.lane.b32.xlu2 %v4394_v23, %s2848_s13 }
 0x156   :  { %v1459_v18 = vpop.f32.mrf.mxu1  ;;  %v484_v25 = vpop.permute.xlu1 %483 }
 0x157   :  { %v2447_v42 = vsel %vm2383_vm10, %v2351_v11, %v2415_v48  ;;  %v1460_v45 = vadd.f32 %v1459_v18, %v1290_v29  ;;  %v1935_v30 = vpop.permute.xlu0 %1934  ;;  %v606_v33 = vsel %vm560_vm3, %v556_v1, %v484_v25  ;;  %v4439_v18 = vpack.c.b16 %v4021_v16, %v4423_v22  ;;  %v1753_v16 = vld [vmem:[%s4710_s0 + $0x1a2] sm:$0xff] }
 0x158   :  { %v2479_v10 = vpack.c.bf16 %v2447_v42, %v2447_v42  ;;  %v2051_v3 = vsel %vm487_vm2, %v3656_v8, %v1935_v30  ;;  %v460_v31 = vpop.permute.xlu2 %459  ;;  %2722 = vmatmul.msk.bf16.gmra.mxu3 %vm1210_vm4, %v606_v33  ;;  %v968_v25 = vpack.c.b16 %v4376_v56, %v4235_v43 }
 0x159   :  { %v2316_v6 = vadd.f32 %v2222_v49, %v1460_v45  ;;  %v2112_v12 = vsel %vm560_vm3, %v2051_v3, %v1992_v32  ;;  %v1742_v49 = vld [vmem:[%s4710_s0 + $0x192] sm:$0xff]  ;;  %v1912_v45 = vpack.c.b16 %v4368_v28, %v4269_v37  ;;  %v1754_v37 = vld [vmem:[%s4710_s0 + $0x1aa] sm:$0xff] }
 0x15a   :  { %2512 = vst.msk [vmem:[#allocation2 + $0x10] sm:$0xf] %vm2507_vm6, %v2479_v10  ;;  %2794 = vmatmul.msk.bf16.gmra.mxu2 %vm1210_vm4, %v2112_v12  ;;  %v2774_v30 = vadd.f32 -127.5, %v1742_v49 }
 0x15b   :  { %v2352_v14 = vadd.f32 %v4090_v2, %v2316_v6  ;;  %v1371_v8 = vpop.f32.mrf.mxu3  ;;  %v969_v6 = vpack.c.b16 %v4795_v50, %v4378_v60 }
 0x15c   :  { %1064 = vrot.lane.b32.xlu1 %v4794_v7, %s2848_s13  ;;  %v1748_v10 = vmul.f32 0.007843138, %v2774_v30  ;;  %v2777_v8 = vadd.f32 -127.5, %v1754_v37  ;;  %v374_v7 = vpack.c.b16 %v3966_v9, %v4312_v41 }
 0x15d   :  { %vm2384_vm11 = vcmp.ge.f32.partialorder %v2352_v14, 0.0  ;;  %v2416_v27 = vmul.f32 0.01, %v2352_v14  ;;  %469 = vrot.lane.b32.xlu0 %v3980_v63, %s2848_s13  ;;  %v2225_v32 = vpop.f32.mrf.mxu2  ;;  %2001 = vrot.lane.b32.xlu2 %v4418_v40, %s2848_s13 }
 0x15e   :  { %v998_v13 = vpop.permute.xlu1 %997  ;;  %v1751_v32 = vpack.c.bf16 %v1748_v10, %v1748_v10  ;;  %v1760_v60 = vmul.f32 0.007843138, %v2777_v8 }
 0x15f   :  { %v2448_v53 = vsel %vm2384_vm11, %v2352_v14, %v2416_v27  ;;  %v403_v11 = vpop.permute.xlu0 %402  ;;  %v1462_v63 = vpop.f32.mrf.mxu1  ;;  %v1114_v56 = vsel %vm487_vm2, %v3652_v52, %v998_v13  ;;  %v2776_v14 = vadd.f32 -127.5, %v1753_v16  ;;  %v1906_v27 = vpack.c.b16 %v4403_v24, %v4278_v5 }
 0x160   :  { %v2480_v48 = vpack.c.bf16 %v2448_v53, %v2448_v53  ;;  %v520_v29 = vsel %vm487_vm2, %v3696_v44, %v403_v11  ;;  %v1937_v42 = vpop.permute.xlu2 %1936  ;;  %v2775_v44 = vadd.f32 -127.5, %v1752_v54  ;;  %v1763_v16 = vpack.c.bf16 %v1760_v60, %v1760_v60 }
 0x161   :  { %v582_v1 = vsel %vm560_vm3, %v520_v29, %v460_v31  ;;  %v1759_v11 = vmul.f32 0.007843138, %v2776_v14  ;;  %v2054_v41 = vsel %vm487_vm2, %v3686_v46, %v1937_v42 }
 0x162   :  { %2513 = vst.msk [vmem:[#allocation2 + $0x14] sm:$0xf] %vm2507_vm6, %v2480_v48  ;;  %2710 = vmatmul.msk.bf16.gmra.mxu1 %vm1210_vm4, %v582_v1  ;;  %v1758_v43 = vmul.f32 0.007843138, %v2775_v44  ;;  %v4473_v48 = vunpack.c.l.b16 %v1751_v32  ;;  %v1907_v1 = vpack.c.b16 %v4423_v22, %v4405_v21  ;;  %v1967_v22 = vunpack.c.l.b16 %v1763_v16 }
 0x163   :  { %v4468_v13 = vpop.f32.mrf.mxu3  ;;  %v1762_v44 = vpack.c.bf16 %v1759_v11, %v1759_v11 }
 0x164   :  { %2003 = vrot.lane.b32.xlu1 %v4439_v18, %s2848_s13  ;;  %v1761_v52 = vpack.c.bf16 %v1758_v43, %v1758_v43 }
 0x165   :  { %1958 = vrot.lane.b32.xlu0 %v1912_v45, %s2849_s14  ;;  %1007 = vrot.lane.b32.xlu2 %v968_v25, %s2849_s14  ;;  %v2226_v53 = vpop.f32.mrf.mxu2  ;;  %v1966_v21 = vunpack.c.l.b16 %v1762_v44 }
 0x166   :  { %v1293_v28 = vpop.f32.mrf.mxu0  ;;  %v429_v3 = vpop.permute.xlu1 %428  ;;  %v1965_v9 = vunpack.c.l.b16 %v1761_v52  ;;  %v4502_v52 = vpack.c.b16 %v4159_v34, %v4023_v62 }
 0x167   :  { %v1055_v33 = vpop.permute.xlu0 %1054  ;;  %v1463_v49 = vpop.f32.mrf.mxu1  ;;  %v559_v5 = vsel %vm487_vm2, %v3691_v19, %v429_v3 }
 0x168   :  { %v1175_v31 = vsel %vm560_vm3, %v1114_v56, %v1055_v33  ;;  %v405_v12 = vpop.permute.xlu2 %404  ;;  %v1969_v46 = vpack.c.b16 %v1965_v9, %v4473_v48 }
 0x169   :  { %2682 = vmatmul.msk.bf16.gmra.mxu0 %vm1210_vm4, %v1175_v31  ;;  %v523_v3 = vsel %vm487_vm2, %v3724_v0, %v405_v12 }
 0x16c   :  { %1009 = vrot.lane.b32.xlu1 %v969_v6, %s2849_s14 }
 0x16d   :  { %414 = vrot.lane.b32.xlu0 %v374_v7, %s2849_s14  ;;  %1946 = vrot.lane.b32.xlu2 %v1906_v27, %s2849_s14  ;;  %v1970_v7 = vpack.c.b16 %v1967_v22, %v1966_v21 }
 0x16e   :  { %v1294_v54 = vpop.f32.mrf.mxu0  ;;  %v1994_v29 = vpop.permute.xlu1 %1993 }
 0x16f   :  { %v1464_v24 = vadd.f32 %v1463_v49, %v1294_v54  ;;  %v486_v63 = vpop.permute.xlu0 %485  ;;  %v2114_v25 = vsel %vm560_vm3, %v2054_v41, %v1994_v29 }
 0x170   :  { %v608_v45 = vsel %vm560_vm3, %v559_v5, %v486_v63  ;;  %v1057_v30 = vpop.permute.xlu2 %1056  ;;  %2795 = vmatmul.msk.bf16.gmra.mxu2 %vm1210_vm4, %v2114_v25 }
 0x171   :  { %v2317_v37 = vadd.f32 %v2226_v53, %v1464_v24  ;;  %2723 = vmatmul.msk.bf16.gmra.mxu3 %vm1210_vm4, %v608_v45  ;;  %v4796_v24 = vld [vmem:[#allocation16_spill] sm:$0xff] }
 0x172   :  { %v970_v29 = vpack.c.b16 %v3469_v36, %v4796_v24 }
 0x173   :  { %v2353_v19 = vadd.f32 %v4090_v2, %v2317_v37  ;;  %v2229_v42 = vpop.f32.mrf.mxu2  ;;  %v4798_v37 = vld [vmem:[#allocation23_spill] sm:$0xff] }
 0x174   :  { %v4487_v28 = vpop.f32.mrf.mxu3  ;;  %1948 = vrot.lane.b32.xlu1 %v1907_v1, %s2849_s14 }
 0x175   :  { %vm2385_vm12 = vcmp.ge.f32.partialorder %v2353_v19, 0.0  ;;  %v2417_v10 = vmul.f32 0.01, %v2353_v19  ;;  %1066 = vrot.lane.b32.xlu0 %v3507_v38, %s2848_s13  ;;  %v1466_v43 = vpop.f32.mrf.mxu1  ;;  %2015 = vrot.lane.b32.xlu2 %v1969_v46, %s2848_s13  ;;  %v4799_v46 = vld [vmem:[#allocation22_spill] sm:$0xff] }
 0x176   :  { %v462_v33 = vpop.permute.xlu1 %461 }
 0x177   :  { %v2449_v56 = vsel %vm2385_vm12, %v2353_v19, %v2417_v10  ;;  %v1000_v31 = vpop.permute.xlu0 %999  ;;  %v1297_v14 = vpop.f32.mrf.mxu0  ;;  %v584_v8 = vsel %vm560_vm3, %v523_v3, %v462_v33 }
 0x178   :  { %v2481_v50 = vpack.c.bf16 %v2449_v56, %v2449_v56  ;;  %v1117_v6 = vsel %vm487_vm2, %v3797_v57, %v1000_v31  ;;  %v1996_v27 = vpop.permute.xlu2 %1995  ;;  %v1467_v32 = vadd.f32 %v1466_v43, %v1297_v14  ;;  %2711 = vmatmul.msk.bf16.gmra.mxu1 %vm1210_vm4, %v584_v8  ;;  %v4800_v8 = vld [vmem:[#allocation5_spill] sm:$0xff] }
 0x179   :  { %v1177_v38 = vsel %vm560_vm3, %v1117_v6, %v1057_v30 }
 0x17a   :  { %2514 = vst.msk [vmem:[#allocation2 + $0x18] sm:$0xf] %vm2507_vm6, %v2481_v50  ;;  %2683 = vmatmul.msk.bf16.gmra.mxu0 %vm1210_vm4, %v1177_v38  ;;  %v2318_v0 = vadd.f32 %v2229_v42, %v1467_v32 }
 0x17b   :  { %v2231_v57 = vpop.f32.mrf.mxu2 }
 0x17c   :  { %v1377_v12 = vpop.f32.mrf.mxu3  ;;  %2017 = vrot.lane.b32.xlu1 %v1970_v7, %s2848_s13  ;;  %v2354_v53 = vadd.f32 %v4090_v2, %v2318_v0 }
 0x17d   :  { %2005 = vrot.lane.b32.xlu0 %v4502_v52, %s2848_s13  ;;  %v1468_v11 = vpop.f32.mrf.mxu1  ;;  %471 = vrot.lane.b32.xlu2 %v4109_v55, %s2848_s13  ;;  %v1913_v55 = vpack.c.b16 %v4473_v48, %v4370_v26  ;;  %v4797_v48 = vld [vmem:[#allocation26_spill] sm:$0xff] }
 0x17e   :  { %vm2386_vm13 = vcmp.ge.f32.partialorder %v2354_v53, 0.0  ;;  %v2418_v62 = vmul.f32 0.01, %v2354_v53  ;;  %v1951_v34 = vpop.permute.xlu1 %1950  ;;  %v375_v30 = vpack.c.b16 %v4797_v48, %v3968_v17 }
 0x17f   :  { %v1939_v60 = vpop.permute.xlu0 %1938  ;;  %v1299_v54 = vpop.f32.mrf.mxu0 }
 0x180   :  { %v2057_v49 = vsel %vm487_vm2, %v3793_v39, %v1939_v60  ;;  %v1002_v9 = vpop.permute.xlu2 %1001  ;;  %v2450_v5 = vsel %vm2386_vm13, %v2354_v53, %v2418_v62  ;;  %v2075_v39 = vsel %vm487_vm2, %v4418_v40, %v1951_v34 }
 0x181   :  { %v2116_v41 = vsel %vm560_vm3, %v2057_v49, %v1996_v27  ;;  %v2482_v63 = vpack.c.bf16 %v2450_v5, %v2450_v5  ;;  %v1120_v19 = vsel %vm487_vm2, %v4799_v46, %v1002_v9  ;;  %v4801_v27 = vld [vmem:[#allocation24_spill] sm:$0xff] }
 0x182   :  { %2796 = vmatmul.msk.bf16.gmra.mxu2 %vm1210_vm4, %v2116_v41 }
 0x183   :  { %2515 = vst.msk [vmem:[#allocation2 + $0x1c] sm:$0xf] %vm2507_vm6, %v2482_v63  ;;  %v4802_v63 = vld [vmem:[#allocation9_spill] sm:$0xff] }
 0x184   :  { %473 = vrot.lane.b32.xlu1 %v4226_v47, %s2848_s13 }
 0x185   :  { %1011 = vrot.lane.b32.xlu0 %v970_v29, %s2849_s14  ;;  %1960 = vrot.lane.b32.xlu2 %v1913_v55, %s2849_s14  ;;  %v4529_v26 = vpop.f32.mrf.mxu3 }
 0x186   :  { %v407_v1 = vpop.permute.xlu1 %406 }
 0x187   :  { %v2008_v36 = vpop.permute.xlu0 %2007  ;;  %v526_v40 = vsel %vm487_vm2, %v4798_v37, %v407_v1 }
 0x188   :  { %v2128_v45 = vsel %vm560_vm3, %v2075_v39, %v2008_v36  ;;  %v1941_v25 = vpop.permute.xlu2 %1940 }
 0x189   :  { %2802 = vmatmul.msk.bf16.vlgmr.msra.gmra.mxu3 %vm1210_vm4, %v2128_v45  ;;  %v2060_v32 = vsel %vm487_vm2, %v4801_v27, %v1941_v25  ;;  %v4803_v45 = vld [vmem:[#allocation6_spill] sm:$0xff] }
 0x18c   :  { %v2233_v47 = vpop.f32.mrf.mxu2 }
 0x18d   :  { %v1301_v44 = vpop.f32.mrf.mxu0  ;;  %416 = vrot.lane.b32.xlu2 %v375_v30, %s2849_s14  ;;  %v4543_v33 = vpop.f32.mrf.mxu3 }
 0x18e   :  { %v1470_v16 = vpop.f32.mrf.mxu1  ;;  %v1059_v21 = vpop.permute.xlu1 %1058 }
 0x18f   :  { %v1471_v42 = vadd.f32 %v1470_v16, %v1301_v44  ;;  %v464_v22 = vpop.permute.xlu0 %463  ;;  %v1179_v10 = vsel %vm560_vm3, %v1120_v19, %v1059_v21  ;;  %v4804_v19 = vld [vmem:[#allocation7_spill] sm:$0xff] }
 0x190   :  { %v586_v43 = vsel %vm560_vm3, %v526_v40, %v464_v22  ;;  %v2010_v56 = vpop.permute.xlu2 %2009  ;;  %2684 = vmatmul.msk.bf16.gmra.mxu0 %vm1210_vm4, %v1179_v10 }
 0x191   :  { %v2319_v17 = vadd.f32 %v2233_v47, %v1471_v42  ;;  %2712 = vmatmul.msk.bf16.gmra.mxu1 %vm1210_vm4, %v586_v43 }
 0x193   :  { %v2355_v3 = vadd.f32 %v4090_v2, %v2319_v17 }
 0x194   :  { %v2235_v31 = vpop.f32.mrf.mxu2 }
 0x195   :  { %vm2387_vm14 = vcmp.ge.f32.partialorder %v2355_v3, 0.0  ;;  %v2419_v50 = vmul.f32 0.01, %v2355_v3  ;;  %v1303_v6 = vpop.f32.mrf.mxu0  ;;  %1068 = vrot.lane.b32.xlu2 %v4800_v8, %s2848_s13 }
 0x196   :  { %v1472_v14 = vpop.f32.mrf.mxu1  ;;  %v1998_v0 = vpop.permute.xlu1 %1997 }
 0x197   :  { %v2451_v7 = vsel %vm2387_vm14, %v2355_v3, %v2419_v50  ;;  %v1473_v38 = vadd.f32 %v1472_v14, %v1303_v6  ;;  %v1953_v57 = vpop.permute.xlu0 %1952  ;;  %v2118_v53 = vsel %vm560_vm3, %v2060_v32, %v1998_v0  ;;  %v4579_v50 = vld [vmem:[%s4712_s2] ss:$0 sm:$0xff]  ;;  %s2851_s2 = smov [#allocation2]  }
 0x198   :  { %v2483_v12 = vpack.c.bf16 %v2451_v7, %v2451_v7  ;;  %v2078_v11 = vsel %vm487_vm2, %v4439_v18, %v1953_v57  ;;  %v466_v62 = vpop.permute.xlu2 %465  ;;  %2797 = vmatmul.msk.bf16.gmra.mxu2 %vm1210_vm4, %v2118_v53  ;;  %v4805_v32 = vld [vmem:[#allocation25_spill] sm:$0xff]  ;;  %s2544_s14 = sshll.u32 %s2851_s2, 4  ;;  %s2545_s14 = int_to_ptr.vmem [resolvable:$true] %s2544_s14 }
 0x199   :  { %v2320_v34 = vadd.f32 %v2235_v31, %v1473_v38  ;;  %v2130_v60 = vsel %vm560_vm3, %v2078_v11, %v2010_v56  ;;  %v4806_v11 = vld [vmem:[#allocation10_spill] sm:$0xff] }
 0x19a   :  { %2516 = vst.msk [vmem:[#allocation2 + $0x20] sm:$0xf] %vm2507_vm6, %v2483_v12  ;;  %2803 = vmatmul.msk.bf16.gmra.mxu3 %vm1210_vm4, %v2130_v60 }
 0x19b   :  { %v2356_v49 = vadd.f32 %v4090_v2, %v2320_v34  ;;  %v1527_v54 = vpop.f32.mrf.mxu3 }
 0x19d   :  { %vm2388_vm15 = vcmp.ge.f32.partialorder %v2356_v49, 0.0  ;;  %v2420_v9 = vmul.f32 0.01, %v2356_v49  ;;  %v2238_v5 = vpop.f32.mrf.mxu2 }
 0x19e   :  { %v1004_v24 = vpop.permute.xlu1 %1003 }
 0x19f   :  { %v2452_v41 = vsel %vm2388_vm15, %v2356_v49, %v2420_v9  ;;  %v409_v29 = vpop.permute.xlu0 %408  ;;  %v1475_v39 = vpop.f32.mrf.mxu1  ;;  %v1123_v25 = vsel %vm487_vm2, %v4803_v45, %v1004_v24 }
 0x1a0   :  { %v2484_v18 = vpack.c.bf16 %v2452_v41, %v2452_v41  ;;  %v529_v55 = vsel %vm487_vm2, %v4802_v63, %v409_v29  ;;  %v1955_v1 = vpop.permute.xlu2 %1954  ;;  %v4807_v39 = vld [vmem:[#allocation28_spill] sm:$0xff] }
 0x1a1   :  { %v588_v36 = vsel %vm560_vm3, %v529_v55, %v466_v62  ;;  %v2081_v21 = vsel %vm487_vm2, %v4502_v52, %v1955_v1 }
 0x1a2   :  { %2517 = vst.msk [vmem:[#allocation2 + $0x24] sm:$0xf] %vm2507_vm6, %v2484_v18  ;;  %2713 = vmatmul.msk.bf16.gmra.mxu1 %vm1210_vm4, %v588_v36 }
 0x1a3   :  { %v4566_v16 = vpop.f32.mrf.mxu3 }
 0x1a5   :  { %v2239_v37 = vpop.f32.mrf.mxu2 }
 0x1a6   :  { %v1306_v2 = vpop.f32.mrf.mxu0  ;;  %v1943_v48 = vpop.permute.xlu1 %1942 }
 0x1a7   :  { %v1061_v30 = vpop.permute.xlu0 %1060  ;;  %v1476_v40 = vpop.f32.mrf.mxu1  ;;  %v2063_v42 = vsel %vm487_vm2, %v4804_v19, %v1943_v48 }
 0x1a8   :  { %v1181_v47 = vsel %vm560_vm3, %v1123_v25, %v1061_v30  ;;  %v411_v44 = vpop.permute.xlu2 %410  ;;  %v4808_v30 = vld [vmem:[#allocation11_spill] sm:$0xff] }
 0x1a9   :  { %2685 = vmatmul.msk.bf16.gmra.mxu0 %vm1210_vm4, %v1181_v47  ;;  %v532_v38 = vsel %vm487_vm2, %v4805_v32, %v411_v44 }
 0x1ae   :  { %v1307_v46 = vpop.f32.mrf.mxu0  ;;  %v2012_v10 = vpop.permute.xlu1 %2011 }
 0x1af   :  { %v1477_v22 = vadd.f32 %v1476_v40, %v1307_v46  ;;  %v2000_v43 = vpop.permute.xlu0 %1999  ;;  %v2132_v56 = vsel %vm560_vm3, %v2081_v21, %v2012_v10  ;;  %v4809_v10 = vld [vmem:[#allocation13_spill] sm:$0xff] }
 0x1b0   :  { %v2120_v17 = vsel %vm560_vm3, %v2063_v42, %v2000_v43  ;;  %v1063_v3 = vpop.permute.xlu2 %1062  ;;  %2804 = vmatmul.msk.bf16.gmra.mxu3 %vm1210_vm4, %v2132_v56  ;;  %v4810_v56 = vld [vmem:[#allocation20_spill] sm:$0xff] }
 0x1b1   :  { %v2321_v31 = vadd.f32 %v2239_v37, %v1477_v22  ;;  %2798 = vmatmul.msk.bf16.gmra.mxu2 %vm1210_vm4, %v2120_v17 }
 0x1b3   :  { %v2357_v52 = vadd.f32 %v4579_v50, %v2321_v31  ;;  %v2242_v14 = vpop.f32.mrf.mxu2 }
 0x1b4   :  { %v4582_v6 = vpop.f32.mrf.mxu3 }
 0x1b5   :  { %vm2389_vm0 = vcmp.ge.f32.partialorder %v2357_v52, 0.0  ;;  %v2421_v8 = vmul.f32 0.01, %v2357_v52  ;;  %v1479_v7 = vpop.f32.mrf.mxu1 }
 0x1b6   :  { %v468_v0 = vpop.permute.xlu1 %467 }
 0x1b7   :  { %v2453_v27 = vsel %vm2389_vm0, %v2357_v52, %v2421_v8  ;;  %v1006_v57 = vpop.permute.xlu0 %1005  ;;  %v590_v53 = vsel %vm560_vm3, %v532_v38, %v468_v0  ;;  %v1310_v34 = vpop.f32.mrf.mxu0 }
 0x1b8   :  { %v2485_v12 = vpack.c.bf16 %v2453_v27, %v2453_v27  ;;  %v1126_v62 = vsel %vm487_vm2, %v4806_v11, %v1006_v57  ;;  %v2002_v60 = vpop.permute.xlu2 %2001  ;;  %v1480_v49 = vadd.f32 %v1479_v7, %v1310_v34  ;;  %2714 = vmatmul.msk.bf16.gmra.mxu1 %vm1210_vm4, %v590_v53 }
 0x1b9   :  { %v1183_v54 = vsel %vm560_vm3, %v1126_v62, %v1063_v3  ;;  %v4811_v62 = vld [vmem:[#allocation29_spill] sm:$0xff] }
 0x1ba   :  { %2518 = vst.msk [vmem:[#allocation2 + $0x28] sm:$0xf] %vm2507_vm6, %v2485_v12  ;;  %2686 = vmatmul.msk.bf16.gmra.mxu0 %vm1210_vm4, %v1183_v54  ;;  %v2322_v9 = vadd.f32 %v2242_v14, %v1480_v49 }
 0x1bb   :  { %v2244_v41 = vpop.f32.mrf.mxu2 }
 0x1bc   :  { %v1533_v5 = vpop.f32.mrf.mxu3  ;;  %v2358_v24 = vadd.f32 %v4579_v50, %v2322_v9 }
 0x1bd   :  { %v1481_v29 = vpop.f32.mrf.mxu1 }
 0x1be   :  { %vm2390_vm1 = vcmp.ge.f32.partialorder %v2358_v24, 0.0  ;;  %v2422_v18 = vmul.f32 0.01, %v2358_v24  ;;  %v1957_v63 = vpop.permute.xlu1 %1956 }
 0x1bf   :  { %v1945_v55 = vpop.permute.xlu0 %1944  ;;  %v1312_v36 = vpop.f32.mrf.mxu0  ;;  %v2084_v47 = vsel %vm487_vm2, %v4808_v30, %v1957_v63 }
 0x1c0   :  { %v2066_v1 = vsel %vm487_vm2, %v4807_v39, %v1945_v55  ;;  %v1008_v2 = vpop.permute.xlu2 %1007  ;;  %v2454_v45 = vsel %vm2390_vm1, %v2358_v24, %v2422_v18 }
 0x1c1   :  { %v2122_v25 = vsel %vm560_vm3, %v2066_v1, %v2002_v60  ;;  %v2486_v48 = vpack.c.bf16 %v2454_v45, %v2454_v45  ;;  %v1129_v17 = vsel %vm487_vm2, %v4810_v56, %v1008_v2 }
 0x1c2   :  { %2799 = vmatmul.msk.bf16.gmra.mxu2 %vm1210_vm4, %v2122_v25 }
 0x1c3   :  { %2519 = vst.msk [vmem:[#allocation2 + $0x2c] sm:$0xf] %vm2507_vm6, %v2486_v48 }
 0x1c5   :  { %v4603_v19 = vpop.f32.mrf.mxu3 }
 0x1c6   :  { %v413_v44 = vpop.permute.xlu1 %412 }
 0x1c7   :  { %v2014_v37 = vpop.permute.xlu0 %2013  ;;  %v535_v43 = vsel %vm487_vm2, %v4809_v10, %v413_v44 }
 0x1c8   :  { %v2134_v40 = vsel %vm560_vm3, %v2084_v47, %v2014_v37  ;;  %v1947_v46 = vpop.permute.xlu2 %1946 }
 0x1c9   :  { %2805 = vmatmul.msk.bf16.gmra.mxu3 %vm1210_vm4, %v2134_v40  ;;  %v2069_v34 = vsel %vm487_vm2, %v4811_v62, %v1947_v46 }
 0x1cc   :  { %v2246_v42 = vpop.f32.mrf.mxu2 }
 0x1cd   :  { %v1314_v21 = vpop.f32.mrf.mxu0  ;;  %v4614_v38 = vpop.f32.mrf.mxu3 }
 0x1ce   :  { %v1483_v22 = vpop.f32.mrf.mxu1  ;;  %v1065_v31 = vpop.permute.xlu1 %1064 }
 0x1cf   :  { %v1484_v3 = vadd.f32 %v1483_v22, %v1314_v21  ;;  %v470_v52 = vpop.permute.xlu0 %469  ;;  %v1185_v14 = vsel %vm560_vm3, %v1129_v17, %v1065_v31 }
 0x1d0   :  { %v592_v8 = vsel %vm560_vm3, %v535_v43, %v470_v52  ;;  %v2016_v7 = vpop.permute.xlu2 %2015  ;;  %2687 = vmatmul.msk.bf16.gmra.mxu0 %vm1210_vm4, %v1185_v14 }
 0x1d1   :  { %v2323_v27 = vadd.f32 %v2246_v42, %v1484_v3  ;;  %2715 = vmatmul.msk.bf16.gmra.mxu1 %vm1210_vm4, %v592_v8 }
 0x1d3   :  { %v2359_v32 = vadd.f32 %v4579_v50, %v2323_v27 }
 0x1d4   :  { %v2248_v0 = vpop.f32.mrf.mxu2 }
 0x1d5   :  { %vm2391_vm5 = vcmp.ge.f32.partialorder %v2359_v32, 0.0  ;;  %v2423_v57 = vmul.f32 0.01, %v2359_v32  ;;  %v1316_v12 = vpop.f32.mrf.mxu0 }
 0x1d6   :  { %v1485_v53 = vpop.f32.mrf.mxu1  ;;  %v2004_v49 = vpop.permute.xlu1 %2003 }
 0x1d7   :  { %v2455_v11 = vsel %vm2391_vm5, %v2359_v32, %v2423_v57  ;;  %v1486_v60 = vadd.f32 %v1485_v53, %v1316_v12  ;;  %v1959_v54 = vpop.permute.xlu0 %1958  ;;  %v2124_v5 = vsel %vm560_vm3, %v2069_v34, %v2004_v49 }
 0x1d8   :  { %v2487_v9 = vpack.c.bf16 %v2455_v11, %v2455_v11  ;;  %v2087_v41 = vsel %vm487_vm2, %v4264_v51, %v1959_v54  ;;  %v472_v24 = vpop.permute.xlu2 %471  ;;  %2800 = vmatmul.msk.bf16.gmra.mxu2 %vm1210_vm4, %v2124_v5 }
 0x1d9   :  { %v2324_v29 = vadd.f32 %v2248_v0, %v1486_v60  ;;  %v2136_v18 = vsel %vm560_vm3, %v2087_v41, %v2016_v7 }
 0x1da   :  { %2520 = vst.msk [vmem:[#allocation2 + $0x30] sm:$0xf] %vm2507_vm6, %v2487_v9  ;;  %2806 = vmatmul.msk.bf16.gmra.mxu3 %vm1210_vm4, %v2136_v18 }
 0x1db   :  { %v2360_v63 = vadd.f32 %v4579_v50, %v2324_v29  ;;  %v1540_v55 = vpop.f32.mrf.mxu3 }
 0x1dd   :  { %vm2392_vm7 = vcmp.ge.f32.partialorder %v2360_v63, 0.0  ;;  %v2424_v39 = vmul.f32 0.01, %v2360_v63  ;;  %v2251_v1 = vpop.f32.mrf.mxu2 }
 0x1de   :  { %v1010_v2 = vpop.permute.xlu1 %1009  ;;  %v4812_v1 = vld [vmem:[#allocation8_spill] sm:$0xff] }
 0x1df   :  { %v2456_v36 = vsel %vm2392_vm7, %v2360_v63, %v2424_v39  ;;  %v415_v45 = vpop.permute.xlu0 %414  ;;  %v1488_v48 = vpop.f32.mrf.mxu1  ;;  %v1132_v37 = vsel %vm487_vm2, %v4258_v15, %v1010_v2 }
 0x1e0   :  { %v2488_v51 = vpack.c.bf16 %v2456_v36, %v2456_v36  ;;  %v538_v25 = vsel %vm487_vm2, %v4306_v58, %v415_v45  ;;  %v1961_v47 = vpop.permute.xlu2 %1960  ;;  %v1523_v36 = vadd.f32 %v4529_v26, %v4812_v1 }
 0x1e1   :  { %v594_v30 = vsel %vm560_vm3, %v538_v25, %v472_v24  ;;  %v2090_v17 = vsel %vm487_vm2, %v4291_v59, %v1961_v47 }
 0x1e2   :  { %2521 = vst.msk [vmem:[#allocation2 + $0x34] sm:$0xf] %vm2507_vm6, %v2488_v51  ;;  %2716 = vmatmul.msk.bf16.gmra.mxu1 %vm1210_vm4, %v594_v30 }
 0x1e3   :  { %v4635_v21 = vpop.f32.mrf.mxu3 }
 0x1e5   :  { %v2252_v58 = vpop.f32.mrf.mxu2 }
 0x1e6   :  { %v1319_v44 = vpop.f32.mrf.mxu0  ;;  %v1949_v40 = vpop.permute.xlu1 %1948 }
 0x1e7   :  { %v1067_v46 = vpop.permute.xlu0 %1066  ;;  %v1489_v10 = vpop.f32.mrf.mxu1  ;;  %v2072_v56 = vsel %vm487_vm2, %v4300_v4, %v1949_v40 }
 0x1e8   :  { %v1187_v42 = vsel %vm560_vm3, %v1132_v37, %v1067_v46  ;;  %v417_v22 = vpop.permute.xlu2 %416  ;;  %v4813_v37 = vld [vmem:[#allocation27_spill] sm:$0xff] }
 0x1e9   :  { %2688 = vmatmul.msk.bf16.gmra.mxu0 %vm1210_vm4, %v1187_v42  ;;  %v541_v12 = vsel %vm487_vm2, %v4335_v35, %v417_v22  ;;  %v1525_v40 = vadd.f32 %v4543_v33, %v4813_v37 }
 0x1ee   :  { %v1320_v43 = vpop.f32.mrf.mxu0  ;;  %v2018_v15 = vpop.permute.xlu1 %2017 }
 0x1ef   :  { %v1490_v3 = vadd.f32 %v1489_v10, %v1320_v43  ;;  %v2006_v31 = vpop.permute.xlu0 %2005  ;;  %v2138_v52 = vsel %vm560_vm3, %v2090_v17, %v2018_v15 }
 0x1f0   :  { %v2126_v14 = vsel %vm560_vm3, %v2072_v56, %v2006_v31  ;;  %2807 = vmatmul.msk.bf16.gmra.mxu3 %vm1210_vm4, %v2138_v52  ;;  %v1069_v0 = vpop.permute.xlu2 %1068 }
 0x1f1   :  { %v2325_v8 = vadd.f32 %v2252_v58, %v1490_v3  ;;  %2801 = vmatmul.msk.bf16.gmra.mxu2 %vm1210_vm4, %v2126_v14 }
 0x1f3   :  { %v2361_v7 = vadd.f32 %v4579_v50, %v2325_v8  ;;  %v2255_v4 = vpop.f32.mrf.mxu2 }
 0x1f4   :  { %v4646_v27 = vpop.f32.mrf.mxu3 }
 0x1f5   :  { %vm2393_vm8 = vcmp.ge.f32.partialorder %v2361_v7, 0.0  ;;  %v2425_v32 = vmul.f32 0.01, %v2361_v7  ;;  %v1492_v59 = vpop.f32.mrf.mxu1 }
 0x1f6   :  { %v474_v53 = vpop.permute.xlu1 %473 }
 0x1f7   :  { %v2457_v57 = vsel %vm2393_vm8, %v2361_v7, %v2425_v32  ;;  %v1012_v11 = vpop.permute.xlu0 %1011  ;;  %v596_v34 = vsel %vm560_vm3, %v541_v12, %v474_v53  ;;  %v1323_v49 = vpop.f32.mrf.mxu0 }
 0x1f8   :  { %v2489_v62 = vpack.c.bf16 %v2457_v57, %v2457_v57  ;;  %v1135_v60 = vsel %vm487_vm2, %v4394_v23, %v1012_v11  ;;  %v1493_v54 = vadd.f32 %v1492_v59, %v1323_v49  ;;  %2717 = vmatmul.msk.bf16.gmra.mxu1 %vm1210_vm4, %v596_v34  ;;  %v4814_v11 = vld [vmem:[#allocation17_spill] sm:$0xff] }
 0x1f9   :  { %v1189_v9 = vsel %vm560_vm3, %v1135_v60, %v1069_v0 }
 0x1fa   :  { %2522 = vst.msk [vmem:[#allocation2 + $0x38] sm:$0xf] %vm2507_vm6, %v2489_v62  ;;  %2689 = vmatmul.msk.bf16.gmra.mxu0 %vm1210_vm4, %v1189_v9  ;;  %v2326_v5 = vadd.f32 %v2255_v4, %v1493_v54  ;;  %v1529_v62 = vadd.f32 %v4566_v16, %v4814_v11 }
 0x1fb   :  { %v2257_v41 = vpop.f32.mrf.mxu2 }
 0x1fc   :  { %v1546_v35 = vpop.f32.mrf.mxu3  ;;  %v2362_v24 = vadd.f32 %v4579_v50, %v2326_v5 }
 0x1fd   :  { %v1494_v29 = vpop.f32.mrf.mxu1 }
 0x1fe   :  { %vm2394_vm9 = vcmp.ge.f32.partialorder %v2362_v24, 0.0  ;;  %v2426_v18 = vmul.f32 0.01, %v2362_v24 }
 0x1ff   :  { %v1325_v63 = vpop.f32.mrf.mxu0 }
 0x200   :  { %v2458_v23 = vsel %vm2394_vm9, %v2362_v24, %v2426_v18 }
 0x201   :  { %v2490_v55 = vpack.c.bf16 %v2458_v23, %v2458_v23  ;;  %v4815_v23 = vld [vmem:[#allocation12_spill] sm:$0xff] }
 0x203   :  { %2523 = vst.msk [vmem:[#allocation2 + $0x3c] sm:$0xf] %vm2507_vm6, %v2490_v55  ;;  %v1532_v55 = vadd.f32 %v4582_v6, %v4815_v23 }
 0x205   :  { %v2259_v39 = vpop.f32.mrf.mxu2 }
 0x20c   :  { %v2285_v2 = vpop.f32.mrf.mxu3 }
 0x20d   :  { %v2335_v45 = vadd.f32 %v2285_v2, %v1523_v36  ;;  %v1327_v51 = vpop.f32.mrf.mxu0  ;;  %v2261_v22 = vpop.f32.mrf.mxu2 }
 0x20e   :  { %v1496_v25 = vpop.f32.mrf.mxu1 }
 0x20f   :  { %v2371_v48 = vadd.f32 %v4579_v50, %v2335_v45  ;;  %v1497_v30 = vadd.f32 %v1496_v25, %v1327_v51 }
 0x211   :  { %vm2403_vm2 = vcmp.ge.f32.partialorder %v2371_v48, 0.0  ;;  %v2435_v47 = vmul.f32 0.01, %v2371_v48  ;;  %v2327_v44 = vadd.f32 %v2259_v39, %v1497_v30 }
 0x213   :  { %v2467_v46 = vsel %vm2403_vm2, %v2371_v48, %v2435_v47  ;;  %v2363_v42 = vadd.f32 %v4579_v50, %v2327_v44 }
 0x214   :  { %v2499_v58 = vpack.c.bf16 %v2467_v46, %v2467_v46  ;;  %v2287_v10 = vpop.f32.mrf.mxu3 }
 0x215   :  { %vm2395_vm3 = vcmp.ge.f32.partialorder %v2363_v42, 0.0  ;;  %v2427_v26 = vmul.f32 0.01, %v2363_v42  ;;  %v2336_v43 = vadd.f32 %v2287_v10, %v1525_v40  ;;  %v1329_v56 = vpop.f32.mrf.mxu0 }
 0x216   :  { %2532 = vst.msk [vmem:[#allocation2 + $0x60] sm:$0xf] %vm2507_vm6, %v2499_v58  ;;  %v1498_v17 = vpop.f32.mrf.mxu1 }
 0x217   :  { %v2459_v3 = vsel %vm2395_vm3, %v2363_v42, %v2427_v26  ;;  %v2372_v15 = vadd.f32 %v4579_v50, %v2336_v43  ;;  %v1499_v31 = vadd.f32 %v1498_v17, %v1329_v56 }
 0x218   :  { %v2491_v52 = vpack.c.bf16 %v2459_v3, %v2459_v3  ;;  %v1536_v3 = vadd.f32 %v4603_v19, %v4359_v20 }
 0x219   :  { %vm2404_vm4 = vcmp.ge.f32.partialorder %v2372_v15, 0.0  ;;  %v2436_v33 = vmul.f32 0.01, %v2372_v15  ;;  %v2328_v14 = vadd.f32 %v2261_v22, %v1499_v31 }
 0x21a   :  { %2524 = vst.msk [vmem:[#allocation2 + $0x40] sm:$0xf] %vm2507_vm6, %v2491_v52 }
 0x21b   :  { %v2468_v8 = vsel %vm2404_vm4, %v2372_v15, %v2436_v33  ;;  %v2364_v7 = vadd.f32 %v4579_v50, %v2328_v14  ;;  %v2264_v32 = vpop.f32.mrf.mxu2 }
 0x21c   :  { %v2500_v4 = vpack.c.bf16 %v2468_v8, %v2468_v8  ;;  %v1538_v32 = vadd.f32 %v4614_v38, %v4396_v61 }
 0x21d   :  { %vm2396_vm10 = vcmp.ge.f32.partialorder %v2364_v7, 0.0  ;;  %v2428_v59 = vmul.f32 0.01, %v2364_v7  ;;  %v2290_v0 = vpop.f32.mrf.mxu3 }
 0x21e   :  { %2533 = vst.msk [vmem:[#allocation2 + $0x64] sm:$0xf] %vm2507_vm6, %v2500_v4 }
 0x21f   :  { %v2460_v57 = vsel %vm2396_vm10, %v2364_v7, %v2428_v59  ;;  %v1501_v12 = vpop.f32.mrf.mxu1 }
 0x220   :  { %v2492_v53 = vpack.c.bf16 %v2460_v57, %v2460_v57 }
 0x222   :  { %2525 = vst.msk [vmem:[#allocation2 + $0x44] sm:$0xf] %vm2507_vm6, %v2492_v53 }
 0x223   :  { %v2265_v5 = vpop.f32.mrf.mxu2 }
 0x225   :  { %v2291_v34 = vpop.f32.mrf.mxu3 }
 0x226   :  { %v2337_v60 = vadd.f32 %v2291_v34, %v1529_v62  ;;  %v1332_v49 = vpop.f32.mrf.mxu0 }
 0x227   :  { %v1502_v24 = vpop.f32.mrf.mxu1 }
 0x228   :  { %v2373_v54 = vadd.f32 %v4579_v50, %v2337_v60 }
 0x22a   :  { %vm2405_vm11 = vcmp.ge.f32.partialorder %v2373_v54, 0.0  ;;  %v2437_v9 = vmul.f32 0.01, %v2373_v54 }
 0x22c   :  { %v2469_v35 = vsel %vm2405_vm11, %v2373_v54, %v2437_v9 }
 0x22d   :  { %v2501_v41 = vpack.c.bf16 %v2469_v35, %v2469_v35 }
 0x22e   :  { %v1333_v29 = vpop.f32.mrf.mxu0 }
 0x22f   :  { %2534 = vst.msk [vmem:[#allocation2 + $0x68] sm:$0xf] %vm2507_vm6, %v2501_v41  ;;  %v1503_v18 = vadd.f32 %v1502_v24, %v1333_v29 }
 0x231   :  { %v2329_v63 = vadd.f32 %v2265_v5, %v1503_v18 }
 0x233   :  { %v2365_v16 = vadd.f32 %v4579_v50, %v2329_v63  ;;  %v2294_v1 = vpop.f32.mrf.mxu3 }
 0x234   :  { %v2268_v39 = vpop.f32.mrf.mxu2  ;;  %v2338_v2 = vadd.f32 %v2294_v1, %v1532_v55  ;;  %v1542_v55 = vadd.f32 %v4635_v21, %v4468_v13 }
 0x235   :  { %vm2397_vm12 = vcmp.ge.f32.partialorder %v2365_v16, 0.0  ;;  %v2429_v36 = vmul.f32 0.01, %v2365_v16  ;;  %v1505_v45 = vpop.f32.mrf.mxu1 }
 0x236   :  { %v2374_v25 = vadd.f32 %v4579_v50, %v2338_v2 }
 0x237   :  { %v2461_v51 = vsel %vm2397_vm12, %v2365_v16, %v2429_v36  ;;  %v1336_v48 = vpop.f32.mrf.mxu0 }
 0x238   :  { %v2493_v30 = vpack.c.bf16 %v2461_v51, %v2461_v51  ;;  %v1506_v47 = vadd.f32 %v1505_v45, %v1336_v48  ;;  %vm2406_vm13 = vcmp.ge.f32.partialorder %v2374_v25, 0.0  ;;  %v2438_v44 = vmul.f32 0.01, %v2374_v25 }
 0x23a   :  { %2526 = vst.msk [vmem:[#allocation2 + $0x48] sm:$0xf] %vm2507_vm6, %v2493_v30  ;;  %v2330_v37 = vadd.f32 %v2268_v39, %v1506_v47  ;;  %v2470_v6 = vsel %vm2406_vm13, %v2374_v25, %v2438_v44 }
 0x23b   :  { %v2502_v40 = vpack.c.bf16 %v2470_v6, %v2470_v6  ;;  %v2296_v58 = vpop.f32.mrf.mxu3 }
 0x23c   :  { %v2366_v46 = vadd.f32 %v4579_v50, %v2330_v37  ;;  %v2270_v42 = vpop.f32.mrf.mxu2  ;;  %v1545_v37 = vadd.f32 %v4646_v27, %v4487_v28 }
 0x23d   :  { %2535 = vst.msk [vmem:[#allocation2 + $0x6c] sm:$0xf] %vm2507_vm6, %v2502_v40  ;;  %v1507_v10 = vpop.f32.mrf.mxu1 }
 0x23e   :  { %vm2398_vm14 = vcmp.ge.f32.partialorder %v2366_v46, 0.0  ;;  %v2430_v22 = vmul.f32 0.01, %v2366_v46 }
 0x23f   :  { %v1338_v26 = vpop.f32.mrf.mxu0 }
 0x240   :  { %v2462_v43 = vsel %vm2398_vm14, %v2366_v46, %v2430_v22 }
 0x241   :  { %v2494_v56 = vpack.c.bf16 %v2462_v43, %v2462_v43 }
 0x243   :  { %2527 = vst.msk [vmem:[#allocation2 + $0x4c] sm:$0xf] %vm2507_vm6, %v2494_v56 }
 0x245   :  { %v2272_v17 = vpop.f32.mrf.mxu2 }
 0x24c   :  { %v2298_v15 = vpop.f32.mrf.mxu3 }
 0x24d   :  { %v2339_v31 = vadd.f32 %v2298_v15, %v1536_v3  ;;  %v1340_v52 = vpop.f32.mrf.mxu0  ;;  %v2274_v12 = vpop.f32.mrf.mxu2 }
 0x24e   :  { %v1509_v33 = vpop.f32.mrf.mxu1 }
 0x24f   :  { %v2375_v14 = vadd.f32 %v4579_v50, %v2339_v31  ;;  %v1510_v8 = vadd.f32 %v1509_v33, %v1340_v52 }
 0x251   :  { %vm2407_vm15 = vcmp.ge.f32.partialorder %v2375_v14, 0.0  ;;  %v2439_v7 = vmul.f32 0.01, %v2375_v14  ;;  %v2331_v4 = vadd.f32 %v2272_v17, %v1510_v8 }
 0x253   :  { %v2471_v59 = vsel %vm2407_vm15, %v2375_v14, %v2439_v7  ;;  %v2367_v0 = vadd.f32 %v4579_v50, %v2331_v4 }
 0x254   :  { %v2503_v57 = vpack.c.bf16 %v2471_v59, %v2471_v59  ;;  %v2300_v53 = vpop.f32.mrf.mxu3 }
 0x255   :  { %vm2399_vm0 = vcmp.ge.f32.partialorder %v2367_v0, 0.0  ;;  %v2431_v20 = vmul.f32 0.01, %v2367_v0  ;;  %v2340_v19 = vadd.f32 %v2300_v53, %v1538_v32  ;;  %v1342_v11 = vpop.f32.mrf.mxu0 }
 0x256   :  { %2536 = vst.msk [vmem:[#allocation2 + $0x70] sm:$0xf] %vm2507_vm6, %v2503_v57  ;;  %v1511_v62 = vpop.f32.mrf.mxu1 }
 0x257   :  { %v2463_v34 = vsel %vm2399_vm0, %v2367_v0, %v2431_v20  ;;  %v2376_v60 = vadd.f32 %v4579_v50, %v2340_v19  ;;  %v1512_v49 = vadd.f32 %v1511_v62, %v1342_v11 }
 0x258   :  { %v2495_v54 = vpack.c.bf16 %v2463_v34, %v2463_v34 }
 0x259   :  { %vm2408_vm1 = vcmp.ge.f32.partialorder %v2376_v60, 0.0  ;;  %v2440_v61 = vmul.f32 0.01, %v2376_v60  ;;  %v2332_v38 = vadd.f32 %v2274_v12, %v1512_v49 }
 0x25a   :  { %2528 = vst.msk [vmem:[#allocation2 + $0x50] sm:$0xf] %vm2507_vm6, %v2495_v54 }
 0x25b   :  { %v2472_v9 = vsel %vm2408_vm1, %v2376_v60, %v2440_v61  ;;  %v2368_v5 = vadd.f32 %v4579_v50, %v2332_v38  ;;  %v2277_v41 = vpop.f32.mrf.mxu2 }
 0x25c   :  { %v2504_v35 = vpack.c.bf16 %v2472_v9, %v2472_v9 }
 0x25d   :  { %vm2400_vm5 = vcmp.ge.f32.partialorder %v2368_v5, 0.0  ;;  %v2432_v24 = vmul.f32 0.01, %v2368_v5  ;;  %v2303_v29 = vpop.f32.mrf.mxu3 }
 0x25e   :  { %2537 = vst.msk [vmem:[#allocation2 + $0x74] sm:$0xf] %vm2507_vm6, %v2504_v35 }
 0x25f   :  { %v2464_v18 = vsel %vm2400_vm5, %v2368_v5, %v2432_v24  ;;  %v1514_v63 = vpop.f32.mrf.mxu1 }
 0x260   :  { %v2496_v23 = vpack.c.bf16 %v2464_v18, %v2464_v18 }
 0x262   :  { %2529 = vst.msk [vmem:[#allocation2 + $0x54] sm:$0xf] %vm2507_vm6, %v2496_v23 }
 0x263   :  { %v2278_v45 = vpop.f32.mrf.mxu2 }
 0x265   :  { %v2304_v16 = vpop.f32.mrf.mxu3 }
 0x266   :  { %v2341_v39 = vadd.f32 %v2304_v16, %v1542_v55  ;;  %v1345_v1 = vpop.f32.mrf.mxu0 }
 0x267   :  { %v1515_v48 = vpop.f32.mrf.mxu1 }
 0x268   :  { %v2377_v36 = vadd.f32 %v4579_v50, %v2341_v39 }
 0x26a   :  { %vm2409_vm7 = vcmp.ge.f32.partialorder %v2377_v36, 0.0  ;;  %v2441_v2 = vmul.f32 0.01, %v2377_v36 }
 0x26c   :  { %v2473_v51 = vsel %vm2409_vm7, %v2377_v36, %v2441_v2 }
 0x26d   :  { %v2505_v25 = vpack.c.bf16 %v2473_v51, %v2473_v51 }
 0x26e   :  { %v1346_v30 = vpop.f32.mrf.mxu0 }
 0x26f   :  { %2538 = vst.msk [vmem:[#allocation2 + $0x78] sm:$0xf] %vm2507_vm6, %v2505_v25  ;;  %v1516_v47 = vadd.f32 %v1515_v48, %v1346_v30 }
 0x271   :  { %v2333_v44 = vadd.f32 %v2278_v45, %v1516_v47 }
 0x273   :  { %v2369_v13 = vadd.f32 %v4579_v50, %v2333_v44  ;;  %v2307_v6 = vpop.f32.mrf.mxu3 }
 0x274   :  { %v2281_v21 = vpop.f32.mrf.mxu2  ;;  %v2342_v46 = vadd.f32 %v2307_v6, %v1545_v37 }
 0x275   :  { %vm2401_vm8 = vcmp.ge.f32.partialorder %v2369_v13, 0.0  ;;  %v2433_v40 = vmul.f32 0.01, %v2369_v13  ;;  %v1518_v42 = vpop.f32.mrf.mxu1 }
 0x276   :  { %v2378_v22 = vadd.f32 %v4579_v50, %v2342_v46 }
 0x277   :  { %v2465_v58 = vsel %vm2401_vm8, %v2369_v13, %v2433_v40  ;;  %v1349_v10 = vpop.f32.mrf.mxu0 }
 0x278   :  { %v2497_v26 = vpack.c.bf16 %v2465_v58, %v2465_v58  ;;  %v1519_v43 = vadd.f32 %v1518_v42, %v1349_v10  ;;  %vm2410_vm9 = vcmp.ge.f32.partialorder %v2378_v22, 0.0  ;;  %v2442_v56 = vmul.f32 0.01, %v2378_v22 }
 0x27a   :  { %2530 = vst.msk [vmem:[#allocation2 + $0x58] sm:$0xf] %vm2507_vm6, %v2497_v26  ;;  %v2334_v17 = vadd.f32 %v2281_v21, %v1519_v43  ;;  %v2474_v28 = vsel %vm2410_vm9, %v2378_v22, %v2442_v56 }
 0x27b   :  { %v2506_v27 = vpack.c.bf16 %v2474_v28, %v2474_v28  ;;  %v2309_v31 = vpop.f32.mrf.mxu3 }
 0x27c   :  { %v2370_v3 = vadd.f32 %v4579_v50, %v2334_v17  ;;  %v2283_v15 = vpop.f32.mrf.mxu2 }
 0x27d   :  { %2539 = vst.msk [vmem:[#allocation2 + $0x7c] sm:$0xf] %vm2507_vm6, %v2506_v27  ;;  %v1520_v33 = vpop.f32.mrf.mxu1 }
 0x27e   :  { %vm2402_vm2 = vcmp.ge.f32.partialorder %v2370_v3, 0.0  ;;  %v2434_v52 = vmul.f32 0.01, %v2370_v3 }
 0x27f   :  { %v1351_v14 = vpop.f32.mrf.mxu0 }
 0x280   :  { %v2466_v8 = vsel %vm2402_vm2, %v2370_v3, %v2434_v52 }
 0x281   :  { %v2498_v7 = vpack.c.bf16 %v2466_v8, %v2466_v8 }
 0x283   :  { %2531 = vst.msk [vmem:[#allocation2 + $0x5c] sm:$0xf] %vm2507_vm6, %v2498_v7 }
 0x284   :  { %2552 = dma.vmem_to_hbm [thread:$0]  %s2545_s14, 2048, %s2547_s1, [#allocation3], %s2852_s19, %s2852_s19, %s2853_s20  }
 0x285   :  { %2846 = dma.done.wait [#allocation3], 2048  }
 0x286   :  { %2847 = vsyncadd [#allocation3], 4294965248 }
 0x287   :  { %2557 = vsyncpa [#allocation3], 1 }

</bundles_post_ra>
